<compile_context>
chip_gen: v7x
topology: tpu7x:2x2x1
jax: 0.10.0
libtpu: 0.0.40
codegen_flags: <defaults>
</compile_context>

<pallas_src>
import math

import jax
import jax.numpy as jnp
from jax import lax
from jax.experimental import pallas as pl
from jax.experimental.pallas import tpu as pltpu

EPS = 1e-5
LANE = 128


def _rup(n, m):
    return ((n + m - 1) // m) * m


def _pad_to(a, shape):
    return jnp.pad(a, [(0, t - s) for s, t in zip(a.shape, shape)])


# ------------------------- fused Pallas kernel -------------------------

def _make_kernel(H, W, Wr, Nrows, BT, M, Pp, Cinp, has_sc_conv, extract, cdt):
    inv_hw = 1.0 / float(H * W)
    NR = BT * Nrows
    f32 = jnp.float32

    def kernel(x_ref, mask_ref, s1_ref, b1_ref, w1_ref, s2_ref, b2_ref,
               w2_ref, s3_ref, b3_ref, w3_ref, sew1_ref, sew2_ref, *rest):
        if has_sc_conv:
            wsc_ref, out_ref, zbuf_ref = rest
        else:
            out_ref, zbuf_ref = rest

        x = x_ref[...].reshape(NR, Cinp)                       # (NR, Cinp) f32

        # ---- pre-activation relu(bn1(x)) (pad positions handled by the mask below)
        pre = jnp.maximum(x * s1_ref[...] + b1_ref[...], 0.0)
        pre_c = pre.astype(cdt)

        # ---- conv1 (1x1), relu(bn2), interior mask (zeros the halo row / halo cols
        #      so conv2's shifted taps see true zero padding)
        c1 = jnp.dot(pre_c, w1_ref[...], preferred_element_type=f32)
        z = jnp.maximum(c1 * s2_ref[...] + b2_ref[...], 0.0) * mask_ref[...]

        # ---- conv2 (3x3, pad=1) as 9 shifted MXU matmuls from a margin-padded VMEM
        #      buffer.  Only the 2*M margin rows are zeroed (the interior is fully
        #      overwritten every step); do NOT gate this on program_id -- under
        #      "parallel" megacore sharding the second core never runs step 0.
        zero_m = jnp.zeros((M, Pp), f32)
        zbuf_ref[0:M, :] = zero_m
        zbuf_ref[M + NR:M + NR + M, :] = zero_m
        zbuf_ref[pl.ds(M, NR), :] = z

        acc = jnp.zeros((NR, Pp), f32)
        for ky in range(3):
            for kx in range(3):
                shift = (ky - 1) * Wr + (kx - 1)               # ky shifts are 8-aligned
                tap = zbuf_ref[pl.ds(M + shift, NR), :]
                acc = acc + jnp.dot(tap.astype(cdt), w2_ref[ky * 3 + kx],
                                    preferred_element_type=f32)

        # ---- relu(bn3), conv3 (1x1)
        a3 = jnp.maximum(acc * s3_ref[...] + b3_ref[...], 0.0)
        c3 = jnp.dot(a3.astype(cdt), w3_ref[...], preferred_element_type=f32)

        # ---- shortcut: 1x1 conv on the pre-activation, or identity (= x)
        if has_sc_conv:
            sc = jnp.dot(pre_c, wsc_ref[...], preferred_element_type=f32)
        else:
            sc = x                                             # Cinp == Coutp

        # ---- per-image SE gate + residual, stored lane-dense (and sublane-aligned
        #      when W % 8 == 0) straight into the output block
        sew1 = sew1_ref[...]
        sew2 = sew2_ref[...]
        for b in range(BT):
            lo = b * Nrows
            xb = x[lo:lo + Nrows]                              # pad rows/cols are zero
            pooled = jnp.sum(xb, axis=0, keepdims=True) * inv_hw          # (1, Cinp)
            hdn = jnp.maximum(jnp.dot(pooled, sew1, preferred_element_type=f32), 0.0)
            logits = jnp.dot(hdn, sew2, preferred_element_type=f32)
            se = 1.0 / (1.0 + jnp.exp(-logits))                           # (1, Coutp)

            res_b = se * c3[lo:lo + Nrows] + sc[lo:lo + Nrows]            # (Nrows, Coutp)
            if extract:                                        # stride==1 and W%8==0
                for h in range(H):
                    out_ref[b, pl.ds(h * W, W), :] = res_b[h * Wr:h * Wr + W, :]
            else:                                              # full padded grid
                out_ref[b] = res_b

    return kernel


# ------------------------- wrapper -------------------------

def se_preact_bottleneck(x_nchw, P, stride=1, mxu_dtype=jnp.float32):
    """Fused SEPreActBootleneck forward.  x is NCHW (PyTorch layout); returns NCHW."""
    B, Cin, H, W = x_nchw.shape
    planes = P['w1'].shape[0]
    Cout = 4 * planes
    has_sc = 'wsc' in P
    if not has_sc:
        assert stride == 1 and Cin == Cout, "identity shortcut needs stride=1, Cin==Cout"

    f32 = jnp.float32
    cdt = jnp.dtype(mxu_dtype)

    Cinp = _rup(Cin, LANE)
    Pp = _rup(planes, LANE)
    Coutp = _rup(Cout, LANE)
    hidden = P['se_w1'].shape[0]
    Hsep = _rup(hidden, LANE)

    Wr = _rup(W + 1, 8)              # row pitch: >= W+1 (shared L/R halo column), 8-aligned
    Nrows = (H + 1) * Wr             # +1 zero row doubles as top/bottom halo
    M = Wr + 8                       # zbuf margin (8-aligned, >= Wr+1 = largest tap shift)

    # batch several images per grid step for small maps -> decent MXU M dimension
    BT = 1
    for cand in range(min(B, max(1, 512 // Nrows)), 0, -1):
        if B % cand == 0:
            BT = cand
            break
    NR = BT * Nrows

    extract = (stride == 1) and (W % 8 == 0)
    rows_out = H * W if extract else Nrows

    # ---- folded BN + padded weights (host side, tiny) ----
    def fold_bn(g, b, m, v, cpad):
        s = (g / jnp.sqrt(v + EPS)).astype(f32)
        sh = (b - m * s).astype(f32)
        return (_pad_to(s.reshape(1, -1), (1, cpad)),
                _pad_to(sh.reshape(1, -1), (1, cpad)))

    s1, b1 = fold_bn(*P['bn1'], Cinp)
    s2, b2 = fold_bn(*P['bn2'], Pp)
    s3, b3 = fold_bn(*P['bn3'], Pp)

    w1 = _pad_to(P['w1'][:, :, 0, 0].T, (Cinp, Pp)).astype(cdt)
    w2t = _pad_to(jnp.transpose(P['w2'], (2, 3, 1, 0)).reshape(9, planes, planes),
                  (9, Pp, Pp)).astype(cdt)
    w3 = _pad_to(P['w3'][:, :, 0, 0].T, (Pp, Coutp)).astype(cdt)
    sew1 = _pad_to(P['se_w1'].T, (Cinp, Hsep))                 # SE kept in f32
    sew2 = _pad_to(P['se_w2'].T, (Hsep, Coutp))

    # NCHW -> channel-padded, row-pitched, flattened (B, Nrows, Cinp).  The transpose
    # is unavoidable for the NCHW interface; the pad/reshape fuse into that same pass.
    xt = jnp.transpose(x_nchw.astype(f32), (0, 2, 3, 1))
    xp = jnp.pad(xt, ((0, 0), (0, 1), (0, Wr - W), (0, Cinp - Cin))).reshape(B, Nrows, Cinp)

    # interior mask (1 on real pixels, 0 on the halo row / halo columns), per image
    mimg = jnp.zeros((H + 1, Wr), f32).at[:H, :W].set(1.0).reshape(Nrows, 1)
    mask = jnp.tile(mimg, (BT, 1))

    kernel = _make_kernel(H, W, Wr, Nrows, BT, M, Pp, Cinp, has_sc, extract, cdt)

    def const_spec(shape):
        # constant index_map across the grid -> single-buffer to save VMEM
        return pl.BlockSpec(shape, lambda i: (0,) * len(shape),
                            pipeline_mode=pl.Buffered(1))

    in_specs = [
        pl.BlockSpec((BT, Nrows, Cinp), lambda i: (i, 0, 0)),   # x (batch-tiled)
        const_spec((NR, 1)),                                    # interior mask
        const_spec((1, Cinp)), const_spec((1, Cinp)),           # bn1 scale/shift
        const_spec((Cinp, Pp)),                                 # conv1
        const_spec((1, Pp)), const_spec((1, Pp)),               # bn2
        const_spec((9, Pp, Pp)),                                # conv2 taps
        const_spec((1, Pp)), const_spec((1, Pp)),               # bn3
        const_spec((Pp, Coutp)),                                # conv3
        const_spec((Cinp, Hsep)), const_spec((Hsep, Coutp)),    # SE FCs
    ]
    args = [xp, mask, s1, b1, w1, s2, b2, w2t, s3, b3, w3, sew1, sew2]
    if has_sc:
        wsc = _pad_to(P['wsc'][:, :, 0, 0].T, (Cinp, Coutp)).astype(cdt)
        in_specs.append(const_spec((Cinp, Coutp)))
        args.append(wsc)

    # VMEM budget from actual sizes (2x pipelined x/out blocks, 1x constants, scratch,
    # allowance for live f32 intermediates), clamped to the part's physical VMEM.
    def nbytes(shape, dt):
        return math.prod(shape) * jnp.dtype(dt).itemsize

    est = (2 * nbytes((BT, Nrows, Cinp), f32)
           + 2 * nbytes((BT, rows_out, Coutp), f32)
           + sum(nbytes(a.shape, a.dtype) for a in args[1:])
           + nbytes((2 * M + NR, Pp), f32)
           + 8 * NR * max(Cinp, Pp, Coutp) * 4)
    try:
        phys = getattr(pltpu.get_tpu_info(), 'vmem_capacity_bytes', 128 * 1024 * 1024)
    except Exception:
        phys = 64 * 1024 * 1024
    vmem_limit = int(min(phys * 3 // 4, max(32 * 1024 * 1024, 2 * est)))

    out = pl.pallas_call(
        kernel,
        out_shape=jax.ShapeDtypeStruct((B, rows_out, Coutp), f32),
        grid_spec=pltpu.PrefetchScalarGridSpec(
            num_scalar_prefetch=0,
            grid=(B // BT,),
            in_specs=in_specs,
            out_specs=pl.BlockSpec((BT, rows_out, Coutp), lambda i: (i, 0, 0)),
            scratch_shapes=[pltpu.VMEM((2 * M + NR, Pp), f32)],
        ),
        compiler_params=pltpu.CompilerParams(
            dimension_semantics=("parallel",),
            vmem_limit_bytes=vmem_limit,
        ),
    )(*args)

    if extract:                                   # dense, aligned in-kernel output
        out_nhwc = out.reshape(B, H, W, Coutp)[:, :, :, :Cout]
    else:                                         # strided / unaligned: slice in wrapper
        out_nhwc = out.reshape(B, H + 1, Wr, Coutp)[:, :H:stride, :W:stride, :Cout]
    return jnp.transpose(out_nhwc, (0, 3, 1, 2))


# ------------------------- reference (plain JAX, NCHW like PyTorch) -------------------------

def ref_forward(x, P, stride=1):
    def bn(v, g, b, m, var):
        s = g / jnp.sqrt(var + EPS)
        return (v - m[None, :, None, None]) * s[None, :, None, None] \
               + b[None, :, None, None]

    def conv(v, w, s=1, p=0):
        return lax.conv_general_dilated(
            v, w, (s, s), [(p, p), (p, p)],
            dimension_numbers=('NCHW', 'OIHW', 'NCHW'))

    y = jnp.mean(x, axis=(2, 3))
    h = jnp.maximum(y @ P['se_w1'].T, 0.0)
    se = jax.nn.sigmoid(h @ P['se_w2'].T)[:, :, None, None]

    out = jnp.maximum(bn(x, *P['bn1']), 0.0)
    shortcut = conv(out, P['wsc'], stride, 0) if 'wsc' in P else x
    out = conv(out, P['w1'], 1, 0)
    out = conv(jnp.maximum(bn(out, *P['bn2']), 0.0), P['w2'], stride, 1)
    out = conv(jnp.maximum(bn(out, *P['bn3']), 0.0), P['w3'], 1, 0)
    return se * out + shortcut


# ------------------------- deterministic parameter init -------------------------

def init_params(key, in_planes, planes, stride, reduction=16):
    Cout = 4 * planes
    hidden = max(1, Cout // reduction)
    ks = jax.random.split(key, 9)

    def bn_params(k, c):
        k1, k2, k3, k4 = jax.random.split(k, 4)
        g = 1.0 + 0.1 * jax.random.normal(k1, (c,), jnp.float32)
        b = 0.1 * jax.random.normal(k2, (c,), jnp.float32)
        m = 0.1 * jax.random.normal(k3, (c,), jnp.float32)
        v = 0.5 + jax.random.uniform(k4, (c,), jnp.float32)
        return (g, b, m, v)

    P = {
        'bn1': bn_params(ks[0], in_planes),
        'bn2': bn_params(ks[1], planes),
        'bn3': bn_params(ks[2], planes),
        'w1': 0.2 * jax.random.normal(ks[3], (planes, in_planes, 1, 1), jnp.float32),
        'w2': 0.2 * jax.random.normal(ks[4], (planes, planes, 3, 3), jnp.float32),
        'w3': 0.2 * jax.random.normal(ks[5], (Cout, planes, 1, 1), jnp.float32),
        'se_w1': 0.2 * jax.random.normal(ks[6], (hidden, in_planes), jnp.float32),
        'se_w2': 0.2 * jax.random.normal(ks[7], (Cout, hidden), jnp.float32),
    }
    if stride != 1 or in_planes != Cout:
        P['wsc'] = 0.2 * jax.random.normal(ks[8], (Cout, in_planes, 1, 1), jnp.float32)
    return P


if __name__ == "__main__":
    key = jax.random.PRNGKey(0)
    fwd = jax.jit(se_preact_bottleneck, static_argnames=('stride', 'mxu_dtype'))

    configs = [
        # (B, in_planes, planes, H, W, stride)
        (2, 32, 8, 8, 8, 1),      # identity shortcut
        (2, 16, 8, 8, 8, 1),      # conv shortcut (channel change), stride 1
        (2, 16, 8, 8, 8, 2),      # conv shortcut, stride 2
        (2, 64, 16, 16, 16, 2),   # larger block, stride 2
    ]

    for i, (B, cin, planes, H, W, stride) in enumerate(configs):
        kx, kp, key = jax.random.split(key, 3)
        x = jax.random.normal(kx, (B, cin, H, W), jnp.float32)
        P = init_params(kp, cin, planes, stride)
        if i == 1:
            # stress halo-leak safety: big BN bias/mean must not bleed through conv2's
            # halo ring into real outputs (exercises the interior mask)
            g, b, m, v = P['bn1']
            P['bn1'] = (g, b + 2.0, m - 1.0, v)
            g, b, m, v = P['bn2']
            P['bn2'] = (g, b + 2.0, m - 1.0, v)

        out = jax.block_until_ready(fwd(x, P, stride=stride))
        ref = ref_forward(x, P, stride=stride)
        assert out.shape == ref.shape, (i, out.shape, ref.shape)
        err = float(jnp.max(jnp.abs(out - ref)))
        if not err < 1e-3:
            raise SystemExit(f"config {i}: max abs error {err}")

    # bf16-MXU-operand path (f32 accumulation): check it compiles, runs and is sane.
    B, cin, planes, H, W, stride = configs[-1]
    kx, kp, key = jax.random.split(key, 3)
    x = jax.random.normal(kx, (B, cin, H, W), jnp.float32)
    P = init_params(kp, cin, planes, stride)
    out_bf16 = jax.block_until_ready(fwd(x, P, stride=stride, mxu_dtype=jnp.bfloat16))
    ref = ref_forward(x, P, stride=stride)
    assert out_bf16.shape == ref.shape
    assert bool(jnp.all(jnp.isfinite(out_bf16)))
    assert float(jnp.max(jnp.abs(out_bf16 - ref))) < 1.0

    print("KERNEL_OK")
</pallas_src>

<mosaic_0001>
module attributes {stable_mosaic.version = 11 : i64} {
  func.func @kernel(%arg0: i32, %arg1: memref<2x144x128xf32, #tpu.memory_space<vmem>>, %arg2: memref<288x1xf32, #tpu.memory_space<vmem>>, %arg3: memref<1x128xf32, #tpu.memory_space<vmem>>, %arg4: memref<1x128xf32, #tpu.memory_space<vmem>>, %arg5: memref<128x128xf32, #tpu.memory_space<vmem>>, %arg6: memref<1x128xf32, #tpu.memory_space<vmem>>, %arg7: memref<1x128xf32, #tpu.memory_space<vmem>>, %arg8: memref<9x128x128xf32, #tpu.memory_space<vmem>>, %arg9: memref<1x128xf32, #tpu.memory_space<vmem>>, %arg10: memref<1x128xf32, #tpu.memory_space<vmem>>, %arg11: memref<128x128xf32, #tpu.memory_space<vmem>>, %arg12: memref<128x128xf32, #tpu.memory_space<vmem>>, %arg13: memref<128x128xf32, #tpu.memory_space<vmem>>, %arg14: memref<2x64x128xf32, #tpu.memory_space<vmem>>, %arg15: memref<336x128xf32, #tpu.memory_space<vmem>>) attributes {dimension_semantics = [#tpu.dimension_semantics<parallel>], iteration_bounds = array<i64: 1>, scalar_prefetch = 0 : i64, scratch_operands = 1 : i64, tpu.core_type = #tpu.core_type<tc>, window_params = [{transform_indices = @transform_0, window_bounds = array<i64: 2, 144, 128>}, {pipeline_mode = #tpu.pipeline_mode<synchronous>, transform_indices = @transform_1, window_bounds = array<i64: 288, 1>}, {pipeline_mode = #tpu.pipeline_mode<synchronous>, transform_indices = @transform_2, window_bounds = array<i64: 1, 128>}, {pipeline_mode = #tpu.pipeline_mode<synchronous>, transform_indices = @transform_3, window_bounds = array<i64: 1, 128>}, {pipeline_mode = #tpu.pipeline_mode<synchronous>, transform_indices = @transform_4, window_bounds = array<i64: 128, 128>}, {pipeline_mode = #tpu.pipeline_mode<synchronous>, transform_indices = @transform_5, window_bounds = array<i64: 1, 128>}, {pipeline_mode = #tpu.pipeline_mode<synchronous>, transform_indices = @transform_6, window_bounds = array<i64: 1, 128>}, {pipeline_mode = #tpu.pipeline_mode<synchronous>, transform_indices = @transform_7, window_bounds = array<i64: 9, 128, 128>}, {pipeline_mode = #tpu.pipeline_mode<synchronous>, transform_indices = @transform_8, window_bounds = array<i64: 1, 128>}, {pipeline_mode = #tpu.pipeline_mode<synchronous>, transform_indices = @transform_9, window_bounds = array<i64: 1, 128>}, {pipeline_mode = #tpu.pipeline_mode<synchronous>, transform_indices = @transform_10, window_bounds = array<i64: 128, 128>}, {pipeline_mode = #tpu.pipeline_mode<synchronous>, transform_indices = @transform_11, window_bounds = array<i64: 128, 128>}, {pipeline_mode = #tpu.pipeline_mode<synchronous>, transform_indices = @transform_12, window_bounds = array<i64: 128, 128>}, {transform_indices = @transform_13, window_bounds = array<i64: 2, 64, 128>}]} {
    %c0 = arith.constant 0 : index
    %c0_0 = arith.constant 0 : index
    %c0_1 = arith.constant 0 : index
    %0 = vector.load %arg1[%c0, %c0_0, %c0_1] : memref<2x144x128xf32, #tpu.memory_space<vmem>>, vector<2x144x128xf32>
    %1 = vector.shape_cast %0 : vector<2x144x128xf32> to vector<288x128xf32>
    %c0_2 = arith.constant 0 : index
    %c0_3 = arith.constant 0 : index
    %2 = vector.load %arg3[%c0_2, %c0_3] : memref<1x128xf32, #tpu.memory_space<vmem>>, vector<1x128xf32>
    %3 = vector.broadcast %2 : vector<1x128xf32> to vector<288x128xf32>
    %4 = arith.mulf %1, %3 : vector<288x128xf32>
    %c0_4 = arith.constant 0 : index
    %c0_5 = arith.constant 0 : index
    %5 = vector.load %arg4[%c0_4, %c0_5] : memref<1x128xf32, #tpu.memory_space<vmem>>, vector<1x128xf32>
    %6 = vector.broadcast %5 : vector<1x128xf32> to vector<288x128xf32>
    %7 = arith.addf %4, %6 : vector<288x128xf32>
    %cst = arith.constant 0.000000e+00 : f32
    %8 = vector.broadcast %cst : f32 to vector<288x128xf32>
    %9 = arith.maximumf %7, %8 : vector<288x128xf32>
    %c0_6 = arith.constant 0 : index
    %c0_7 = arith.constant 0 : index
    %10 = vector.load %arg5[%c0_6, %c0_7] : memref<128x128xf32, #tpu.memory_space<vmem>>, vector<128x128xf32>
    %cst_8 = arith.constant dense<0.000000e+00> : vector<288x128xf32>
    %11 = tpu.matmul %9, %10, %cst_8 {dimension_numbers = #tpu.dot_dimension_numbers<[1], [0], [0], [1], [0, 0, 1, 1], [], []>} : vector<288x128xf32>, vector<128x128xf32>, vector<288x128xf32> -> vector<288x128xf32>
    %c0_9 = arith.constant 0 : index
    %c0_10 = arith.constant 0 : index
    %12 = vector.load %arg6[%c0_9, %c0_10] : memref<1x128xf32, #tpu.memory_space<vmem>>, vector<1x128xf32>
    %13 = vector.broadcast %12 : vector<1x128xf32> to vector<288x128xf32>
    %14 = arith.mulf %11, %13 : vector<288x128xf32>
    %c0_11 = arith.constant 0 : index
    %c0_12 = arith.constant 0 : index
    %15 = vector.load %arg7[%c0_11, %c0_12] : memref<1x128xf32, #tpu.memory_space<vmem>>, vector<1x128xf32>
    %16 = vector.broadcast %15 : vector<1x128xf32> to vector<288x128xf32>
    %17 = arith.addf %14, %16 : vector<288x128xf32>
    %cst_13 = arith.constant 0.000000e+00 : f32
    %18 = vector.broadcast %cst_13 : f32 to vector<288x128xf32>
    %19 = arith.maximumf %17, %18 : vector<288x128xf32>
    %c0_14 = arith.constant 0 : index
    %c0_15 = arith.constant 0 : index
    %20 = vector.load %arg2[%c0_14, %c0_15] : memref<288x1xf32, #tpu.memory_space<vmem>>, vector<288x1xf32>
    %21 = vector.broadcast %20 : vector<288x1xf32> to vector<288x128xf32>
    %22 = arith.mulf %19, %21 : vector<288x128xf32>
    %cst_16 = arith.constant 0.000000e+00 : f32
    %23 = vector.broadcast %cst_16 : f32 to vector<24x128xf32>
    %c0_17 = arith.constant 0 : index
    %c0_18 = arith.constant 0 : index
    %24 = vector.load %arg15[%c0_17, %c0_18] : memref<336x128xf32, #tpu.memory_space<vmem>>, vector<24x128xf32>
    tpu.vector_store %arg15[%c0_17, %c0_18], %23 {strides = array<i32>} : memref<336x128xf32, #tpu.memory_space<vmem>>, vector<24x128xf32>,
    %c312 = arith.constant 312 : index
    %c0_19 = arith.constant 0 : index
    %25 = vector.load %arg15[%c312, %c0_19] : memref<336x128xf32, #tpu.memory_space<vmem>>, vector<24x128xf32>
    tpu.vector_store %arg15[%c312, %c0_19], %23 {strides = array<i32>} : memref<336x128xf32, #tpu.memory_space<vmem>>, vector<24x128xf32>,
    %c24 = arith.constant 24 : index
    %c0_20 = arith.constant 0 : index
    %26 = vector.load %arg15[%c24, %c0_20] : memref<336x128xf32, #tpu.memory_space<vmem>>, vector<288x128xf32>
    tpu.vector_store %arg15[%c24, %c0_20], %22 {strides = array<i32>} : memref<336x128xf32, #tpu.memory_space<vmem>>, vector<288x128xf32>,
    %cst_21 = arith.constant 0.000000e+00 : f32
    %27 = vector.broadcast %cst_21 : f32 to vector<288x128xf32>
    %c7 = arith.constant 7 : index
    %c0_22 = arith.constant 0 : index
    %28 = vector.load %arg15[%c7, %c0_22] : memref<336x128xf32, #tpu.memory_space<vmem>>, vector<288x128xf32>
    %c0_23 = arith.constant 0 : index
    %c0_24 = arith.constant 0 : index
    %c0_25 = arith.constant 0 : index
    %29 = vector.load %arg8[%c0_23, %c0_24, %c0_25] : memref<9x128x128xf32, #tpu.memory_space<vmem>>, vector<1x128x128xf32>
    %30 = vector.shape_cast %29 : vector<1x128x128xf32> to vector<128x128xf32>
    %cst_26 = arith.constant dense<0.000000e+00> : vector<288x128xf32>
    %31 = tpu.matmul %28, %30, %cst_26 {dimension_numbers = #tpu.dot_dimension_numbers<[1], [0], [0], [1], [0, 0, 1, 1], [], []>} : vector<288x128xf32>, vector<128x128xf32>, vector<288x128xf32> -> vector<288x128xf32>
    %32 = arith.addf %27, %31 : vector<288x128xf32>
    %c8 = arith.constant 8 : index
    %c0_27 = arith.constant 0 : index
    %33 = vector.load %arg15[%c8, %c0_27] : memref<336x128xf32, #tpu.memory_space<vmem>>, vector<288x128xf32>
    %c1 = arith.constant 1 : index
    %c0_28 = arith.constant 0 : index
    %c0_29 = arith.constant 0 : index
    %34 = vector.load %arg8[%c1, %c0_28, %c0_29] : memref<9x128x128xf32, #tpu.memory_space<vmem>>, vector<1x128x128xf32>
    %35 = vector.shape_cast %34 : vector<1x128x128xf32> to vector<128x128xf32>
    %cst_30 = arith.constant dense<0.000000e+00> : vector<288x128xf32>
    %36 = tpu.matmul %33, %35, %cst_30 {dimension_numbers = #tpu.dot_dimension_numbers<[1], [0], [0], [1], [0, 0, 1, 1], [], []>} : vector<288x128xf32>, vector<128x128xf32>, vector<288x128xf32> -> vector<288x128xf32>
    %37 = arith.addf %32, %36 : vector<288x128xf32>
    %c9 = arith.constant 9 : index
    %c0_31 = arith.constant 0 : index
    %38 = vector.load %arg15[%c9, %c0_31] : memref<336x128xf32, #tpu.memory_space<vmem>>, vector<288x128xf32>
    %c2 = arith.constant 2 : index
    %c0_32 = arith.constant 0 : index
    %c0_33 = arith.constant 0 : index
    %39 = vector.load %arg8[%c2, %c0_32, %c0_33] : memref<9x128x128xf32, #tpu.memory_space<vmem>>, vector<1x128x128xf32>
    %40 = vector.shape_cast %39 : vector<1x128x128xf32> to vector<128x128xf32>
    %cst_34 = arith.constant dense<0.000000e+00> : vector<288x128xf32>
    %41 = tpu.matmul %38, %40, %cst_34 {dimension_numbers = #tpu.dot_dimension_numbers<[1], [0], [0], [1], [0, 0, 1, 1], [], []>} : vector<288x128xf32>, vector<128x128xf32>, vector<288x128xf32> -> vector<288x128xf32>
    %42 = arith.addf %37, %41 : vector<288x128xf32>
    %c23 = arith.constant 23 : index
    %c0_35 = arith.constant 0 : index
    %43 = vector.load %arg15[%c23, %c0_35] : memref<336x128xf32, #tpu.memory_space<vmem>>, vector<288x128xf32>
    %c3 = arith.constant 3 : index
    %c0_36 = arith.constant 0 : index
    %c0_37 = arith.constant 0 : index
    %44 = vector.load %arg8[%c3, %c0_36, %c0_37] : memref<9x128x128xf32, #tpu.memory_space<vmem>>, vector<1x128x128xf32>
    %45 = vector.shape_cast %44 : vector<1x128x128xf32> to vector<128x128xf32>
    %cst_38 = arith.constant dense<0.000000e+00> : vector<288x128xf32>
    %46 = tpu.matmul %43, %45, %cst_38 {dimension_numbers = #tpu.dot_dimension_numbers<[1], [0], [0], [1], [0, 0, 1, 1], [], []>} : vector<288x128xf32>, vector<128x128xf32>, vector<288x128xf32> -> vector<288x128xf32>
    %47 = arith.addf %42, %46 : vector<288x128xf32>
    %c24_39 = arith.constant 24 : index
    %c0_40 = arith.constant 0 : index
    %48 = vector.load %arg15[%c24_39, %c0_40] : memref<336x128xf32, #tpu.memory_space<vmem>>, vector<288x128xf32>
    %c4 = arith.constant 4 : index
    %c0_41 = arith.constant 0 : index
    %c0_42 = arith.constant 0 : index
    %49 = vector.load %arg8[%c4, %c0_41, %c0_42] : memref<9x128x128xf32, #tpu.memory_space<vmem>>, vector<1x128x128xf32>
    %50 = vector.shape_cast %49 : vector<1x128x128xf32> to vector<128x128xf32>
    %cst_43 = arith.constant dense<0.000000e+00> : vector<288x128xf32>
    %51 = tpu.matmul %48, %50, %cst_43 {dimension_numbers = #tpu.dot_dimension_numbers<[1], [0], [0], [1], [0, 0, 1, 1], [], []>} : vector<288x128xf32>, vector<128x128xf32>, vector<288x128xf32> -> vector<288x128xf32>
    %52 = arith.addf %47, %51 : vector<288x128xf32>
    %c25 = arith.constant 25 : index
    %c0_44 = arith.constant 0 : index
    %53 = vector.load %arg15[%c25, %c0_44] : memref<336x128xf32, #tpu.memory_space<vmem>>, vector<288x128xf32>
    %c5 = arith.constant 5 : index
    %c0_45 = arith.constant 0 : index
    %c0_46 = arith.constant 0 : index
    %54 = vector.load %arg8[%c5, %c0_45, %c0_46] : memref<9x128x128xf32, #tpu.memory_space<vmem>>, vector<1x128x128xf32>
    %55 = vector.shape_cast %54 : vector<1x128x128xf32> to vector<128x128xf32>
    %cst_47 = arith.constant dense<0.000000e+00> : vector<288x128xf32>
    %56 = tpu.matmul %53, %55, %cst_47 {dimension_numbers = #tpu.dot_dimension_numbers<[1], [0], [0], [1], [0, 0, 1, 1], [], []>} : vector<288x128xf32>, vector<128x128xf32>, vector<288x128xf32> -> vector<288x128xf32>
    %57 = arith.addf %52, %56 : vector<288x128xf32>
    %c39 = arith.constant 39 : index
    %c0_48 = arith.constant 0 : index
    %58 = vector.load %arg15[%c39, %c0_48] : memref<336x128xf32, #tpu.memory_space<vmem>>, vector<288x128xf32>
    %c6 = arith.constant 6 : index
    %c0_49 = arith.constant 0 : index
    %c0_50 = arith.constant 0 : index
    %59 = vector.load %arg8[%c6, %c0_49, %c0_50] : memref<9x128x128xf32, #tpu.memory_space<vmem>>, vector<1x128x128xf32>
    %60 = vector.shape_cast %59 : vector<1x128x128xf32> to vector<128x128xf32>
    %cst_51 = arith.constant dense<0.000000e+00> : vector<288x128xf32>
    %61 = tpu.matmul %58, %60, %cst_51 {dimension_numbers = #tpu.dot_dimension_numbers<[1], [0], [0], [1], [0, 0, 1, 1], [], []>} : vector<288x128xf32>, vector<128x128xf32>, vector<288x128xf32> -> vector<288x128xf32>
    %62 = arith.addf %57, %61 : vector<288x128xf32>
    %c40 = arith.constant 40 : index
    %c0_52 = arith.constant 0 : index
    %63 = vector.load %arg15[%c40, %c0_52] : memref<336x128xf32, #tpu.memory_space<vmem>>, vector<288x128xf32>
    %c7_53 = arith.constant 7 : index
    %c0_54 = arith.constant 0 : index
    %c0_55 = arith.constant 0 : index
    %64 = vector.load %arg8[%c7_53, %c0_54, %c0_55] : memref<9x128x128xf32, #tpu.memory_space<vmem>>, vector<1x128x128xf32>
    %65 = vector.shape_cast %64 : vector<1x128x128xf32> to vector<128x128xf32>
    %cst_56 = arith.constant dense<0.000000e+00> : vector<288x128xf32>
    %66 = tpu.matmul %63, %65, %cst_56 {dimension_numbers = #tpu.dot_dimension_numbers<[1], [0], [0], [1], [0, 0, 1, 1], [], []>} : vector<288x128xf32>, vector<128x128xf32>, vector<288x128xf32> -> vector<288x128xf32>
    %67 = arith.addf %62, %66 : vector<288x128xf32>
    %c41 = arith.constant 41 : index
    %c0_57 = arith.constant 0 : index
    %68 = vector.load %arg15[%c41, %c0_57] : memref<336x128xf32, #tpu.memory_space<vmem>>, vector<288x128xf32>
    %c8_58 = arith.constant 8 : index
    %c0_59 = arith.constant 0 : index
    %c0_60 = arith.constant 0 : index
    %69 = vector.load %arg8[%c8_58, %c0_59, %c0_60] : memref<9x128x128xf32, #tpu.memory_space<vmem>>, vector<1x128x128xf32>
    %70 = vector.shape_cast %69 : vector<1x128x128xf32> to vector<128x128xf32>
    %cst_61 = arith.constant dense<0.000000e+00> : vector<288x128xf32>
    %71 = tpu.matmul %68, %70, %cst_61 {dimension_numbers = #tpu.dot_dimension_numbers<[1], [0], [0], [1], [0, 0, 1, 1], [], []>} : vector<288x128xf32>, vector<128x128xf32>, vector<288x128xf32> -> vector<288x128xf32>
    %72 = arith.addf %67, %71 : vector<288x128xf32>
    %c0_62 = arith.constant 0 : index
    %c0_63 = arith.constant 0 : index
    %73 = vector.load %arg9[%c0_62, %c0_63] : memref<1x128xf32, #tpu.memory_space<vmem>>, vector<1x128xf32>
    %74 = vector.broadcast %73 : vector<1x128xf32> to vector<288x128xf32>
    %75 = arith.mulf %72, %74 : vector<288x128xf32>
    %c0_64 = arith.constant 0 : index
    %c0_65 = arith.constant 0 : index
    %76 = vector.load %arg10[%c0_64, %c0_65] : memref<1x128xf32, #tpu.memory_space<vmem>>, vector<1x128xf32>
    %77 = vector.broadcast %76 : vector<1x128xf32> to vector<288x128xf32>
    %78 = arith.addf %75, %77 : vector<288x128xf32>
    %cst_66 = arith.constant 0.000000e+00 : f32
    %79 = vector.broadcast %cst_66 : f32 to vector<288x128xf32>
    %80 = arith.maximumf %78, %79 : vector<288x128xf32>
    %c0_67 = arith.constant 0 : index
    %c0_68 = arith.constant 0 : index
    %81 = vector.load %arg11[%c0_67, %c0_68] : memref<128x128xf32, #tpu.memory_space<vmem>>, vector<128x128xf32>
    %cst_69 = arith.constant dense<0.000000e+00> : vector<288x128xf32>
    %82 = tpu.matmul %80, %81, %cst_69 {dimension_numbers = #tpu.dot_dimension_numbers<[1], [0], [0], [1], [0, 0, 1, 1], [], []>} : vector<288x128xf32>, vector<128x128xf32>, vector<288x128xf32> -> vector<288x128xf32>
    %c0_70 = arith.constant 0 : index
    %c0_71 = arith.constant 0 : index
    %83 = vector.load %arg12[%c0_70, %c0_71] : memref<128x128xf32, #tpu.memory_space<vmem>>, vector<128x128xf32>
    %c0_72 = arith.constant 0 : index
    %c0_73 = arith.constant 0 : index
    %84 = vector.load %arg13[%c0_72, %c0_73] : memref<128x128xf32, #tpu.memory_space<vmem>>, vector<128x128xf32>
    %85 = vector.extract_strided_slice %1 {offsets = [0, 0], sizes = [144, 128], strides = [1, 1]} : vector<288x128xf32> to vector<144x128xf32>
    %cst_74 = arith.constant dense<0.000000e+00> : vector<128xf32>
    %86 = vector.multi_reduction <add>, %85, %cst_74 [0] : vector<144x128xf32> to vector<128xf32>
    %87 = vector.shape_cast %86 : vector<128xf32> to vector<1x128xf32>
    %cst_75 = arith.constant 1.562500e-02 : f32
    %88 = vector.broadcast %cst_75 : f32 to vector<1x128xf32>
    %89 = arith.mulf %87, %88 : vector<1x128xf32>
    %cst_76 = arith.constant dense<0.000000e+00> : vector<1x128xf32>
    %90 = tpu.matmul %89, %83, %cst_76 {dimension_numbers = #tpu.dot_dimension_numbers<[1], [0], [0], [1], [0, 0, 1, 1], [], []>} : vector<1x128xf32>, vector<128x128xf32>, vector<1x128xf32> -> vector<1x128xf32>
    %cst_77 = arith.constant 0.000000e+00 : f32
    %91 = vector.broadcast %cst_77 : f32 to vector<1x128xf32>
    %92 = arith.maximumf %90, %91 : vector<1x128xf32>
    %cst_78 = arith.constant dense<0.000000e+00> : vector<1x128xf32>
    %93 = tpu.matmul %92, %84, %cst_78 {dimension_numbers = #tpu.dot_dimension_numbers<[1], [0], [0], [1], [0, 0, 1, 1], [], []>} : vector<1x128xf32>, vector<128x128xf32>, vector<1x128xf32> -> vector<1x128xf32>
    %cst_79 = arith.constant 0.000000e+00 : f32
    %94 = vector.broadcast %cst_79 : f32 to vector<1x128xf32>
    %95 = arith.subf %94, %93 : vector<1x128xf32>
    %96 = math.exp %95 : vector<1x128xf32>
    %cst_80 = arith.constant 1.000000e+00 : f32
    %97 = vector.broadcast %cst_80 : f32 to vector<1x128xf32>
    %98 = arith.addf %97, %96 : vector<1x128xf32>
    %cst_81 = arith.constant 1.000000e+00 : f32
    %99 = vector.broadcast %cst_81 : f32 to vector<1x128xf32>
    %100 = arith.divf %99, %98 : vector<1x128xf32>
    %101 = vector.extract_strided_slice %82 {offsets = [0, 0], sizes = [144, 128], strides = [1, 1]} : vector<288x128xf32> to vector<144x128xf32>
    %102 = vector.broadcast %100 : vector<1x128xf32> to vector<144x128xf32>
    %103 = arith.mulf %102, %101 : vector<144x128xf32>
    %104 = vector.extract_strided_slice %1 {offsets = [0, 0], sizes = [144, 128], strides = [1, 1]} : vector<288x128xf32> to vector<144x128xf32>
    %105 = arith.addf %103, %104 : vector<144x128xf32>
    %106 = vector.extract_strided_slice %105 {offsets = [0, 0], sizes = [8, 128], strides = [1, 1]} : vector<144x128xf32> to vector<8x128xf32>
    %c0_82 = arith.constant 0 : index
    %c0_83 = arith.constant 0 : index
    %c0_84 = arith.constant 0 : index
    %107 = vector.load %arg14[%c0_82, %c0_83, %c0_84] : memref<2x64x128xf32, #tpu.memory_space<vmem>>, vector<1x8x128xf32>
    %108 = vector.shape_cast %107 : vector<1x8x128xf32> to vector<8x128xf32>
    %109 = vector.shape_cast %106 : vector<8x128xf32> to vector<1x8x128xf32>
    tpu.vector_store %arg14[%c0_82, %c0_83, %c0_84], %109 {strides = array<i32>} : memref<2x64x128xf32, #tpu.memory_space<vmem>>, vector<1x8x128xf32>,
    %110 = vector.extract_strided_slice %105 {offsets = [16, 0], sizes = [8, 128], strides = [1, 1]} : vector<144x128xf32> to vector<8x128xf32>
    %c0_85 = arith.constant 0 : index
    %c8_86 = arith.constant 8 : index
    %c0_87 = arith.constant 0 : index
    %111 = vector.load %arg14[%c0_85, %c8_86, %c0_87] : memref<2x64x128xf32, #tpu.memory_space<vmem>>, vector<1x8x128xf32>
    %112 = vector.shape_cast %111 : vector<1x8x128xf32> to vector<8x128xf32>
    %113 = vector.shape_cast %110 : vector<8x128xf32> to vector<1x8x128xf32>
    tpu.vector_store %arg14[%c0_85, %c8_86, %c0_87], %113 {strides = array<i32>} : memref<2x64x128xf32, #tpu.memory_space<vmem>>, vector<1x8x128xf32>,
    %114 = vector.extract_strided_slice %105 {offsets = [32, 0], sizes = [8, 128], strides = [1, 1]} : vector<144x128xf32> to vector<8x128xf32>
    %c0_88 = arith.constant 0 : index
    %c16 = arith.constant 16 : index
    %c0_89 = arith.constant 0 : index
    %115 = vector.load %arg14[%c0_88, %c16, %c0_89] : memref<2x64x128xf32, #tpu.memory_space<vmem>>, vector<1x8x128xf32>
    %116 = vector.shape_cast %115 : vector<1x8x128xf32> to vector<8x128xf32>
    %117 = vector.shape_cast %114 : vector<8x128xf32> to vector<1x8x128xf32>
    tpu.vector_store %arg14[%c0_88, %c16, %c0_89], %117 {strides = array<i32>} : memref<2x64x128xf32, #tpu.memory_space<vmem>>, vector<1x8x128xf32>,
    %118 = vector.extract_strided_slice %105 {offsets = [48, 0], sizes = [8, 128], strides = [1, 1]} : vector<144x128xf32> to vector<8x128xf32>
    %c0_90 = arith.constant 0 : index
    %c24_91 = arith.constant 24 : index
    %c0_92 = arith.constant 0 : index
    %119 = vector.load %arg14[%c0_90, %c24_91, %c0_92] : memref<2x64x128xf32, #tpu.memory_space<vmem>>, vector<1x8x128xf32>
    %120 = vector.shape_cast %119 : vector<1x8x128xf32> to vector<8x128xf32>
    %121 = vector.shape_cast %118 : vector<8x128xf32> to vector<1x8x128xf32>
    tpu.vector_store %arg14[%c0_90, %c24_91, %c0_92], %121 {strides = array<i32>} : memref<2x64x128xf32, #tpu.memory_space<vmem>>, vector<1x8x128xf32>,
    %122 = vector.extract_strided_slice %105 {offsets = [64, 0], sizes = [8, 128], strides = [1, 1]} : vector<144x128xf32> to vector<8x128xf32>
    %c0_93 = arith.constant 0 : index
    %c32 = arith.constant 32 : index
    %c0_94 = arith.constant 0 : index
    %123 = vector.load %arg14[%c0_93, %c32, %c0_94] : memref<2x64x128xf32, #tpu.memory_space<vmem>>, vector<1x8x128xf32>
    %124 = vector.shape_cast %123 : vector<1x8x128xf32> to vector<8x128xf32>
    %125 = vector.shape_cast %122 : vector<8x128xf32> to vector<1x8x128xf32>
    tpu.vector_store %arg14[%c0_93, %c32, %c0_94], %125 {strides = array<i32>} : memref<2x64x128xf32, #tpu.memory_space<vmem>>, vector<1x8x128xf32>,
    %126 = vector.extract_strided_slice %105 {offsets = [80, 0], sizes = [8, 128], strides = [1, 1]} : vector<144x128xf32> to vector<8x128xf32>
    %c0_95 = arith.constant 0 : index
    %c40_96 = arith.constant 40 : index
    %c0_97 = arith.constant 0 : index
    %127 = vector.load %arg14[%c0_95, %c40_96, %c0_97] : memref<2x64x128xf32, #tpu.memory_space<vmem>>, vector<1x8x128xf32>
    %128 = vector.shape_cast %127 : vector<1x8x128xf32> to vector<8x128xf32>
    %129 = vector.shape_cast %126 : vector<8x128xf32> to vector<1x8x128xf32>
    tpu.vector_store %arg14[%c0_95, %c40_96, %c0_97], %129 {strides = array<i32>} : memref<2x64x128xf32, #tpu.memory_space<vmem>>, vector<1x8x128xf32>,
    %130 = vector.extract_strided_slice %105 {offsets = [96, 0], sizes = [8, 128], strides = [1, 1]} : vector<144x128xf32> to vector<8x128xf32>
    %c0_98 = arith.constant 0 : index
    %c48 = arith.constant 48 : index
    %c0_99 = arith.constant 0 : index
    %131 = vector.load %arg14[%c0_98, %c48, %c0_99] : memref<2x64x128xf32, #tpu.memory_space<vmem>>, vector<1x8x128xf32>
    %132 = vector.shape_cast %131 : vector<1x8x128xf32> to vector<8x128xf32>
    %133 = vector.shape_cast %130 : vector<8x128xf32> to vector<1x8x128xf32>
    tpu.vector_store %arg14[%c0_98, %c48, %c0_99], %133 {strides = array<i32>} : memref<2x64x128xf32, #tpu.memory_space<vmem>>, vector<1x8x128xf32>,
    %134 = vector.extract_strided_slice %105 {offsets = [112, 0], sizes = [8, 128], strides = [1, 1]} : vector<144x128xf32> to vector<8x128xf32>
    %c0_100 = arith.constant 0 : index
    %c56 = arith.constant 56 : index
    %c0_101 = arith.constant 0 : index
    %135 = vector.load %arg14[%c0_100, %c56, %c0_101] : memref<2x64x128xf32, #tpu.memory_space<vmem>>, vector<1x8x128xf32>
    %136 = vector.shape_cast %135 : vector<1x8x128xf32> to vector<8x128xf32>
    %137 = vector.shape_cast %134 : vector<8x128xf32> to vector<1x8x128xf32>
    tpu.vector_store %arg14[%c0_100, %c56, %c0_101], %137 {strides = array<i32>} : memref<2x64x128xf32, #tpu.memory_space<vmem>>, vector<1x8x128xf32>,
    %138 = vector.extract_strided_slice %1 {offsets = [144, 0], sizes = [144, 128], strides = [1, 1]} : vector<288x128xf32> to vector<144x128xf32>
    %cst_102 = arith.constant dense<0.000000e+00> : vector<128xf32>
    %139 = vector.multi_reduction <add>, %138, %cst_102 [0] : vector<144x128xf32> to vector<128xf32>
    %140 = vector.shape_cast %139 : vector<128xf32> to vector<1x128xf32>
    %cst_103 = arith.constant 1.562500e-02 : f32
    %141 = vector.broadcast %cst_103 : f32 to vector<1x128xf32>
    %142 = arith.mulf %140, %141 : vector<1x128xf32>
    %cst_104 = arith.constant dense<0.000000e+00> : vector<1x128xf32>
    %143 = tpu.matmul %142, %83, %cst_104 {dimension_numbers = #tpu.dot_dimension_numbers<[1], [0], [0], [1], [0, 0, 1, 1], [], []>} : vector<1x128xf32>, vector<128x128xf32>, vector<1x128xf32> -> vector<1x128xf32>
    %cst_105 = arith.constant 0.000000e+00 : f32
    %144 = vector.broadcast %cst_105 : f32 to vector<1x128xf32>
    %145 = arith.maximumf %143, %144 : vector<1x128xf32>
    %cst_106 = arith.constant dense<0.000000e+00> : vector<1x128xf32>
    %146 = tpu.matmul %145, %84, %cst_106 {dimension_numbers = #tpu.dot_dimension_numbers<[1], [0], [0], [1], [0, 0, 1, 1], [], []>} : vector<1x128xf32>, vector<128x128xf32>, vector<1x128xf32> -> vector<1x128xf32>
    %cst_107 = arith.constant 0.000000e+00 : f32
    %147 = vector.broadcast %cst_107 : f32 to vector<1x128xf32>
    %148 = arith.subf %147, %146 : vector<1x128xf32>
    %149 = math.exp %148 : vector<1x128xf32>
    %cst_108 = arith.constant 1.000000e+00 : f32
    %150 = vector.broadcast %cst_108 : f32 to vector<1x128xf32>
    %151 = arith.addf %150, %149 : vector<1x128xf32>
    %cst_109 = arith.constant 1.000000e+00 : f32
    %152 = vector.broadcast %cst_109 : f32 to vector<1x128xf32>
    %153 = arith.divf %152, %151 : vector<1x128xf32>
    %154 = vector.extract_strided_slice %82 {offsets = [144, 0], sizes = [144, 128], strides = [1, 1]} : vector<288x128xf32> to vector<144x128xf32>
    %155 = vector.broadcast %153 : vector<1x128xf32> to vector<144x128xf32>
    %156 = arith.mulf %155, %154 : vector<144x128xf32>
    %157 = vector.extract_strided_slice %1 {offsets = [144, 0], sizes = [144, 128], strides = [1, 1]} : vector<288x128xf32> to vector<144x128xf32>
    %158 = arith.addf %156, %157 : vector<144x128xf32>
    %159 = vector.extract_strided_slice %158 {offsets = [0, 0], sizes = [8, 128], strides = [1, 1]} : vector<144x128xf32> to vector<8x128xf32>
    %c1_110 = arith.constant 1 : index
    %c0_111 = arith.constant 0 : index
    %c0_112 = arith.constant 0 : index
    %160 = vector.load %arg14[%c1_110, %c0_111, %c0_112] : memref<2x64x128xf32, #tpu.memory_space<vmem>>, vector<1x8x128xf32>
    %161 = vector.shape_cast %160 : vector<1x8x128xf32> to vector<8x128xf32>
    %162 = vector.shape_cast %159 : vector<8x128xf32> to vector<1x8x128xf32>
    tpu.vector_store %arg14[%c1_110, %c0_111, %c0_112], %162 {strides = array<i32>} : memref<2x64x128xf32, #tpu.memory_space<vmem>>, vector<1x8x128xf32>,
    %163 = vector.extract_strided_slice %158 {offsets = [16, 0], sizes = [8, 128], strides = [1, 1]} : vector<144x128xf32> to vector<8x128xf32>
    %c1_113 = arith.constant 1 : index
    %c8_114 = arith.constant 8 : index
    %c0_115 = arith.constant 0 : index
    %164 = vector.load %arg14[%c1_113, %c8_114, %c0_115] : memref<2x64x128xf32, #tpu.memory_space<vmem>>, vector<1x8x128xf32>
    %165 = vector.shape_cast %164 : vector<1x8x128xf32> to vector<8x128xf32>
    %166 = vector.shape_cast %163 : vector<8x128xf32> to vector<1x8x128xf32>
    tpu.vector_store %arg14[%c1_113, %c8_114, %c0_115], %166 {strides = array<i32>} : memref<2x64x128xf32, #tpu.memory_space<vmem>>, vector<1x8x128xf32>,
    %167 = vector.extract_strided_slice %158 {offsets = [32, 0], sizes = [8, 128], strides = [1, 1]} : vector<144x128xf32> to vector<8x128xf32>
    %c1_116 = arith.constant 1 : index
    %c16_117 = arith.constant 16 : index
    %c0_118 = arith.constant 0 : index
    %168 = vector.load %arg14[%c1_116, %c16_117, %c0_118] : memref<2x64x128xf32, #tpu.memory_space<vmem>>, vector<1x8x128xf32>
    %169 = vector.shape_cast %168 : vector<1x8x128xf32> to vector<8x128xf32>
    %170 = vector.shape_cast %167 : vector<8x128xf32> to vector<1x8x128xf32>
    tpu.vector_store %arg14[%c1_116, %c16_117, %c0_118], %170 {strides = array<i32>} : memref<2x64x128xf32, #tpu.memory_space<vmem>>, vector<1x8x128xf32>,
    %171 = vector.extract_strided_slice %158 {offsets = [48, 0], sizes = [8, 128], strides = [1, 1]} : vector<144x128xf32> to vector<8x128xf32>
    %c1_119 = arith.constant 1 : index
    %c24_120 = arith.constant 24 : index
    %c0_121 = arith.constant 0 : index
    %172 = vector.load %arg14[%c1_119, %c24_120, %c0_121] : memref<2x64x128xf32, #tpu.memory_space<vmem>>, vector<1x8x128xf32>
    %173 = vector.shape_cast %172 : vector<1x8x128xf32> to vector<8x128xf32>
    %174 = vector.shape_cast %171 : vector<8x128xf32> to vector<1x8x128xf32>
    tpu.vector_store %arg14[%c1_119, %c24_120, %c0_121], %174 {strides = array<i32>} : memref<2x64x128xf32, #tpu.memory_space<vmem>>, vector<1x8x128xf32>,
    %175 = vector.extract_strided_slice %158 {offsets = [64, 0], sizes = [8, 128], strides = [1, 1]} : vector<144x128xf32> to vector<8x128xf32>
    %c1_122 = arith.constant 1 : index
    %c32_123 = arith.constant 32 : index
    %c0_124 = arith.constant 0 : index
    %176 = vector.load %arg14[%c1_122, %c32_123, %c0_124] : memref<2x64x128xf32, #tpu.memory_space<vmem>>, vector<1x8x128xf32>
    %177 = vector.shape_cast %176 : vector<1x8x128xf32> to vector<8x128xf32>
    %178 = vector.shape_cast %175 : vector<8x128xf32> to vector<1x8x128xf32>
    tpu.vector_store %arg14[%c1_122, %c32_123, %c0_124], %178 {strides = array<i32>} : memref<2x64x128xf32, #tpu.memory_space<vmem>>, vector<1x8x128xf32>,
    %179 = vector.extract_strided_slice %158 {offsets = [80, 0], sizes = [8, 128], strides = [1, 1]} : vector<144x128xf32> to vector<8x128xf32>
    %c1_125 = arith.constant 1 : index
    %c40_126 = arith.constant 40 : index
    %c0_127 = arith.constant 0 : index
    %180 = vector.load %arg14[%c1_125, %c40_126, %c0_127] : memref<2x64x128xf32, #tpu.memory_space<vmem>>, vector<1x8x128xf32>
    %181 = vector.shape_cast %180 : vector<1x8x128xf32> to vector<8x128xf32>
    %182 = vector.shape_cast %179 : vector<8x128xf32> to vector<1x8x128xf32>
    tpu.vector_store %arg14[%c1_125, %c40_126, %c0_127], %182 {strides = array<i32>} : memref<2x64x128xf32, #tpu.memory_space<vmem>>, vector<1x8x128xf32>,
    %183 = vector.extract_strided_slice %158 {offsets = [96, 0], sizes = [8, 128], strides = [1, 1]} : vector<144x128xf32> to vector<8x128xf32>
    %c1_128 = arith.constant 1 : index
    %c48_129 = arith.constant 48 : index
    %c0_130 = arith.constant 0 : index
    %184 = vector.load %arg14[%c1_128, %c48_129, %c0_130] : memref<2x64x128xf32, #tpu.memory_space<vmem>>, vector<1x8x128xf32>
    %185 = vector.shape_cast %184 : vector<1x8x128xf32> to vector<8x128xf32>
    %186 = vector.shape_cast %183 : vector<8x128xf32> to vector<1x8x128xf32>
    tpu.vector_store %arg14[%c1_128, %c48_129, %c0_130], %186 {strides = array<i32>} : memref<2x64x128xf32, #tpu.memory_space<vmem>>, vector<1x8x128xf32>,
    %187 = vector.extract_strided_slice %158 {offsets = [112, 0], sizes = [8, 128], strides = [1, 1]} : vector<144x128xf32> to vector<8x128xf32>
    %c1_131 = arith.constant 1 : index
    %c56_132 = arith.constant 56 : index
    %c0_133 = arith.constant 0 : index
    %188 = vector.load %arg14[%c1_131, %c56_132, %c0_133] : memref<2x64x128xf32, #tpu.memory_space<vmem>>, vector<1x8x128xf32>
    %189 = vector.shape_cast %188 : vector<1x8x128xf32> to vector<8x128xf32>
    %190 = vector.shape_cast %187 : vector<8x128xf32> to vector<1x8x128xf32>
    tpu.vector_store %arg14[%c1_131, %c56_132, %c0_133], %190 {strides = array<i32>} : memref<2x64x128xf32, #tpu.memory_space<vmem>>, vector<1x8x128xf32>,
    return
  }
  func.func @transform_0(%arg0: i32) -> (i32, i32, i32) {
    %c0_i32 = arith.constant 0 : i32
    %c0_i32_0 = arith.constant 0 : i32
    %c0_i32_1 = arith.constant 0 : i32
    return %arg0, %c0_i32, %c0_i32_0 : i32, i32, i32
  }
  func.func @transform_1(%arg0: i32) -> (i32, i32) {
    %c0_i32 = arith.constant 0 : i32
    %c0_i32_0 = arith.constant 0 : i32
    %c0_i32_1 = arith.constant 0 : i32
    return %c0_i32, %c0_i32_0 : i32, i32
  }
  func.func @transform_2(%arg0: i32) -> (i32, i32) {
    %c0_i32 = arith.constant 0 : i32
    %c0_i32_0 = arith.constant 0 : i32
    %c0_i32_1 = arith.constant 0 : i32
    return %c0_i32, %c0_i32_0 : i32, i32
  }
  func.func @transform_3(%arg0: i32) -> (i32, i32) {
    %c0_i32 = arith.constant 0 : i32
    %c0_i32_0 = arith.constant 0 : i32
    %c0_i32_1 = arith.constant 0 : i32
    return %c0_i32, %c0_i32_0 : i32, i32
  }
  func.func @transform_4(%arg0: i32) -> (i32, i32) {
    %c0_i32 = arith.constant 0 : i32
    %c0_i32_0 = arith.constant 0 : i32
    %c0_i32_1 = arith.constant 0 : i32
    return %c0_i32, %c0_i32_0 : i32, i32
  }
  func.func @transform_5(%arg0: i32) -> (i32, i32) {
    %c0_i32 = arith.constant 0 : i32
    %c0_i32_0 = arith.constant 0 : i32
    %c0_i32_1 = arith.constant 0 : i32
    return %c0_i32, %c0_i32_0 : i32, i32
  }
  func.func @transform_6(%arg0: i32) -> (i32, i32) {
    %c0_i32 = arith.constant 0 : i32
    %c0_i32_0 = arith.constant 0 : i32
    %c0_i32_1 = arith.constant 0 : i32
    return %c0_i32, %c0_i32_0 : i32, i32
  }
  func.func @transform_7(%arg0: i32) -> (i32, i32, i32) {
    %c0_i32 = arith.constant 0 : i32
    %c0_i32_0 = arith.constant 0 : i32
    %c0_i32_1 = arith.constant 0 : i32
    %c0_i32_2 = arith.constant 0 : i32
    return %c0_i32, %c0_i32_0, %c0_i32_1 : i32, i32, i32
  }
  func.func @transform_8(%arg0: i32) -> (i32, i32) {
    %c0_i32 = arith.constant 0 : i32
    %c0_i32_0 = arith.constant 0 : i32
    %c0_i32_1 = arith.constant 0 : i32
    return %c0_i32, %c0_i32_0 : i32, i32
  }
  func.func @transform_9(%arg0: i32) -> (i32, i32) {
    %c0_i32 = arith.constant 0 : i32
    %c0_i32_0 = arith.constant 0 : i32
    %c0_i32_1 = arith.constant 0 : i32
    return %c0_i32, %c0_i32_0 : i32, i32
  }
  func.func @transform_10(%arg0: i32) -> (i32, i32) {
    %c0_i32 = arith.constant 0 : i32
    %c0_i32_0 = arith.constant 0 : i32
    %c0_i32_1 = arith.constant 0 : i32
    return %c0_i32, %c0_i32_0 : i32, i32
  }
  func.func @transform_11(%arg0: i32) -> (i32, i32) {
    %c0_i32 = arith.constant 0 : i32
    %c0_i32_0 = arith.constant 0 : i32
    %c0_i32_1 = arith.constant 0 : i32
    return %c0_i32, %c0_i32_0 : i32, i32
  }
  func.func @transform_12(%arg0: i32) -> (i32, i32) {
    %c0_i32 = arith.constant 0 : i32
    %c0_i32_0 = arith.constant 0 : i32
    %c0_i32_1 = arith.constant 0 : i32
    return %c0_i32, %c0_i32_0 : i32, i32
  }
  func.func @transform_13(%arg0: i32) -> (i32, i32, i32) {
    %c0_i32 = arith.constant 0 : i32
    %c0_i32_0 = arith.constant 0 : i32
    %c0_i32_1 = arith.constant 0 : i32
    return %arg0, %c0_i32, %c0_i32_0 : i32, i32, i32
  }
}

</mosaic_0001>

<bundles_post_ra>
// kernel: se_preact_bottleneck.1
= control target key start
LH: loop header
LB: loop body
LE: loop exit
PB: predicated region body
PF: predicated region fallthrough
CT: control target
= control target key end

     0   :  { %v7261_v3 = vmov 0   ;;  %vm7264_vm0 = vmmov 0   ;;  %s9597_s4 = inlined_call_operand.vmem [shape: f32[128,128], index: 4, kind: input, shape index: {}]   ;;  %s9598_s0 = inlined_call_operand.vmem [shape: f32[2,144,128], index: 0, kind: input, shape index: {}]   ;;  %s9599_s2 = inlined_call_operand.vmem [shape: f32[1,128], index: 2, kind: input, shape index: {}]   ;;  %s9600_s3 = inlined_call_operand.vmem [shape: f32[1,128], index: 3, kind: input, shape index: {}]   ;;  %s9601_s1 = inlined_call_operand.vmem [shape: f32[288,1], index: 1, kind: input, shape index: {}]   ;;  %s9602_s7 = inlined_call_operand.vmem [shape: f32[9,128,128], index: 7, kind: input, shape index: {}]   ;;  %s9603_s5 = inlined_call_operand.vmem [shape: f32[1,128], index: 5, kind: input, shape index: {}]   ;;  %s9604_s6 = inlined_call_operand.vmem [shape: f32[1,128], index: 6, kind: input, shape index: {}]   ;;  %s9605_s10 = inlined_call_operand.vmem [shape: f32[128,128], index: 10, kind: input, shape index: {}]   ;;  %s9606_s8 = inlined_call_operand.vmem [shape: f32[1,128], index: 8, kind: input, shape index: {}]   ;;  %s9607_s9 = inlined_call_operand.vmem [shape: f32[1,128], index: 9, kind: input, shape index: {}]   ;;  %s9608_s11 = inlined_call_operand.vmem [shape: f32[128,128], index: 11, kind: input, shape index: {}]   ;;  %s9609_s12 = inlined_call_operand.vmem [shape: f32[128,128], index: 12, kind: input, shape index: {}]   ;;  %s9610_s13 = inlined_call_operand.vmem [shape: f32[2,64,128], index: 13, kind: output, shape index: {}]  }
   0x1   :  { %v202_v0 = vld [vmem:[%s9597_s4] sm:$0xff]  ;;  %v203_v1 = vld [vmem:[%s9597_s4 + $0x8] sm:$0xff]  ;;  %v204_v2 = vld [vmem:[%s9597_s4 + $0x10] sm:$0xff]  ;;  %7234 = vset.pattern.permute.xlu0 %v7261_v3  ;;  %7235 = vset.pattern.permute.xlu1 %v7261_v3 }
   0x2   :  { %v6478_v4 = vpack.c.bf16 %v203_v1, %v202_v0  ;;  %v205_v5 = vld [vmem:[%s9597_s4 + $0x18] sm:$0xff]  ;;  %v206_v7 = vld [vmem:[%s9597_s4 + $0x20] sm:$0xff]  ;;  %v207_v8 = vld [vmem:[%s9597_s4 + $0x28] sm:$0xff] }
   0x3   :  { %v6482_v6 = vpack.c.bf16 %v205_v5, %v204_v2  ;;  %v6486_v9 = vpack.c.bf16 %v207_v8, %v206_v7  ;;  %v208_v10 = vld [vmem:[%s9597_s4 + $0x30] sm:$0xff]  ;;  %v44_v11 = vld [vmem:[%s9598_s0] sm:$0xff]  ;;  %v45_v12 = vld [vmem:[%s9598_s0 + $0x8] sm:$0xff] }
   0x4   :  { %6479 = vmatprep.subr.bf16.mxu0 %v6478_v4  ;;  %v209_v13 = vld [vmem:[%s9597_s4 + $0x38] sm:$0xff]  ;;  %v7368_v14 = vld [vmem:[%s9599_s2] ss:$0 sm:$0xff]  ;;  %v4207_v16 = vadd.f32 %v45_v12, %v44_v11  ;;  %v46_v18 = vld [vmem:[%s9598_s0 + $0x10] sm:$0xff] }
   0x5   :  { %6481 = vmatpush3.bf16.msra.mxu0 %v6478_v4  ;;  %v7373_v15 = vld [vmem:[%s9600_s3] ss:$0 sm:$0xff]  ;;  %v87_v17 = vmul.f32 %v7368_v14, %v44_v11  ;;  %v6490_v20 = vpack.c.bf16 %v209_v13, %v208_v10  ;;  %v47_v22 = vld [vmem:[%s9598_s0 + $0x18] sm:$0xff]  ;;  %v211_v24 = vld [vmem:[%s9597_s4 + $0x48] sm:$0xff]  ;;  %v88_v53 = vmul.f32 %v7368_v14, %v45_v12  ;;  %v89_v55 = vmul.f32 %v7368_v14, %v46_v18 }
   0x6   :  { %6483 = vmatprep.subr.bf16.mxu0 %v6482_v6  ;;  %v4208_v19 = vadd.f32 %v4207_v16, %v46_v18  ;;  %v210_v23 = vld [vmem:[%s9597_s4 + $0x40] sm:$0xff]  ;;  %v587_v29 = vld [vmem:[%s9601_s1 + $0x10] sm:$0xff]  ;;  %v586_v31 = vld [vmem:[%s9601_s1 + $0x8] sm:$0xff]  ;;  %v90_v1 = vmul.f32 %v7368_v14, %v47_v22 }
   0x7   :  { %v130_v21 = vadd.f32 %v7373_v15, %v87_v17  ;;  %v585_v26 = vld [vmem:[%s9601_s1] sm:$0xff]  ;;  %633 = vperm.xlu1 %7235, %v587_v29   ;;  %v6494_v32 = vpack.c.bf16 %v211_v24, %v210_v23  ;;  %v49_v33 = vld [vmem:[%s9598_s0 + $0x28] sm:$0xff]  ;;  %v212_v34 = vld [vmem:[%s9597_s4 + $0x50] sm:$0xff]  ;;  %v7502_v7 = vadd.f32 %v7373_v15, %v88_v53  ;;  %v7512_v11 = vadd.f32 %v7373_v15, %v89_v55 }
   0x8   :  { %v4209_v25 = vadd.f32 %v4208_v19, %v47_v22  ;;  %v48_v28 = vld [vmem:[%s9598_s0 + $0x20] sm:$0xff]  ;;  %623 = vperm.xlu0 %7234, %v585_v26   ;;  %v213_v35 = vld [vmem:[%s9597_s4 + $0x58] sm:$0xff]  ;;  %v50_v38 = vld [vmem:[%s9598_s0 + $0x30] sm:$0xff]  ;;  %v92_v8 = vmul.f32 %v7368_v14, %v49_v33 }
   0x9   :  { %6485 = vmatpush3.bf16.msra.mxu0 %v6482_v6  ;;  %v166_v27 = vmax.f32 %v130_v21, 0.0  ;;  %v588_v37 = vld [vmem:[%s9601_s1 + $0x18] sm:$0xff]  ;;  %v589_v40 = vld [vmem:[%s9601_s1 + $0x20] sm:$0xff]  ;;  %v6498_v41 = vpack.c.bf16 %v213_v35, %v212_v34  ;;  %v215_v44 = vld [vmem:[%s9597_s4 + $0x68] sm:$0xff]  ;;  %v91_v2 = vmul.f32 %v7368_v14, %v48_v28  ;;  %v93_v19 = vmul.f32 %v7368_v14, %v50_v38 }
   0xa   :  { %6487 = vmatprep.subr.bf16.mxu0 %v6486_v9  ;;  %v4210_v30 = vadd.f32 %v4209_v25, %v48_v28  ;;  %v7422_v42 = vld [vmem:[%s9598_s0 + $0x38] sm:$0xff]  ;;  %v214_v43 = vld [vmem:[%s9597_s4 + $0x60] sm:$0xff]  ;;  %v590_v46 = vld [vmem:[%s9601_s1 + $0x28] sm:$0xff]  ;;  %v7544_v25 = vadd.f32 %v7373_v15, %v90_v1 }
   0xb   :  { %5424 = vmatprep.mubr.f32.mxu0 %v166_v27  ;;  %638 = vperm.xlu1 %7235, %v588_v37   ;;  %v7437_v47 = vld [vmem:[%s9598_s0 + $0x40] sm:$0xff]  ;;  %v591_v49 = vld [vmem:[%s9601_s1 + $0x30] sm:$0xff]  ;;  %v6502_v50 = vpack.c.bf16 %v215_v44, %v214_v43  ;;  %v217_v52 = vld [vmem:[%s9597_s4 + $0x78] sm:$0xff] }
   0xc   :  { %v4211_v36 = vadd.f32 %v4210_v30, %v49_v33  ;;  %628 = vperm.xlu0 %7234, %v586_v31   ;;  %v216_v51 = vld [vmem:[%s9597_s4 + $0x70] sm:$0xff]  ;;  %v7453_v54 = vld [vmem:[%s9598_s0 + $0x48] sm:$0xff]  ;;  %v7465_v58 = vld [vmem:[%s9598_s0 + $0x98] sm:$0xff] }
   0xd   :  { %6489 = vmatpush3.bf16.msra.mxu0 %v6486_v9  ;;  %v7460_v57 = vld [vmem:[%s9598_s0 + $0x90] sm:$0xff]  ;;  %v592_v59 = vld [vmem:[%s9601_s1 + $0x38] sm:$0xff]  ;;  %v7483_v63 = vld [vmem:[%s9598_s0 + $0xc0] sm:$0xff]  ;;  %v6506_v0 = vpack.c.bf16 %v217_v52, %v216_v51 }
   0xe   :  { %6491 = vmatprep.subr.bf16.mxu0 %v6490_v20  ;;  %v4212_v39 = vadd.f32 %v4211_v36, %v50_v38  ;;  %v7473_v60 = vld [vmem:[%s9598_s0 + $0x50] sm:$0xff]  ;;  %v4406_v61 = vadd.f32 %v7465_v58, %v7460_v57  ;;  %v67_v62 = vld [vmem:[%s9598_s0 + $0xb8] sm:$0xff]  ;;  %v593_v4 = vld [vmem:[%s9601_s1 + $0x40] sm:$0xff]  ;;  %v111_v18 = vmul.f32 %v7368_v14, %v7483_v63  ;;  %v167_v38 = vmax.f32 %v7502_v7, 0.0 }
   0xf   :  { %648 = vperm.xlu1 %7235, %v590_v46   ;;  %v7494_v5 = vld [vmem:[%s9598_s0 + $0xa0] sm:$0xff]  ;;  %v7499_v6 = vld [vmem:[%s9598_s0 + $0xc8] sm:$0xff]  ;;  %v7508_v9 = vld [vmem:[%s9598_s0 + $0x58] sm:$0xff]  ;;  %v110_v17 = vmul.f32 %v7368_v14, %v67_v62 }
  0x10   :  { %v4213_v45 = vadd.f32 %v4212_v39, %v7422_v42  ;;  %643 = vperm.xlu0 %7234, %v589_v40   ;;  %v4407_v10 = vadd.f32 %v4406_v61, %v7494_v5  ;;  %v7518_v13 = vld [vmem:[%s9598_s0 + $0xa8] sm:$0xff]  ;;  %v595_v23 = vld [vmem:[%s9601_s1 + $0x50] sm:$0xff]  ;;  %v112_v24 = vmul.f32 %v7368_v14, %v7499_v6  ;;  %v7556_v29 = vadd.f32 %v7373_v15, %v111_v18  ;;  %v7564_v31 = vld [vmem:[%s9598_s0 + $0xd8] sm:$0xff] }
  0x11   :  { %6493 = vmatpush3.bf16.msra.mxu0 %v6490_v20  ;;  %v594_v16 = vld [vmem:[%s9601_s1 + $0x48] sm:$0xff]  ;;  %v7530_v20 = vld [vmem:[%s9598_s0 + $0x60] sm:$0xff]  ;;  %v7550_v27 = vld [vmem:[%s9598_s0 + $0xb0] sm:$0xff]  ;;  %v7553_v28 = vadd.f32 %v7373_v15, %v110_v17  ;;  %v168_v39 = vmax.f32 %v7512_v11, 0.0  ;;  %v7591_v40 = vadd.f32 %v7373_v15, %v92_v8  ;;  %v136_v11 = vadd.f32 %v7373_v15, %v93_v19 }
  0x12   :  { %6495 = vmatprep.subr.bf16.mxu0 %v6494_v32  ;;  %v4214_v48 = vadd.f32 %v4213_v45, %v7437_v47  ;;  %v7535_v21 = vld [vmem:[%s9598_s0 + $0x68] sm:$0xff]  ;;  %v4408_v22 = vadd.f32 %v4407_v10, %v7518_v13  ;;  %v70_v30 = vld [vmem:[%s9598_s0 + $0xd0] sm:$0xff]  ;;  %v7571_v34 = vadd.f32 %v7373_v15, %v112_v24  ;;  %v7576_v35 = vld [vmem:[%s9598_s0 + $0xe0] sm:$0xff]  ;;  %v94_v45 = vmul.f32 %v7368_v14, %v7422_v42 }
  0x13   :  { %658 = vperm.xlu1 %7235, %v592_v59   ;;  %v7581_v36 = vld [vmem:[%s9598_s0 + $0xe8] sm:$0xff]  ;;  %v7586_v37 = vld [vmem:[%s9598_s0 + $0xf0] sm:$0xff]  ;;  %v596_v43 = vld [vmem:[%s9601_s1 + $0x58] sm:$0xff]  ;;  %v115_v42 = vmul.f32 %v7368_v14, %v7576_v35  ;;  %v169_v10 = vmax.f32 %v7544_v25, 0.0 }
  0x14   :  { %v4215_v56 = vadd.f32 %v4214_v48, %v7453_v54  ;;  %653 = vperm.xlu0 %7234, %v591_v49   ;;  %v4409_v33 = vadd.f32 %v4408_v22, %v7550_v27  ;;  %v7600_v44 = vld [vmem:[%s9598_s0 + $0xf8] sm:$0xff]  ;;  %v7607_v46 = vld [vmem:[%s9598_s0 + $0x70] sm:$0xff]  ;;  %v113_v49 = vmul.f32 %v7368_v14, %v70_v30  ;;  %v597_v52 = vld [vmem:[%s9601_s1 + $0x60] sm:$0xff]  ;;  %v116_v53 = vmul.f32 %v7368_v14, %v7581_v36 }
  0x15   :  { %6497 = vmatpush3.bf16.msra.mxu0 %v6494_v32  ;;  %v7567_v32 = vadd.f32 %v7373_v15, %v91_v2  ;;  %v117_v55 = vmul.f32 %v7368_v14, %v7586_v37  ;;  %v598_v2 = vld [vmem:[%s9601_s1 + $0x68] sm:$0xff]  ;;  %v7652_v7 = vld [vmem:[%s9598_s0 + $0x100] sm:$0xff]  ;;  %v7673_v18 = vld [vmem:[%s9598_s0 + $0x110] sm:$0xff] }
  0x16   :  { %6499 = vmatprep.subr.bf16.mxu0 %v6498_v41  ;;  %v4216_v3 = vadd.f32 %v4215_v56, %v7473_v60  ;;  %v4410_v48 = vadd.f32 %v4409_v33, %v67_v62  ;;  %v7625_v56 = vld [vmem:[%s9598_s0 + $0x78] sm:$0xff]  ;;  %v7629_v61 = vadd.f32 %v7373_v15, %v113_v49  ;;  %v7657_v8 = vld [vmem:[%s9598_s0 + $0x108] sm:$0xff]  ;;  %v599_v25 = vld [vmem:[%s9601_s1 + $0x70] sm:$0xff] }
  0x17   :  { %668 = vperm.xlu1 %7235, %v594_v16   ;;  %v7678_v19 = vld [vmem:[%s9598_s0 + $0x118] sm:$0xff]  ;;  %v170_v22 = vmax.f32 %v7567_v32, 0.0  ;;  %v7693_v33 = vld [vmem:[%s9598_s0 + $0x88] sm:$0xff] }
  0x18   :  { %v4217_v12 = vadd.f32 %v4216_v3, %v7508_v9  ;;  %663 = vperm.xlu0 %7234, %v593_v4   ;;  %v4411_v59 = vadd.f32 %v4410_v48, %v7483_v63  ;;  %v7641_v3 = vadd.f32 %v7373_v15, %v115_v42  ;;  %v7644_v63 = vadd.f32 %v7373_v15, %v116_v53 }
  0x19   :  { %6501 = vmatpush3.bf16.msra.mxu0 %v6498_v41  ;;  %v7647_v4 = vadd.f32 %v7373_v15, %v117_v55  ;;  %v602_v55 = vld [vmem:[%s9601_s1 + $0x88] sm:$0xff] }
  0x1a   :  { %6503 = vmatprep.subr.bf16.mxu0 %v6502_v50  ;;  %v4218_v26 = vadd.f32 %v4217_v12, %v7530_v20  ;;  %v7664_v12 = vld [vmem:[%s9598_s0 + $0x80] sm:$0xff]  ;;  %v4412_v16 = vadd.f32 %v4411_v59, %v7499_v6  ;;  %v95_v6 = vmul.f32 %v7368_v14, %v7437_v47  ;;  %v120_v47 = vmul.f32 %v7368_v14, %v7657_v8 }
  0x1b   :  { %678 = vperm.xlu1 %7235, %v596_v43   ;;  %v172_v43 = vmax.f32 %v136_v11, 0.0  ;;  %v603_v11 = vld [vmem:[%s9601_s1 + $0x90] sm:$0xff] }
  0x1c   :  { %v4219_v41 = vadd.f32 %v4218_v26, %v7535_v21  ;;  %673 = vperm.xlu0 %7234, %v595_v23   ;;  %v171_v23 = vmax.f32 %v7591_v40, 0.0  ;;  %v96_v26 = vmul.f32 %v7368_v14, %v7453_v54  ;;  %v4413_v32 = vadd.f32 %v4412_v16, %v70_v30  ;;  %v600_v54 = vld [vmem:[%s9601_s1 + $0x78] sm:$0xff] }
  0x1d   :  { %6505 = vmatpush3.bf16.msra.mxu0 %v6502_v50  ;;  %v114_v50 = vmul.f32 %v7368_v14, %v7564_v31  ;;  %v122_v30 = vmul.f32 %v7368_v14, %v7678_v19  ;;  %v7715_v49 = vadd.f32 %v7373_v15, %v120_v47 }
  0x1e   :  { %6507 = vmatprep.subr.bf16.mxu0 %v6506_v0  ;;  %v4220_v51 = vadd.f32 %v4219_v41, %v7607_v46  ;;  %v121_v41 = vmul.f32 %v7368_v14, %v7673_v18  ;;  %v4414_v48 = vadd.f32 %v4413_v32, %v7564_v31 }
  0x1f   :  { %v7632_v62 = vadd.f32 %v7373_v15, %v114_v50  ;;  %688 = vperm.xlu1 %7235, %v598_v2   ;;  %v138_v50 = vadd.f32 %v7373_v15, %v95_v6  ;;  %v7727_v31 = vadd.f32 %v7373_v15, %v122_v30 }
  0x20   :  { %v4221_v1 = vadd.f32 %v4220_v51, %v7625_v56  ;;  %683 = vperm.xlu0 %7234, %v597_v52   ;;  %v97_v51 = vmul.f32 %v7368_v14, %v7473_v60  ;;  %v601_v52 = vld [vmem:[%s9601_s1 + $0x80] sm:$0xff]  ;;  %v7724_v42 = vadd.f32 %v7373_v15, %v121_v41  ;;  %v4415_v53 = vadd.f32 %v4414_v48, %v7576_v35 }
  0x21   :  { %6509 = vmatpush3.bf16.msra.mxu0 %v6506_v0  ;;  %v118_v0 = vmul.f32 %v7368_v14, %v7600_v44  ;;  %v139_v60 = vadd.f32 %v7373_v15, %v96_v26  ;;  %v174_v2 = vmax.f32 %v138_v50, 0.0  ;;  %v99_v35 = vmul.f32 %v7368_v14, %v7530_v20  ;;  %v4614_v48 = vld [vmem:[%s9602_s7 + $0x80] sm:$0xff] }
  0x22   :  { %v4222_v24 = vadd.f32 %v4221_v1, %v7664_v12  ;;  %v4416_v1 = vadd.f32 %v4415_v53, %v7581_v36  ;;  %v4630_v50 = vld [vmem:[%s9602_s7 + $0x100] sm:$0xff] }
  0x23   :  { %v7668_v17 = vadd.f32 %v7373_v15, %v118_v0  ;;  %698 = vperm.xlu1 %7235, %v600_v54   ;;  %v98_v0 = vmul.f32 %v7368_v14, %v7508_v9  ;;  %v604_v9 = vld [vmem:[%s9601_s1 + $0x98] sm:$0xff]  ;;  %v175_v36 = vmax.f32 %v139_v60, 0.0  ;;  %v607_v54 = vld [vmem:[%s9601_s1 + $0xb0] sm:$0xff] }
  0x24   :  { %5425 = vmatmul.mubr.f32.vlgmr.msra.gmra.mrb[0].mxu0 %v167_v38  ;;  %v119_v38 = vmul.f32 %v7368_v14, %v7652_v7  ;;  %v7701_v40 = vadd.f32 %v4222_v24, %v7693_v33  ;;  %693 = vperm.xlu0 %7234, %v599_v25   ;;  %v4417_v16 = vadd.f32 %v4416_v1, %v7586_v37  ;;  %v605_v25 = vld [vmem:[%s9601_s1 + $0xa0] sm:$0xff]  ;;  %v4632_v1 = vld [vmem:[%s9602_s7 + $0x110] sm:$0xff] }
  0x25   :  { %5427 = vmatprep.mubr.f32.mxu0 %v168_v39  ;;  %v137_v39 = vadd.f32 %v7373_v15, %v94_v45  ;;  %v142_v24 = vadd.f32 %v7373_v15, %v99_v35  ;;  %v101_v37 = vmul.f32 %v7368_v14, %v7607_v46  ;;  %v106_v35 = vmul.f32 %v7368_v14, %v7465_v58  ;;  %v612_v58 = vld [vmem:[%s9601_s1 + $0xd8] sm:$0xff] }
  0x26   :  { %9652 = vst [vmem:[#allocation3_spill] sm:$0xff] %v7701_v40  ;;  %v7712_v45 = vadd.f32 %v7373_v15, %v119_v38  ;;  %v4418_v20 = vadd.f32 %v4417_v16, %v7600_v44  ;;  %v102_v38 = vmul.f32 %v7368_v14, %v7625_v56  ;;  %v608_v56 = vld [vmem:[%s9601_s1 + $0xb8] sm:$0xff] }
  0x27   :  { %v173_v59 = vmax.f32 %v137_v39, 0.0  ;;  %708 = vperm.xlu1 %7235, %v602_v55   ;;  %v178_v47 = vmax.f32 %v142_v24, 0.0  ;;  %v144_v39 = vadd.f32 %v7373_v15, %v101_v37  ;;  %v4631_v55 = vld [vmem:[%s9602_s7 + $0x108] sm:$0xff]  ;;  %v4633_v16 = vld [vmem:[%s9602_s7 + $0x118] sm:$0xff]  ;;  %v4634_v24 = vld [vmem:[%s9602_s7 + $0x120] sm:$0xff] }
  0x28   :  { %5428 = vmatmul.mubr.f32.gmra.mrb[2].mxu0 %v169_v10  ;;  %703 = vperm.xlu0 %7234, %v601_v52   ;;  %v140_v10 = vadd.f32 %v7373_v15, %v97_v51  ;;  %v4419_v26 = vadd.f32 %v4418_v20, %v7652_v7  ;;  %v103_v7 = vmul.f32 %v7368_v14, %v7664_v12  ;;  %v609_v52 = vld [vmem:[%s9601_s1 + $0xc0] sm:$0xff] }
  0x29   :  { %5430 = vmatprep.mubr.f32.mxu0 %v170_v22  ;;  %v141_v22 = vadd.f32 %v7373_v15, %v98_v0  ;;  %v145_v30 = vadd.f32 %v7373_v15, %v102_v38  ;;  %v180_v51 = vmax.f32 %v144_v39, 0.0  ;;  %v6574_v60 = vpack.c.bf16 %v4631_v55, %v4630_v50  ;;  %v4617_v0 = vld [vmem:[%s9602_s7 + $0x98] sm:$0xff]  ;;  %v618_v55 = vld [vmem:[%s9601_s1 + $0x108] sm:$0xff] }
  0x2a   :  { %v176_v6 = vmax.f32 %v140_v10, 0.0  ;;  %v4420_v46 = vadd.f32 %v4419_v26, %v7657_v8  ;;  %v6578_v20 = vpack.c.bf16 %v4633_v16, %v4632_v1  ;;  %v108_v26 = vmul.f32 %v7368_v14, %v7518_v13  ;;  %v614_v13 = vld [vmem:[%s9601_s1 + $0xe8] sm:$0xff]  ;;  %v616_v50 = vld [vmem:[%s9601_s1 + $0xf8] sm:$0xff] }
  0x2b   :  { %718 = vperm.xlu1 %7235, %v604_v9   ;;  %v177_v44 = vmax.f32 %v141_v22, 0.0  ;;  %v107_v22 = vmul.f32 %v7368_v14, %v7494_v5  ;;  %6575 = vmatprep.subr.bf16.mxu1 %v6574_v60  ;;  %v4619_v5 = vld [vmem:[%s9602_s7 + $0xa8] sm:$0xff]  ;;  %v191_v1 = vmax.f32 %v7571_v34, 0.0  ;;  %v197_v34 = vmax.f32 %v7668_v17, 0.0 }
  0x2c   :  { %5431 = vmatmul.mubr.f32.gmra.mrb[4].mxu0 %v171_v23  ;;  %v100_v23 = vmul.f32 %v7368_v14, %v7535_v21  ;;  %713 = vperm.xlu0 %7234, %v603_v11   ;;  %v606_v21 = vld [vmem:[%s9601_s1 + $0xa8] sm:$0xff]  ;;  %v4421_v41 = vadd.f32 %v4420_v46, %v7673_v18  ;;  %v109_v46 = vmul.f32 %v7368_v14, %v7550_v27  ;;  %v4636_v27 = vld [vmem:[%s9602_s7 + $0x130] sm:$0xff] }
  0x2d   :  { %5433 = vmatprep.mubr.f32.mxu0 %v172_v43  ;;  %v104_v43 = vmul.f32 %v7368_v14, %v7693_v33  ;;  %v4615_v18 = vld [vmem:[%s9602_s7 + $0x88] sm:$0xff]  ;;  %v146_v33 = vadd.f32 %v7373_v15, %v103_v7  ;;  %6577 = vmatpush3.bf16.msra.mxu1 %v6574_v60  ;;  %v150_v38 = vadd.f32 %v7373_v15, %v107_v22  ;;  %v4620_v7 = vld [vmem:[%s9602_s7 + $0xb0] sm:$0xff]  ;;  %v190_v60 = vmax.f32 %v7556_v29, 0.0  ;;  %v4629_v22 = vld [vmem:[%s9602_s7 + $0xf8] sm:$0xff] }
  0x2e   :  { %v143_v32 = vadd.f32 %v7373_v15, %v100_v23  ;;  %v7779_v12 = vadd.f32 %v4421_v41, %v7678_v19  ;;  %v105_v19 = vmul.f32 %v7368_v14, %v7460_v57  ;;  %v6510_v53 = vpack.c.bf16 %v4615_v18, %v4614_v48  ;;  %v4616_v57 = vld [vmem:[%s9602_s7 + $0x90] sm:$0xff]  ;;  %6579 = vmatprep.subr.bf16.mxu1 %v6578_v20  ;;  %v4621_v14 = vld [vmem:[%s9602_s7 + $0xb8] sm:$0xff]  ;;  %v4639_v16 = vld [vmem:[%s9602_s7 + $0x148] sm:$0xff] }
  0x2f   :  { %728 = vperm.xlu1 %7235, %v606_v21   ;;  %v147_v10 = vadd.f32 %v7373_v15, %v104_v43  ;;  %v6514_v11 = vpack.c.bf16 %v4617_v0, %v4616_v57  ;;  %v182_v9 = vmax.f32 %v146_v33, 0.0  ;;  %v611_v23 = vld [vmem:[%s9601_s1 + $0xd0] sm:$0xff]  ;;  %v151_v41 = vadd.f32 %v7373_v15, %v108_v26  ;;  %v620_v0 = vld [vmem:[%s9601_s1 + $0x118] sm:$0xff] }
  0x30   :  { %5434 = vmatmul.mubr.f32.gmra.mrb[6].mxu0 %v173_v59  ;;  %723 = vperm.xlu0 %7234, %v605_v25   ;;  %v179_v8 = vmax.f32 %v143_v32, 0.0  ;;  %9653 = vst [vmem:[#allocation4_spill] sm:$0xff] %v7779_v12  ;;  %v610_v59 = vld [vmem:[%s9601_s1 + $0xc8] sm:$0xff]  ;;  %v149_v25 = vadd.f32 %v7373_v15, %v106_v35  ;;  %v152_v43 = vadd.f32 %v7373_v15, %v109_v46  ;;  %v615_v48 = vld [vmem:[%s9601_s1 + $0xf0] sm:$0xff]  ;;  %v193_v29 = vmax.f32 %v7632_v62, 0.0 }
  0x31   :  { %5436 = vmatprep.mubr.f32.mxu0 %v174_v2  ;;  %6511 = vmatprep.subr.bf16.mxu0 %v6510_v53  ;;  %v181_v2 = vmax.f32 %v145_v30, 0.0  ;;  %v183_v37 = vmax.f32 %v147_v10, 0.0  ;;  %v186_v30 = vmax.f32 %v150_v38, 0.0  ;;  %v187_v33 = vmax.f32 %v151_v41, 0.0  ;;  %v619_v57 = vld [vmem:[%s9601_s1 + $0x110] sm:$0xff]  ;;  %v4646_v38 = vld [vmem:[%s9602_s7 + $0x180] sm:$0xff] }
  0x32   :  { %6513 = vmatpush3.bf16.msra.mxu0 %v6510_v53  ;;  %6581 = vmatpush3.bf16.msra.mxu1 %v6578_v20  ;;  %v617_v53 = vld [vmem:[%s9601_s1 + $0x100] sm:$0xff]  ;;  %v195_v10 = vmax.f32 %v7644_v63, 0.0  ;;  %v196_v35 = vmax.f32 %v7647_v4, 0.0  ;;  %v200_v62 = vmax.f32 %v7724_v42, 0.0  ;;  %v4624_v63 = vld [vmem:[%s9602_s7 + $0xd0] sm:$0xff]  ;;  %v4625_v4 = vld [vmem:[%s9602_s7 + $0xd8] sm:$0xff] }
  0x33   :  { %738 = vperm.xlu1 %7235, %v608_v56   ;;  %6515 = vmatprep.subr.bf16.mxu0 %v6514_v11  ;;  %v6522_v56 = vpack.c.bf16 %v4621_v14, %v4620_v7  ;;  %v6530_v17 = vpack.c.bf16 %v4625_v4, %v4624_v63  ;;  %v4641_v20 = vld [vmem:[%s9602_s7 + $0x158] sm:$0xff]  ;;  %v4644_v26 = vld [vmem:[%s9602_s7 + $0x170] sm:$0xff]  ;;  %v4647_v46 = vld [vmem:[%s9602_s7 + $0x188] sm:$0xff] }
  0x34   :  { %5437 = vmatmul.mubr.f32.gmra.mrb[8].mxu0 %v175_v36  ;;  %733 = vperm.xlu0 %7234, %v607_v54   ;;  %v148_v36 = vadd.f32 %v7373_v15, %v105_v19  ;;  %v185_v54 = vmax.f32 %v149_v25, 0.0  ;;  %v4623_v15 = vld [vmem:[%s9602_s7 + $0xc8] sm:$0xff]  ;;  %v917_v14 = vld [vmem:[%s9602_s7 + $0x10] sm:$0xff]  ;;  %v919_v41 = vld [vmem:[%s9602_s7 + $0x20] sm:$0xff] }
  0x35   :  { %5439 = vmatprep.mubr.f32.mxu0 %v176_v6  ;;  %v4618_v6 = vld [vmem:[%s9602_s7 + $0xa0] sm:$0xff] }
  0x36   :  { %v6518_v21 = vpack.c.bf16 %v4619_v5, %v4618_v6  ;;  %v184_v32 = vmax.f32 %v148_v36, 0.0  ;;  %6517 = vmatpush3.bf16.msra.mxu0 %v6514_v11  ;;  %v198_v11 = vmax.f32 %v7712_v45, 0.0  ;;  %v4626_v45 = vld [vmem:[%s9602_s7 + $0xe0] sm:$0xff]  ;;  %v4628_v36 = vld [vmem:[%s9602_s7 + $0xf0] sm:$0xff]  ;;  %v7262_v5 = vmov 0.0  }
  0x37   :  { %748 = vperm.xlu1 %7235, %v610_v59   ;;  %v189_v59 = vmax.f32 %v7553_v28, 0.0  ;;  %v192_v28 = vmax.f32 %v7629_v61, 0.0  ;;  %v199_v61 = vmax.f32 %v7715_v49, 0.0  ;;  %v4627_v49 = vld [vmem:[%s9602_s7 + $0xe8] sm:$0xff]  ;;  %838 = vst [vmem:[#allocation2 + $0x8] sm:$0xff] %v7262_v5  ;;  %837 = vst [vmem:[#allocation2] sm:$0xff] %v7262_v5 }
  0x38   :  { %5440 = vmatmul.mubr.f32.gmra.mrb[10].mxu0 %v177_v44  ;;  %743 = vperm.xlu0 %7234, %v609_v52   ;;  %v4635_v44 = vld [vmem:[%s9602_s7 + $0x128] sm:$0xff]  ;;  %v188_v52 = vmax.f32 %v152_v43, 0.0  ;;  %v6534_v42 = vpack.c.bf16 %v4627_v49, %v4626_v45  ;;  %839 = vst [vmem:[#allocation2 + $0x10] sm:$0xff] %v7262_v5  ;;  %840 = vst [vmem:[#allocation2 + $0x138] sm:$0xff] %v7262_v5  ;;  %v922_v43 = vld [vmem:[%s9602_s7 + $0x38] sm:$0xff] }
  0x39   :  { %5442 = vmatprep.mubr.f32.mxu0 %v178_v47  ;;  %v613_v47 = vld [vmem:[%s9601_s1 + $0xe0] sm:$0xff]  ;;  %v6582_v39 = vpack.c.bf16 %v4635_v44, %v4634_v24  ;;  %6519 = vmatprep.subr.bf16.mxu0 %v6518_v21  ;;  %841 = vst [vmem:[#allocation2 + $0x140] sm:$0xff] %v7262_v5  ;;  %842 = vst [vmem:[#allocation2 + $0x148] sm:$0xff] %v7262_v5 }
  0x3a   :  { %6521 = vmatpush3.bf16.msra.mxu0 %v6518_v21  ;;  %v4642_v24 = vld [vmem:[%s9602_s7 + $0x160] sm:$0xff]  ;;  %v4645_v21 = vld [vmem:[%s9602_s7 + $0x178] sm:$0xff] }
  0x3b   :  { %758 = vperm.xlu1 %7235, %v612_v58   ;;  %6583 = vmatprep.subr.bf16.mxu1 %v6582_v39  ;;  %v4640_v58 = vld [vmem:[%s9602_s7 + $0x150] sm:$0xff]  ;;  %v6602_v44 = vpack.c.bf16 %v4645_v21, %v4644_v26  ;;  %v8022_v4 = vld [vmem:[%s9603_s5] ss:$0 sm:$0xff] }
  0x3c   :  { %5443 = vmatmul.mubr.f32.gmra.mrb[12].mxu0 %v179_v8  ;;  %753 = vperm.xlu0 %7234, %v611_v23   ;;  %v4637_v8 = vld [vmem:[%s9602_s7 + $0x138] sm:$0xff]  ;;  %v6538_v23 = vpack.c.bf16 %v4629_v22, %v4628_v36  ;;  %v6594_v6 = vpack.c.bf16 %v4641_v20, %v4640_v58  ;;  %v8027_v45 = vld [vmem:[%s9604_s6] ss:$0 sm:$0xff] }
  0x3d   :  { %5445 = vmatprep.mubr.f32.mxu0 %v180_v51  ;;  %v6586_v18 = vpack.c.bf16 %v4637_v8, %v4636_v27  ;;  %6585 = vmatpush3.bf16.msra.mxu1 %v6582_v39  ;;  %v4622_v51 = vld [vmem:[%s9602_s7 + $0xc0] sm:$0xff]  ;;  %v916_v39 = vld [vmem:[%s9602_s7 + $0x8] sm:$0xff]  ;;  %v918_v27 = vld [vmem:[%s9602_s7 + $0x18] sm:$0xff] }
  0x3e   :  { %6523 = vmatprep.subr.bf16.mxu0 %v6522_v56  ;;  %v6526_v19 = vpack.c.bf16 %v4623_v15, %v4622_v51  ;;  %v925_v15 = vld [vmem:[%s9602_s7 + $0x50] sm:$0xff] }
  0x3f   :  { %768 = vperm.xlu1 %7235, %v614_v13   ;;  %6525 = vmatpush3.bf16.msra.mxu0 %v6522_v56  ;;  %v915_v13 = vld [vmem:[%s9602_s7] sm:$0xff]  ;;  %v920_v56 = vld [vmem:[%s9602_s7 + $0x28] sm:$0xff] }
  0x40   :  { %5446 = vmatmul.mubr.f32.gmra.mrb[14].mxu0 %v181_v2  ;;  %763 = vperm.xlu0 %7234, %v613_v47   ;;  %v194_v2 = vmax.f32 %v7641_v3, 0.0  ;;  %v201_v3 = vmax.f32 %v7727_v31, 0.0  ;;  %v4638_v31 = vld [vmem:[%s9602_s7 + $0x140] sm:$0xff]  ;;  %v7949_v47 = vpack.c.bf16 %v4647_v46, %v4646_v38  ;;  %v6542_v7 = vpack.c.bf16 %v916_v39, %v915_v13 }
  0x41   :  { %5448 = vmatprep.mubr.f32.mxu0 %v182_v9  ;;  %6587 = vmatprep.subr.bf16.mxu1 %v6586_v18  ;;  %v6590_v9 = vpack.c.bf16 %v4639_v16, %v4638_v31  ;;  %v6550_v8 = vpack.c.bf16 %v920_v56, %v919_v41 }
  0x42   :  { %6589 = vmatpush3.bf16.msra.mxu1 %v6586_v18  ;;  %6527 = vmatprep.subr.bf16.mxu0 %v6526_v19  ;;  %v923_v18 = vld [vmem:[%s9602_s7 + $0x40] sm:$0xff] }
  0x43   :  { %778 = vperm.xlu1 %7235, %v616_v50   ;;  %6529 = vmatpush3.bf16.msra.mxu0 %v6526_v19  ;;  %v924_v50 = vld [vmem:[%s9602_s7 + $0x48] sm:$0xff] }
  0x44   :  { %5449 = vmatmul.mubr.f32.gmra.mrb[16].mxu0 %v183_v37  ;;  %773 = vperm.xlu0 %7234, %v615_v48   ;;  %v4643_v37 = vld [vmem:[%s9602_s7 + $0x168] sm:$0xff]  ;;  %v6558_v51 = vpack.c.bf16 %v924_v50, %v923_v18  ;;  %v4648_v18 = vld [vmem:[%s9602_s7 + $0x190] sm:$0xff]  ;;  %v4649_v50 = vld [vmem:[%s9602_s7 + $0x198] sm:$0xff] }
  0x45   :  { %5451 = vmatprep.mubr.f32.mxu0 %v184_v32  ;;  %6531 = vmatprep.subr.bf16.mxu0 %v6530_v17  ;;  %v6598_v25 = vpack.c.bf16 %v4643_v37, %v4642_v24  ;;  %v1474_v32 = vld [vmem:[#allocation2 + $0x9] sm:$0xff] }
  0x46   :  { %6591 = vmatprep.subr.bf16.mxu1 %v6590_v9  ;;  %5682 = vmatprep.mubr.f32.mxu1 %v1474_v32 }
  0x47   :  { %788 = vperm.xlu1 %7235, %v618_v55   ;;  %6533 = vmatpush3.bf16.msra.mxu0 %v6530_v17 }
  0x48   :  { %5452 = vmatmul.mubr.f32.gmra.mrb[18].mxu0 %v185_v54  ;;  %783 = vperm.xlu0 %7234, %v617_v53   ;;  %v6546_v54 = vpack.c.bf16 %v918_v27, %v917_v14  ;;  %v928_v53 = vld [vmem:[%s9602_s7 + $0x68] sm:$0xff] }
  0x49   :  { %5454 = vmatprep.mubr.f32.mxu0 %v186_v30  ;;  %6535 = vmatprep.subr.bf16.mxu0 %v6534_v42  ;;  %v921_v30 = vld [vmem:[%s9602_s7 + $0x30] sm:$0xff] }
  0x4a   :  { %6593 = vmatpush3.bf16.msra.mxu1 %v6590_v9  ;;  %v6554_v48 = vpack.c.bf16 %v922_v43, %v921_v30 }
  0x4b   :  { %798 = vperm.xlu1 %7235, %v620_v0   ;;  %6537 = vmatpush3.bf16.msra.mxu0 %v6534_v42 }
  0x4c   :  { %5455 = vmatmul.mubr.f32.gmra.mrb[20].mxu0 %v187_v33  ;;  %793 = vperm.xlu0 %7234, %v619_v57   ;;  %v926_v33 = vld [vmem:[%s9602_s7 + $0x58] sm:$0xff] }
  0x4d   :  { %5457 = vmatprep.mubr.f32.mxu0 %v188_v52  ;;  %6539 = vmatprep.subr.bf16.mxu0 %v6538_v23  ;;  %v6562_v19 = vpack.c.bf16 %v926_v33, %v925_v15  ;;  %v927_v52 = vld [vmem:[%s9602_s7 + $0x60] sm:$0xff] }
  0x4e   :  { %6595 = vmatprep.subr.bf16.mxu1 %v6594_v6  ;;  %v6566_v55 = vpack.c.bf16 %v928_v53, %v927_v52 }
  0x4f   :  { %6541 = vmatpush3.bf16.msra.mxu0 %v6538_v23  ;;  %6597 = vmatpush3.bf16.msra.mxu1 %v6594_v6 }
  0x50   :  { %5458 = vmatmul.mubr.f32.gmra.mrb[22].mxu0 %v189_v59  ;;  %6599 = vmatprep.subr.bf16.mxu1 %v6598_v25  ;;  %v929_v59 = vld [vmem:[%s9602_s7 + $0x70] sm:$0xff] }
  0x51   :  { %5460 = vmatprep.mubr.f32.mxu0 %v190_v60  ;;  %6543 = vmatprep.subr.bf16.mxu0 %v6542_v7  ;;  %v930_v60 = vld [vmem:[%s9602_s7 + $0x78] sm:$0xff] }
  0x52   :  { %v6570_v57 = vpack.c.bf16 %v930_v60, %v929_v59 }
  0x53   :  { %6601 = vmatpush3.bf16.msra.mxu1 %v6598_v25 }
  0x54   :  { %5461 = vmatmul.mubr.f32.gmra.mrb[24].mxu0 %v191_v1  ;;  %6603 = vmatprep.subr.bf16.mxu1 %v6602_v44 }
  0x55   :  { %5463 = vmatprep.mubr.f32.mxu0 %v192_v28 }
  0x57   :  { %6605 = vmatpush3.bf16.msra.mxu1 %v6602_v44 }
  0x58   :  { %5464 = vmatmul.mubr.f32.gmra.mrb[26].mxu0 %v193_v29  ;;  %6607 = vmatprep.subr.bf16.mxu1 %v7949_v47 }
  0x59   :  { %5466 = vmatprep.mubr.f32.mxu0 %v194_v2 }
  0x5c   :  { %5467 = vmatmul.mubr.f32.gmra.mrb[28].mxu0 %v195_v10 }
  0x5d   :  { %5469 = vmatprep.mubr.f32.mxu0 %v196_v35  ;;  %v4726_v35 = vld [vmem:[%s9602_s7 + $0x400] sm:$0xff] }
  0x60   :  { %5470 = vmatmul.mubr.f32.gmra.mrb[30].mxu0 %v197_v34  ;;  %v4727_v34 = vld [vmem:[%s9602_s7 + $0x408] sm:$0xff] }
  0x61   :  { %5472 = vmatprep.mubr.f32.mxu0 %v198_v11 }
  0x64   :  { %5473 = vmatmul.mubr.f32.gmra.mrb[32].mxu0 %v199_v61  ;;  %v8010_v61 = vpack.c.bf16 %v4727_v34, %v4726_v35  ;;  %v4651_v34 = vld [vmem:[%s9602_s7 + $0x1a8] sm:$0xff] }
  0x65   :  { %5475 = vmatprep.mubr.f32.mxu0 %v200_v62 }
  0x66   :  { %9654 = vst [vmem:[#allocation5_spill] sm:$0xff] %v8010_v61 }
  0x68   :  { %5476 = vmatmul.mubr.f32.gmra.mrb[34].mxu0 %v201_v3 }
  0x69   :  { %5510 = vmatprep.mubr.f32.mxu0 %v7262_v5 }
  0x6c   :  { %5511 = vmatmul.mubr.f32.vlgmr.msra.gmra.mrb[36].mxu0 %v7262_v5 }
  0x6d   :  { %6545 = vmatpush3.bf16.msra.mxu0 %v6542_v7 }
  0x6e   :  { %6547 = vmatprep.subr.bf16.mxu0 %v6546_v54 }
  0x71   :  { %6549 = vmatpush3.bf16.msra.mxu0 %v6546_v54 }
  0x72   :  { %6551 = vmatprep.subr.bf16.mxu0 %v6550_v8 }
  0x75   :  { %6553 = vmatpush3.bf16.msra.mxu0 %v6550_v8 }
  0x76   :  { %6555 = vmatprep.subr.bf16.mxu0 %v6554_v48 }
  0x79   :  { %6557 = vmatpush3.bf16.msra.mxu0 %v6554_v48 }
  0x7a   :  { %6559 = vmatprep.subr.bf16.mxu0 %v6558_v51 }
  0x7d   :  { %6561 = vmatpush3.bf16.msra.mxu0 %v6558_v51 }
  0x7e   :  { %6563 = vmatprep.subr.bf16.mxu0 %v6562_v19 }
  0x81   :  { %6565 = vmatpush3.bf16.msra.mxu0 %v6562_v19 }
  0x82   :  { %6567 = vmatprep.subr.bf16.mxu0 %v6566_v55 }
  0x85   :  { %6569 = vmatpush3.bf16.msra.mxu0 %v6566_v55 }
  0x86   :  { %6571 = vmatprep.subr.bf16.mxu0 %v6570_v57  ;;  %v634_v0 = vpop.permute.xlu1 %633 }
  0x87   :  { %v624_v1 = vpop.permute.xlu0 %623 }
  0x89   :  { %6573 = vmatpush3.bf16.msra.mxu0 %v6570_v57  ;;  %v6610_v57 = vpack.c.bf16 %v4649_v50, %v4648_v18 }
  0x8a   :  { %v639_v28 = vpop.permute.xlu1 %638  ;;  %6767 = vmatprep.subr.bf16.mxu0 %v8010_v61 }
  0x8b   :  { %v629_v29 = vpop.permute.xlu0 %628 }
  0x8e   :  { %v649_v2 = vpop.permute.xlu1 %648 }
  0x8f   :  { %v8000_v10 = vpop.permute.xlu0 %643 }
  0x92   :  { %v8008_v11 = vpop.permute.xlu1 %658 }
  0x93   :  { %v8012_v62 = vpop.permute.xlu0 %653 }
  0x96   :  { %v8015_v3 = vpop.permute.xlu1 %668 }
  0x97   :  { %v8017_v63 = vpop.permute.xlu0 %663 }
  0x9a   :  { %v8030_v31 = vpop.permute.xlu1 %678 }
  0x9b   :  { %v8033_v9 = vpop.permute.xlu0 %673 }
  0x9e   :  { %v8040_v26 = vpop.permute.xlu1 %688 }
  0x9f   :  { %v8043_v38 = vpop.permute.xlu0 %683 }
  0xa2   :  { %v8056_v51 = vpop.permute.xlu1 %698 }
  0xa3   :  { %v8059_v19 = vpop.permute.xlu0 %693 }
  0xf7   :  { %v5426_v17 = vpop.f32.mrb[0].mxu0 }
  0xf8   :  { %v471_v49 = vmul.f32 %v5426_v17, %v8022_v4  ;;  %v284_v42 = vpop.f32.mrb[1].mxu0 }
  0xf9   :  { %v470_v16 = vmul.f32 %v8022_v4, %v284_v42 }
  0xfa   :  { %v514_v36 = vadd.f32 %v8027_v45, %v471_v49 }
  0xfb   :  { %v513_v22 = vadd.f32 %v8027_v45, %v470_v16  ;;  %v5429_v23 = vpop.f32.mrb[2].mxu0  ;;  %v8075_v16 = vpop.permute.xlu1 %708 }
  0xfc   :  { %v550_v58 = vmax.f32 %v514_v36, 0.0  ;;  %v473_v20 = vmul.f32 %v5429_v23, %v8022_v4  ;;  %v294_v6 = vpop.f32.mrb[3].mxu0 }
  0xfd   :  { %v549_v5 = vmax.f32 %v513_v22, 0.0  ;;  %v472_v24 = vmul.f32 %v8022_v4, %v294_v6 }
  0xfe   :  { %v802_v37 = vmul.f32 %v629_v29, %v550_v58  ;;  %v516_v25 = vadd.f32 %v8027_v45, %v473_v20  ;;  %v4652_v20 = vld [vmem:[%s9602_s7 + $0x1b0] sm:$0xff] }
  0xff   :  { %v801_v21 = vmul.f32 %v624_v1, %v549_v5  ;;  %v515_v44 = vadd.f32 %v8027_v45, %v472_v24  ;;  %v5432_v32 = vpop.f32.mrb[4].mxu0 }
 0x100   :  { %844 = vst [vmem:[#allocation2 + $0x20] sm:$0xff] %v802_v37  ;;  %v552_v46 = vmax.f32 %v516_v25, 0.0  ;;  %v475_v13 = vmul.f32 %v5432_v32, %v8022_v4  ;;  %v304_v39 = vpop.f32.mrb[5].mxu0 }
 0x101   :  { %843 = vst [vmem:[#allocation2 + $0x18] sm:$0xff] %v801_v21  ;;  %v551_v7 = vmax.f32 %v515_v44, 0.0  ;;  %v474_v14 = vmul.f32 %v8022_v4, %v304_v39  ;;  %5513 = vmatprep.mubr.f32.mxu0 %v801_v21 }
 0x102   :  { %v804_v27 = vmul.f32 %v639_v28, %v552_v46  ;;  %v518_v54 = vadd.f32 %v8027_v45, %v475_v13  ;;  %5514 = vmatmul.mubr.f32.gmra.mrb[38].mxu0 %v802_v37 }
 0x103   :  { %v803_v41 = vmul.f32 %v634_v0, %v551_v7  ;;  %v517_v56 = vadd.f32 %v8027_v45, %v474_v14  ;;  %v5435_v8 = vpop.f32.mrb[6].mxu0  ;;  %v4650_v0 = vld [vmem:[%s9602_s7 + $0x1a0] sm:$0xff] }
 0x104   :  { %846 = vst [vmem:[#allocation2 + $0x30] sm:$0xff] %v804_v27  ;;  %v554_v30 = vmax.f32 %v518_v54, 0.0  ;;  %v477_v43 = vmul.f32 %v5435_v8, %v8022_v4  ;;  %v314_v48 = vpop.f32.mrb[7].mxu0  ;;  %v6614_v58 = vpack.c.bf16 %v4651_v34, %v4650_v0  ;;  %v4654_v14 = vld [vmem:[%s9602_s7 + $0x1c0] sm:$0xff]  ;;  %v8100_v8 = vpop.permute.xlu1 %718 }
 0x105   :  { %845 = vst [vmem:[#allocation2 + $0x28] sm:$0xff] %v803_v41  ;;  %v553_v15 = vmax.f32 %v517_v56, 0.0  ;;  %v476_v33 = vmul.f32 %v8022_v4, %v314_v48  ;;  %5516 = vmatprep.mubr.f32.mxu0 %v803_v41 }
 0x106   :  { %v806_v52 = vmul.f32 %v649_v2, %v554_v30  ;;  %v520_v53 = vadd.f32 %v8027_v45, %v477_v43  ;;  %5517 = vmatmul.mubr.f32.gmra.mrb[40].mxu0 %v804_v27 }
 0x107   :  { %v805_v55 = vmul.f32 %v8000_v10, %v553_v15  ;;  %v519_v59 = vadd.f32 %v8027_v45, %v476_v33  ;;  %v5438_v60 = vpop.f32.mrb[8].mxu0 }
 0x108   :  { %848 = vst [vmem:[#allocation2 + $0x40] sm:$0xff] %v806_v52  ;;  %v556_v1 = vmax.f32 %v520_v53, 0.0  ;;  %v479_v28 = vmul.f32 %v5438_v60, %v8022_v4  ;;  %v324_v29 = vpop.f32.mrb[9].mxu0  ;;  %v1475_v35 = vld [vmem:[#allocation2 + $0x11] sm:$0xff]  ;;  %v1476_v2 = vld [vmem:[#allocation2 + $0x19] sm:$0xff] }
 0x109   :  { %847 = vst [vmem:[#allocation2 + $0x38] sm:$0xff] %v805_v55  ;;  %v555_v10 = vmax.f32 %v519_v59, 0.0  ;;  %v478_v17 = vmul.f32 %v8022_v4, %v324_v29  ;;  %5683 = vmatmul.mubr.f32.vlgmr.msra.gmra.mrb[0].mxu1 %v1475_v35  ;;  %5519 = vmatprep.mubr.f32.mxu0 %v805_v55  ;;  %v4656_v55 = vld [vmem:[%s9602_s7 + $0x1d0] sm:$0xff] }
 0x10a   :  { %v808_v49 = vmul.f32 %v8008_v11, %v556_v1  ;;  %v522_v42 = vadd.f32 %v8027_v45, %v479_v28  ;;  %6609 = vmatpush3.bf16.msra.mxu1 %v7949_v47  ;;  %5685 = vmatprep.mubr.f32.mxu1 %v1476_v2  ;;  %v8082_v11 = vpop.permute.xlu0 %703  ;;  %v8119_v2 = vpop.permute.xlu1 %728 }
 0x10b   :  { %v807_v36 = vmul.f32 %v8012_v62, %v555_v10  ;;  %v521_v22 = vadd.f32 %v8027_v45, %v478_v17  ;;  %v5441_v23 = vpop.f32.mrb[10].mxu0  ;;  %6611 = vmatprep.subr.bf16.mxu1 %v6610_v57  ;;  %5520 = vmatmul.mubr.f32.gmra.mrb[42].mxu0 %v806_v52  ;;  %v4653_v62 = vld [vmem:[%s9602_s7 + $0x1b8] sm:$0xff] }
 0x10c   :  { %850 = vst [vmem:[#allocation2 + $0x50] sm:$0xff] %v808_v49  ;;  %v558_v6 = vmax.f32 %v522_v42, 0.0  ;;  %v481_v47 = vmul.f32 %v5441_v23, %v8022_v4  ;;  %v334_v5 = vpop.f32.mrb[11].mxu0  ;;  %v1477_v24 = vld [vmem:[#allocation2 + $0x21] sm:$0xff]  ;;  %v1478_v37 = vld [vmem:[#allocation2 + $0x29] sm:$0xff]  ;;  %v6618_v7 = vpack.c.bf16 %v4653_v62, %v4652_v20 }
 0x10d   :  { %849 = vst [vmem:[#allocation2 + $0x48] sm:$0xff] %v807_v36  ;;  %v557_v25 = vmax.f32 %v521_v22, 0.0  ;;  %v480_v21 = vmul.f32 %v8022_v4, %v334_v5  ;;  %5686 = vmatmul.mubr.f32.gmra.mrb[2].mxu1 %v1477_v24  ;;  %5522 = vmatprep.mubr.f32.mxu0 %v807_v36  ;;  %v4658_v42 = vld [vmem:[%s9602_s7 + $0x1e0] sm:$0xff] }
 0x10e   :  { %v810_v44 = vmul.f32 %v8015_v3, %v558_v6  ;;  %v524_v32 = vadd.f32 %v8027_v45, %v481_v47  ;;  %5688 = vmatprep.mubr.f32.mxu1 %v1478_v37  ;;  %6613 = vmatpush3.bf16.msra.mxu1 %v6610_v57  ;;  %v8103_v48 = vpop.permute.xlu0 %713 }
 0x10f   :  { %v809_v46 = vmul.f32 %v8017_v63, %v557_v25  ;;  %v523_v13 = vadd.f32 %v8027_v45, %v480_v21  ;;  %v5444_v39 = vpop.f32.mrb[12].mxu0  ;;  %5523 = vmatmul.mubr.f32.gmra.mrb[44].mxu0 %v808_v49  ;;  %6615 = vmatprep.subr.bf16.mxu1 %v6614_v58  ;;  %v4655_v63 = vld [vmem:[%s9602_s7 + $0x1c8] sm:$0xff] }
 0x110   :  { %852 = vst [vmem:[#allocation2 + $0x60] sm:$0xff] %v810_v44  ;;  %v560_v27 = vmax.f32 %v524_v32, 0.0  ;;  %v483_v3 = vmul.f32 %v5444_v39, %v8022_v4  ;;  %v344_v54 = vpop.f32.mrb[13].mxu0  ;;  %v1479_v41 = vld [vmem:[#allocation2 + $0x31] sm:$0xff]  ;;  %v1480_v56 = vld [vmem:[#allocation2 + $0x39] sm:$0xff]  ;;  %v6622_v53 = vpack.c.bf16 %v4655_v63, %v4654_v14 }
 0x111   :  { %851 = vst [vmem:[#allocation2 + $0x58] sm:$0xff] %v809_v46  ;;  %v559_v30 = vmax.f32 %v523_v13, 0.0  ;;  %v482_v43 = vmul.f32 %v8022_v4, %v344_v54  ;;  %5689 = vmatmul.mubr.f32.gmra.mrb[4].mxu1 %v1479_v41  ;;  %5525 = vmatprep.mubr.f32.mxu0 %v809_v46 }
 0x112   :  { %v812_v18 = vmul.f32 %v8030_v31, %v560_v27  ;;  %v526_v50 = vadd.f32 %v8027_v45, %v483_v3  ;;  %5691 = vmatprep.mubr.f32.mxu1 %v1480_v56  ;;  %6617 = vmatpush3.bf16.msra.mxu1 %v6614_v58  ;;  %v8126_v36 = vpop.permute.xlu0 %723 }
 0x113   :  { %v811_v15 = vmul.f32 %v8033_v9, %v559_v30  ;;  %v525_v33 = vadd.f32 %v8027_v45, %v482_v43  ;;  %v5447_v52 = vpop.f32.mrb[14].mxu0  ;;  %5526 = vmatmul.mubr.f32.gmra.mrb[46].mxu0 %v810_v44  ;;  %6619 = vmatprep.subr.bf16.mxu1 %v6618_v7  ;;  %v4657_v9 = vld [vmem:[%s9602_s7 + $0x1d8] sm:$0xff]  ;;  %v4660_v44 = vld [vmem:[%s9602_s7 + $0x1f0] sm:$0xff] }
 0x114   :  { %854 = vst [vmem:[#allocation2 + $0x70] sm:$0xff] %v812_v18  ;;  %v562_v59 = vmax.f32 %v526_v50, 0.0  ;;  %v485_v31 = vmul.f32 %v5447_v52, %v8022_v4  ;;  %v354_v60 = vpop.f32.mrb[15].mxu0  ;;  %v1481_v57 = vld [vmem:[#allocation2 + $0x41] sm:$0xff]  ;;  %v1482_v0 = vld [vmem:[#allocation2 + $0x49] sm:$0xff]  ;;  %v6626_v49 = vpack.c.bf16 %v4657_v9, %v4656_v55 }
 0x115   :  { %853 = vst [vmem:[#allocation2 + $0x68] sm:$0xff] %v811_v15  ;;  %v561_v1 = vmax.f32 %v525_v33, 0.0  ;;  %v484_v28 = vmul.f32 %v8022_v4, %v354_v60  ;;  %5692 = vmatmul.mubr.f32.gmra.mrb[6].mxu1 %v1481_v57  ;;  %5528 = vmatprep.mubr.f32.mxu0 %v811_v15 }
 0x116   :  { %v814_v29 = vmul.f32 %v8040_v26, %v562_v59  ;;  %v528_v35 = vadd.f32 %v8027_v45, %v485_v31  ;;  %5694 = vmatprep.mubr.f32.mxu1 %v1482_v0  ;;  %6621 = vmatpush3.bf16.msra.mxu1 %v6618_v7  ;;  %v8144_v7 = vpop.permute.xlu1 %738  ;;  %v8147_v3 = vpop.permute.xlu0 %733 }
 0x117   :  { %v813_v34 = vmul.f32 %v8043_v38, %v561_v1  ;;  %v527_v10 = vadd.f32 %v8027_v45, %v484_v28  ;;  %v5450_v17 = vpop.f32.mrb[16].mxu0  ;;  %5529 = vmatmul.mubr.f32.gmra.mrb[48].mxu0 %v812_v18  ;;  %6623 = vmatprep.subr.bf16.mxu1 %v6622_v53  ;;  %v4659_v38 = vld [vmem:[%s9602_s7 + $0x1e8] sm:$0xff]  ;;  %v4662_v18 = vld [vmem:[%s9602_s7 + $0x200] sm:$0xff] }
 0x118   :  { %856 = vst [vmem:[#allocation2 + $0x80] sm:$0xff] %v814_v29  ;;  %v564_v26 = vmax.f32 %v528_v35, 0.0  ;;  %v487_v22 = vmul.f32 %v5450_v17, %v8022_v4  ;;  %v364_v23 = vpop.f32.mrb[17].mxu0  ;;  %v1483_v58 = vld [vmem:[#allocation2 + $0x51] sm:$0xff]  ;;  %v1484_v20 = vld [vmem:[#allocation2 + $0x59] sm:$0xff]  ;;  %v6630_v21 = vpack.c.bf16 %v4659_v38, %v4658_v42 }
 0x119   :  { %855 = vst [vmem:[#allocation2 + $0x78] sm:$0xff] %v813_v34  ;;  %v563_v6 = vmax.f32 %v527_v10, 0.0  ;;  %v486_v47 = vmul.f32 %v8022_v4, %v364_v23  ;;  %5695 = vmatmul.mubr.f32.gmra.mrb[8].mxu1 %v1483_v58  ;;  %5531 = vmatprep.mubr.f32.mxu0 %v813_v34 }
 0x11a   :  { %v816_v5 = vmul.f32 %v8056_v51, %v564_v26  ;;  %v530_v24 = vadd.f32 %v8027_v45, %v487_v22  ;;  %5697 = vmatprep.mubr.f32.mxu1 %v1484_v20  ;;  %6625 = vmatpush3.bf16.msra.mxu1 %v6622_v53  ;;  %v749_v60 = vpop.permute.xlu1 %748  ;;  %v744_v28 = vpop.permute.xlu0 %743 }
 0x11b   :  { %v815_v37 = vmul.f32 %v8059_v19, %v563_v6  ;;  %v529_v62 = vadd.f32 %v8027_v45, %v486_v47  ;;  %v5453_v25 = vpop.f32.mrb[18].mxu0  ;;  %5532 = vmatmul.mubr.f32.gmra.mrb[50].mxu0 %v814_v29  ;;  %6627 = vmatprep.subr.bf16.mxu1 %v6626_v49  ;;  %v4661_v19 = vld [vmem:[%s9602_s7 + $0x1f8] sm:$0xff] }
 0x11c   :  { %858 = vst [vmem:[#allocation2 + $0x90] sm:$0xff] %v816_v5  ;;  %v566_v32 = vmax.f32 %v530_v24, 0.0  ;;  %v489_v51 = vmul.f32 %v5453_v25, %v8022_v4  ;;  %v374_v46 = vpop.f32.mrb[19].mxu0  ;;  %v1485_v13 = vld [vmem:[#allocation2 + $0x61] sm:$0xff]  ;;  %v1486_v39 = vld [vmem:[#allocation2 + $0x69] sm:$0xff]  ;;  %v6634_v43 = vpack.c.bf16 %v4661_v19, %v4660_v44 }
 0x11d   :  { %857 = vst [vmem:[#allocation2 + $0x88] sm:$0xff] %v815_v37  ;;  %v565_v14 = vmax.f32 %v529_v62, 0.0  ;;  %v488_v27 = vmul.f32 %v8022_v4, %v374_v46  ;;  %5698 = vmatmul.mubr.f32.gmra.mrb[10].mxu1 %v1485_v13  ;;  %5534 = vmatprep.mubr.f32.mxu0 %v815_v37 }
 0x11e   :  { %v818_v54 = vmul.f32 %v8075_v16, %v566_v32  ;;  %v532_v41 = vadd.f32 %v8027_v45, %v489_v51  ;;  %5700 = vmatprep.mubr.f32.mxu1 %v1486_v39  ;;  %6629 = vmatpush3.bf16.msra.mxu1 %v6626_v49  ;;  %v759_v47 = vpop.permute.xlu1 %758  ;;  %v754_v24 = vpop.permute.xlu0 %753 }
 0x11f   :  { %v817_v56 = vmul.f32 %v8082_v11, %v565_v14  ;;  %v531_v63 = vadd.f32 %v8027_v45, %v488_v27  ;;  %v5456_v30 = vpop.f32.mrb[20].mxu0  ;;  %5535 = vmatmul.mubr.f32.gmra.mrb[52].mxu0 %v816_v5  ;;  %6631 = vmatprep.subr.bf16.mxu1 %v6630_v21  ;;  %v4663_v11 = vld [vmem:[%s9602_s7 + $0x208] sm:$0xff] }
 0x120   :  { %860 = vst [vmem:[#allocation2 + $0xa0] sm:$0xff] %v818_v54  ;;  %v568_v50 = vmax.f32 %v532_v41, 0.0  ;;  %v491_v16 = vmul.f32 %v5456_v30, %v8022_v4  ;;  %v384_v15 = vpop.f32.mrb[21].mxu0  ;;  %v8157_v33 = vld [vmem:[#allocation2 + $0x71] sm:$0xff]  ;;  %v8159_v52 = vld [vmem:[#allocation2 + $0x79] sm:$0xff]  ;;  %v8171_v1 = vpack.c.bf16 %v4663_v11, %v4662_v18 }
 0x121   :  { %859 = vst [vmem:[#allocation2 + $0x98] sm:$0xff] %v817_v56  ;;  %v567_v53 = vmax.f32 %v531_v63, 0.0  ;;  %v490_v55 = vmul.f32 %v8022_v4, %v384_v15  ;;  %5701 = vmatmul.mubr.f32.gmra.mrb[12].mxu1 %v8157_v33  ;;  %5537 = vmatprep.mubr.f32.mxu0 %v817_v56 }
 0x122   :  { %v820_v59 = vmul.f32 %v8100_v8, %v568_v50  ;;  %v534_v31 = vadd.f32 %v8027_v45, %v491_v16  ;;  %5703 = vmatprep.mubr.f32.mxu1 %v8159_v52  ;;  %6633 = vmatpush3.bf16.msra.mxu1 %v6630_v21  ;;  %v764_v63 = vpop.permute.xlu0 %763 }
 0x123   :  { %v819_v57 = vmul.f32 %v8103_v48, %v567_v53  ;;  %v533_v0 = vadd.f32 %v8027_v45, %v490_v55  ;;  %v5459_v9 = vpop.f32.mrb[22].mxu0  ;;  %5538 = vmatmul.mubr.f32.gmra.mrb[54].mxu0 %v818_v54  ;;  %6635 = vmatprep.subr.bf16.mxu1 %v6634_v43 }
 0x124   :  { %862 = vst [vmem:[#allocation2 + $0xb0] sm:$0xff] %v820_v59  ;;  %v570_v29 = vmax.f32 %v534_v31, 0.0  ;;  %v493_v8 = vmul.f32 %v5459_v9, %v8022_v4  ;;  %v394_v35 = vpop.f32.mrb[23].mxu0  ;;  %v8174_v34 = vld [vmem:[#allocation2 + $0x81] sm:$0xff]  ;;  %v8176_v10 = vld [vmem:[#allocation2 + $0x89] sm:$0xff] }
 0x125   :  { %861 = vst [vmem:[#allocation2 + $0xa8] sm:$0xff] %v819_v57  ;;  %v569_v17 = vmax.f32 %v533_v0, 0.0  ;;  %v492_v48 = vmul.f32 %v8022_v4, %v394_v35  ;;  %5704 = vmatmul.mubr.f32.gmra.mrb[14].mxu1 %v8174_v34  ;;  %5540 = vmatprep.mubr.f32.mxu0 %v819_v57 }
 0x126   :  { %v822_v49 = vmul.f32 %v8119_v2, %v570_v29  ;;  %v536_v42 = vadd.f32 %v8027_v45, %v493_v8  ;;  %5706 = vmatprep.mubr.f32.mxu1 %v8176_v10  ;;  %6637 = vmatpush3.bf16.msra.mxu1 %v6634_v43 }
 0x127   :  { %v821_v26 = vmul.f32 %v8126_v36, %v569_v17  ;;  %v535_v22 = vadd.f32 %v8027_v45, %v492_v48  ;;  %v5462_v23 = vpop.f32.mrb[24].mxu0  ;;  %5541 = vmatmul.mubr.f32.gmra.mrb[56].mxu0 %v820_v59  ;;  %6639 = vmatprep.subr.bf16.mxu1 %v8171_v1  ;;  %v774_v48 = vpop.permute.xlu0 %773 }
 0x128   :  { %864 = vst [vmem:[#allocation2 + $0xc0] sm:$0xff] %v822_v49  ;;  %v572_v58 = vmax.f32 %v536_v42, 0.0  ;;  %v495_v20 = vmul.f32 %v5462_v23, %v8022_v4  ;;  %v404_v38 = vpop.f32.mrb[25].mxu0  ;;  %v8187_v6 = vld [vmem:[#allocation2 + $0x91] sm:$0xff]  ;;  %v8189_v2 = vld [vmem:[#allocation2 + $0x99] sm:$0xff] }
 0x129   :  { %863 = vst [vmem:[#allocation2 + $0xb8] sm:$0xff] %v821_v26  ;;  %v571_v5 = vmax.f32 %v535_v22, 0.0  ;;  %v494_v36 = vmul.f32 %v8022_v4, %v404_v38  ;;  %5707 = vmatmul.mubr.f32.gmra.mrb[16].mxu1 %v8187_v6  ;;  %5543 = vmatprep.mubr.f32.mxu0 %v821_v26 }
 0x12a   :  { %v824_v37 = vmul.f32 %v8144_v7, %v572_v58  ;;  %v538_v62 = vadd.f32 %v8027_v45, %v495_v20  ;;  %5709 = vmatprep.mubr.f32.mxu1 %v8189_v2 }
 0x12b   :  { %v823_v25 = vmul.f32 %v8147_v3, %v571_v5  ;;  %v537_v21 = vadd.f32 %v8027_v45, %v494_v36  ;;  %v5465_v44 = vpop.f32.mrb[26].mxu0  ;;  %5544 = vmatmul.mubr.f32.gmra.mrb[58].mxu0 %v822_v49  ;;  %v769_v3 = vpop.permute.xlu1 %768 }
 0x12c   :  { %866 = vst [vmem:[#allocation2 + $0xd0] sm:$0xff] %v824_v37  ;;  %v574_v32 = vmax.f32 %v538_v62, 0.0  ;;  %v497_v51 = vmul.f32 %v5465_v44, %v8022_v4  ;;  %v414_v46 = vpop.f32.mrb[27].mxu0  ;;  %v8199_v13 = vld [vmem:[#allocation2 + $0xa1] sm:$0xff]  ;;  %v8201_v39 = vld [vmem:[#allocation2 + $0xa9] sm:$0xff] }
 0x12d   :  { %865 = vst [vmem:[#allocation2 + $0xc8] sm:$0xff] %v823_v25  ;;  %v573_v19 = vmax.f32 %v537_v21, 0.0  ;;  %v496_v7 = vmul.f32 %v8022_v4, %v414_v46  ;;  %5710 = vmatmul.mubr.f32.gmra.mrb[18].mxu1 %v8199_v13  ;;  %5546 = vmatprep.mubr.f32.mxu0 %v823_v25 }
 0x12e   :  { %v826_v14 = vmul.f32 %v749_v60, %v574_v32  ;;  %v540_v27 = vadd.f32 %v8027_v45, %v497_v51  ;;  %5712 = vmatprep.mubr.f32.mxu1 %v8201_v39  ;;  %v784_v51 = vpop.permute.xlu0 %783 }
 0x12f   :  { %v825_v54 = vmul.f32 %v744_v28, %v573_v19  ;;  %v539_v41 = vadd.f32 %v8027_v45, %v496_v7  ;;  %v5468_v56 = vpop.f32.mrb[28].mxu0  ;;  %5547 = vmatmul.mubr.f32.gmra.mrb[60].mxu0 %v824_v37  ;;  %v779_v8 = vpop.permute.xlu1 %778 }
 0x130   :  { %868 = vst [vmem:[#allocation2 + $0xe0] sm:$0xff] %v826_v14  ;;  %v576_v30 = vmax.f32 %v540_v27, 0.0  ;;  %v499_v43 = vmul.f32 %v5468_v56, %v8022_v4  ;;  %v424_v18 = vpop.f32.mrb[29].mxu0  ;;  %v8209_v50 = vld [vmem:[#allocation2 + $0xb1] sm:$0xff]  ;;  %v8211_v16 = vld [vmem:[#allocation2 + $0xb9] sm:$0xff] }
 0x131   :  { %867 = vst [vmem:[#allocation2 + $0xd8] sm:$0xff] %v825_v54  ;;  %v575_v15 = vmax.f32 %v539_v41, 0.0  ;;  %v498_v11 = vmul.f32 %v8022_v4, %v424_v18  ;;  %5713 = vmatmul.mubr.f32.gmra.mrb[20].mxu1 %v8209_v50  ;;  %5549 = vmatprep.mubr.f32.mxu0 %v825_v54 }
 0x132   :  { %v828_v53 = vmul.f32 %v759_v47, %v576_v30  ;;  %v542_v55 = vadd.f32 %v8027_v45, %v499_v43  ;;  %5715 = vmatprep.mubr.f32.mxu1 %v8211_v16 }
 0x133   :  { %v827_v59 = vmul.f32 %v754_v24, %v575_v15  ;;  %v541_v31 = vadd.f32 %v8027_v45, %v498_v11  ;;  %v5471_v60 = vpop.f32.mrb[30].mxu0  ;;  %5550 = vmatmul.mubr.f32.gmra.mrb[62].mxu0 %v826_v14  ;;  %v789_v25 = vpop.permute.xlu1 %788 }
 0x134   :  { %870 = vst [vmem:[#allocation2 + $0xf0] sm:$0xff] %v828_v53  ;;  %v578_v57 = vmax.f32 %v542_v55, 0.0  ;;  %v501_v0 = vmul.f32 %v5471_v60, %v8022_v4  ;;  %v434_v9 = vpop.f32.mrb[31].mxu0  ;;  %v8219_v28 = vld [vmem:[#allocation2 + $0xc1] sm:$0xff]  ;;  %v8221_v29 = vld [vmem:[#allocation2 + $0xc9] sm:$0xff]  ;;  %v794_v55 = vpop.permute.xlu0 %793 }
 0x135   :  { %869 = vst [vmem:[#allocation2 + $0xe8] sm:$0xff] %v827_v59  ;;  %v577_v35 = vmax.f32 %v541_v31, 0.0  ;;  %v500_v17 = vmul.f32 %v8022_v4, %v434_v9  ;;  %5716 = vmatmul.mubr.f32.gmra.mrb[22].mxu1 %v8219_v28  ;;  %5552 = vmatprep.mubr.f32.mxu0 %v827_v59  ;;  %v4728_v59 = vld [vmem:[%s9602_s7 + $0x410] sm:$0xff]  ;;  %v4729_v31 = vld [vmem:[%s9602_s7 + $0x418] sm:$0xff] }
 0x136   :  { %v830_v49 = vmul.f32 %v769_v3, %v578_v57  ;;  %v544_v42 = vadd.f32 %v8027_v45, %v501_v0  ;;  %5718 = vmatprep.mubr.f32.mxu1 %v8221_v29  ;;  %v880_v9 = vld [vmem:[#allocation2 + $0xf] sm:$0xff] }
 0x137   :  { %v8227_v26 = vmul.f32 %v764_v63, %v577_v35  ;;  %v543_v22 = vadd.f32 %v8027_v45, %v500_v17  ;;  %v5474_v23 = vpop.f32.mrb[32].mxu0  ;;  %5553 = vmatmul.mubr.f32.gmra.mrb[64].mxu0 %v828_v53  ;;  %v799_v15 = vpop.permute.xlu1 %798  ;;  %v879_v53 = vld [vmem:[#allocation2 + $0x7] sm:$0xff] }
 0x138   :  { %872 = vst [vmem:[#allocation2 + $0x100] sm:$0xff] %v830_v49  ;;  %v580_v58 = vmax.f32 %v544_v42, 0.0  ;;  %v503_v20 = vmul.f32 %v5474_v23, %v8022_v4  ;;  %v444_v38 = vpop.f32.mrb[33].mxu0  ;;  %v8231_v47 = vld [vmem:[#allocation2 + $0xd1] sm:$0xff]  ;;  %v8233_v5 = vld [vmem:[#allocation2 + $0xd9] sm:$0xff]  ;;  %v4731_v17 = vld [vmem:[%s9602_s7 + $0x428] sm:$0xff] }
 0x139   :  { %871 = vst [vmem:[#allocation2 + $0xf8] sm:$0xff] %v8227_v26  ;;  %v579_v36 = vmax.f32 %v543_v22, 0.0  ;;  %v502_v24 = vmul.f32 %v8022_v4, %v444_v38  ;;  %5719 = vmatmul.mubr.f32.gmra.mrb[24].mxu1 %v8231_v47  ;;  %5555 = vmatprep.mubr.f32.mxu0 %v8227_v26  ;;  %v4730_v35 = vld [vmem:[%s9602_s7 + $0x420] sm:$0xff] }
 0x13a   :  { %v8239_v37 = vmul.f32 %v779_v8, %v580_v58  ;;  %v546_v62 = vadd.f32 %v8027_v45, %v503_v20  ;;  %5721 = vmatprep.mubr.f32.mxu1 %v8233_v5  ;;  %v8291_v8 = vpack.c.bf16 %v4729_v31, %v4728_v59  ;;  %v8307_v22 = vpack.c.bf16 %v4731_v17, %v4730_v35  ;;  %v1809_v23 = vld [vmem:[#allocation2 + $0x1f] sm:$0xff]  ;;  %v4732_v58 = vld [vmem:[%s9602_s7 + $0x430] sm:$0xff]  ;;  %v8316_v38 = vld [vmem:[#allocation2 + $0x27] sm:$0xff] }
 0x13b   :  { %v8243_v21 = vmul.f32 %v774_v48, %v579_v36  ;;  %v545_v44 = vadd.f32 %v8027_v45, %v502_v24  ;;  %v5477_v32 = vpop.f32.mrb[34].mxu0  ;;  %5556 = vmatmul.mubr.f32.gmra.mrb[66].mxu0 %v830_v49  ;;  %v1808_v48 = vld [vmem:[#allocation2 + $0x17] sm:$0xff]  ;;  %v8380_v59 = vld [vmem:[#allocation2 + $0x4f] sm:$0xff]  ;;  %v4738_v31 = vld [vmem:[%s9602_s7 + $0x460] sm:$0xff] }
 0x13c   :  { %874 = vst [vmem:[#allocation2 + $0x110] sm:$0xff] %v8239_v37  ;;  %v582_v46 = vmax.f32 %v546_v62, 0.0  ;;  %v505_v19 = vmul.f32 %v5477_v32, %v8022_v4  ;;  %v454_v7 = vpop.f32.mrb[35].mxu0  ;;  %v8248_v14 = vld [vmem:[#allocation2 + $0xe1] sm:$0xff]  ;;  %v8250_v27 = vld [vmem:[#allocation2 + $0xe9] sm:$0xff]  ;;  %9655 = vst [vmem:[#allocation6_spill] sm:$0xff] %v8291_v8 }
 0x13d   :  { %873 = vst [vmem:[#allocation2 + $0x108] sm:$0xff] %v8243_v21  ;;  %v581_v3 = vmax.f32 %v545_v44, 0.0  ;;  %v504_v54 = vmul.f32 %v8022_v4, %v454_v7  ;;  %5722 = vmatmul.mubr.f32.gmra.mrb[26].mxu1 %v8248_v14  ;;  %5558 = vmatprep.mubr.f32.mxu0 %v8243_v21  ;;  %9656 = vst [vmem:[#allocation7_spill] sm:$0xff] %v8307_v22  ;;  %v4733_v20 = vld [vmem:[%s9602_s7 + $0x438] sm:$0xff]  ;;  %v4664_v24 = vld [vmem:[%s9602_s7 + $0x210] sm:$0xff] }
 0x13e   :  { %v8256_v41 = vmul.f32 %v789_v25, %v582_v46  ;;  %v548_v56 = vadd.f32 %v8027_v45, %v505_v19  ;;  %5724 = vmatprep.mubr.f32.mxu1 %v8250_v27  ;;  %v4665_v62 = vld [vmem:[%s9602_s7 + $0x218] sm:$0xff]  ;;  %v8330_v25 = vpack.c.bf16 %v4733_v20, %v4732_v58  ;;  %v8332_v44 = vld [vmem:[#allocation2 + $0x2f] sm:$0xff]  ;;  %v4734_v32 = vld [vmem:[%s9602_s7 + $0x440] sm:$0xff] }
 0x13f   :  { %v8260_v63 = vmul.f32 %v784_v51, %v581_v3  ;;  %v547_v30 = vadd.f32 %v8027_v45, %v504_v54  ;;  %5559 = vmatmul.mubr.f32.gmra.mrb[68].mxu0 %v8239_v37  ;;  %v4735_v51 = vld [vmem:[%s9602_s7 + $0x448] sm:$0xff]  ;;  %v8341_v46 = vld [vmem:[#allocation2 + $0x37] sm:$0xff]  ;;  %v6642_v19 = vpack.c.bf16 %v4665_v62, %v4664_v24  ;;  %v4666_v7 = vld [vmem:[%s9602_s7 + $0x220] sm:$0xff] }
 0x140   :  { %876 = vst [vmem:[#allocation2 + $0x120] sm:$0xff] %v8256_v41  ;;  %v584_v43 = vmax.f32 %v548_v56, 0.0  ;;  %v8265_v4 = vld [vmem:[#allocation2 + $0xf1] sm:$0xff]  ;;  %v8267_v18 = vld [vmem:[#allocation2 + $0xf9] sm:$0xff]  ;;  %9657 = vst [vmem:[#allocation8_spill] sm:$0xff] %v8330_v25  ;;  %v8352_v54 = vpack.c.bf16 %v4735_v51, %v4734_v32 }
 0x141   :  { %875 = vst [vmem:[#allocation2 + $0x118] sm:$0xff] %v8260_v63  ;;  %v583_v11 = vmax.f32 %v547_v30, 0.0  ;;  %5725 = vmatmul.mubr.f32.gmra.mrb[28].mxu1 %v8265_v4  ;;  %5561 = vmatprep.mubr.f32.mxu0 %v8260_v63  ;;  %v4667_v3 = vld [vmem:[%s9602_s7 + $0x228] sm:$0xff]  ;;  %v8356_v56 = vld [vmem:[#allocation2 + $0x3f] sm:$0xff]  ;;  %v4736_v30 = vld [vmem:[%s9602_s7 + $0x450] sm:$0xff] }
 0x142   :  { %v8272_v45 = vmul.f32 %v799_v15, %v584_v43  ;;  %5727 = vmatprep.mubr.f32.mxu1 %v8267_v18  ;;  %9658 = vst [vmem:[#allocation9_spill] sm:$0xff] %v8352_v54  ;;  %v4737_v43 = vld [vmem:[%s9602_s7 + $0x458] sm:$0xff]  ;;  %v8365_v15 = vld [vmem:[#allocation2 + $0x47] sm:$0xff]  ;;  %v4740_v24 = vld [vmem:[%s9602_s7 + $0x470] sm:$0xff] }
 0x143   :  { %v8281_v60 = vmul.f32 %v794_v55, %v583_v11  ;;  %5562 = vmatmul.mubr.f32.gmra.mrb[70].mxu0 %v8256_v41  ;;  %v6646_v11 = vpack.c.bf16 %v4667_v3, %v4666_v7  ;;  %v8377_v55 = vpack.c.bf16 %v4737_v43, %v4736_v30  ;;  %v8389_v35 = vld [vmem:[#allocation2 + $0x57] sm:$0xff]  ;;  %v8404_v20 = vld [vmem:[#allocation2 + $0x5f] sm:$0xff]  ;;  %v8413_v32 = vld [vmem:[#allocation2 + $0x67] sm:$0xff] }
 0x144   :  { %878 = vst [vmem:[#allocation2 + $0x130] sm:$0xff] %v8272_v45  ;;  %v8285_v57 = vld [vmem:[#allocation2 + $0x101] sm:$0xff]  ;;  %v8287_v0 = vld [vmem:[#allocation2 + $0x109] sm:$0xff]  ;;  %5596 = vmatprep.mubr.f32.mxu0 %v879_v53  ;;  %v4669_v53 = vld [vmem:[%s9602_s7 + $0x238] sm:$0xff] }
 0x145   :  { %877 = vst [vmem:[#allocation2 + $0x128] sm:$0xff] %v8281_v60  ;;  %5728 = vmatmul.mubr.f32.gmra.mrb[30].mxu1 %v8285_v57  ;;  %9659 = vst [vmem:[#allocation10_spill] sm:$0xff] %v8377_v55  ;;  %v4741_v62 = vld [vmem:[%s9602_s7 + $0x478] sm:$0xff]  ;;  %v8428_v30 = vld [vmem:[#allocation2 + $0x6f] sm:$0xff] }
 0x146   :  { %5730 = vmatprep.mubr.f32.mxu1 %v8287_v0  ;;  %v4673_v7 = vld [vmem:[%s9602_s7 + $0x258] sm:$0xff]  ;;  %v8425_v3 = vpack.c.bf16 %v4741_v62, %v4740_v24  ;;  %v8459_v24 = vld [vmem:[#allocation2 + $0x8f] sm:$0xff]  ;;  %v8511_v40 = vld [vmem:[#allocation2 + $0xe7] sm:$0xff] }
 0x147   :  { %5597 = vmatmul.mubr.f32.vlgmr.msra.gmra.mrb[36].mxu0 %v880_v9  ;;  %v4739_v9 = vld [vmem:[%s9602_s7 + $0x468] sm:$0xff]  ;;  %v8431_v43 = vld [vmem:[#allocation2 + $0x77] sm:$0xff]  ;;  %v8508_v12 = vld [vmem:[#allocation2 + $0xdf] sm:$0xff]  ;;  %9670 = vst [vmem:[#allocation21_spill] sm:$0xff] %v8511_v40 }
 0x148   :  { %v8300_v49 = vld [vmem:[#allocation2 + $0x111] sm:$0xff]  ;;  %v8302_v42 = vld [vmem:[#allocation2 + $0x119] sm:$0xff]  ;;  %5599 = vmatprep.mubr.f32.mxu0 %v1808_v48  ;;  %6769 = vmatpush3.bf16.msra.mxu0 %v8010_v61  ;;  %v8401_v58 = vpack.c.bf16 %v4739_v9, %v4738_v31  ;;  %9661 = vst [vmem:[#allocation12_spill] sm:$0xff] %v8425_v3  ;;  %v8447_v9 = vld [vmem:[#allocation2 + $0x87] sm:$0xff] }
 0x149   :  { %5731 = vmatmul.mubr.f32.gmra.mrb[32].mxu1 %v8300_v49  ;;  %6771 = vmatprep.subr.bf16.mxu0 %v8291_v8  ;;  %v8444_v31 = vld [vmem:[#allocation2 + $0x7f] sm:$0xff]  ;;  %v8462_v62 = vld [vmem:[#allocation2 + $0x97] sm:$0xff]  ;;  %9669 = vst [vmem:[#allocation20_spill] sm:$0xff] %v8508_v12 }
 0x14a   :  { %5733 = vmatprep.mubr.f32.mxu1 %v8302_v42  ;;  %9660 = vst [vmem:[#allocation11_spill] sm:$0xff] %v8401_v58  ;;  %v8594_v61 = vld [vmem:[#allocation2 + $0x30] sm:$0xff] }
 0x14b   :  { %5600 = vmatmul.mubr.f32.gmra.mrb[38].mxu0 %v1809_v23  ;;  %9681 = vst [vmem:[#allocation32_spill] sm:$0xff] %v8594_v61 }
 0x14c   :  { %v8318_v36 = vld [vmem:[#allocation2 + $0x121] sm:$0xff]  ;;  %5602 = vmatprep.mubr.f32.mxu0 %v8316_v38  ;;  %6773 = vmatpush3.bf16.msra.mxu0 %v8291_v8 }
 0x14d   :  { %5734 = vmatmul.mubr.f32.gmra.mrb[34].mxu1 %v8318_v36  ;;  %6775 = vmatprep.subr.bf16.mxu0 %v8307_v22  ;;  %v8540_v8 = vld [vmem:[#allocation2 + $0x11f] sm:$0xff] }
 0x14e   :  { %5768 = vmatprep.mubr.f32.mxu1 %v1808_v48  ;;  %v4670_v48 = vld [vmem:[%s9602_s7 + $0x240] sm:$0xff]  ;;  %9677 = vst [vmem:[#allocation28_spill] sm:$0xff] %v8540_v8 }
 0x14f   :  { %5603 = vmatmul.mubr.f32.gmra.mrb[40].mxu0 %v8332_v44 }
 0x150   :  { %5605 = vmatprep.mubr.f32.mxu0 %v8341_v46  ;;  %6777 = vmatpush3.bf16.msra.mxu0 %v8307_v22  ;;  %v8535_v22 = vld [vmem:[#allocation2 + $0x117] sm:$0xff] }
 0x151   :  { %5769 = vmatmul.mubr.f32.vlgmr.msra.gmra.mrb[0].mxu1 %v1809_v23  ;;  %6779 = vmatprep.subr.bf16.mxu0 %v8330_v25  ;;  %v4671_v23 = vld [vmem:[%s9602_s7 + $0x248] sm:$0xff]  ;;  %9676 = vst [vmem:[#allocation27_spill] sm:$0xff] %v8535_v22 }
 0x152   :  { %6641 = vmatpush3.bf16.msra.mxu1 %v8171_v1  ;;  %5771 = vmatprep.mubr.f32.mxu1 %v8316_v38  ;;  %v4668_v1 = vld [vmem:[%s9602_s7 + $0x230] sm:$0xff]  ;;  %v6654_v51 = vpack.c.bf16 %v4671_v23, %v4670_v48  ;;  %v4677_v23 = vld [vmem:[%s9602_s7 + $0x278] sm:$0xff] }
 0x153   :  { %6643 = vmatprep.subr.bf16.mxu1 %v6642_v19  ;;  %5606 = vmatmul.mubr.f32.gmra.mrb[42].mxu0 %v8356_v56  ;;  %v6650_v17 = vpack.c.bf16 %v4669_v53, %v4668_v1  ;;  %v4674_v1 = vld [vmem:[%s9602_s7 + $0x260] sm:$0xff]  ;;  %v4675_v53 = vld [vmem:[%s9602_s7 + $0x268] sm:$0xff]  ;;  %v4676_v48 = vld [vmem:[%s9602_s7 + $0x270] sm:$0xff] }
 0x154   :  { %5608 = vmatprep.mubr.f32.mxu0 %v8365_v15  ;;  %6781 = vmatpush3.bf16.msra.mxu0 %v8330_v25  ;;  %v8532_v25 = vld [vmem:[#allocation2 + $0x10f] sm:$0xff] }
 0x155   :  { %5772 = vmatmul.mubr.f32.gmra.mrb[2].mxu1 %v8332_v44  ;;  %6783 = vmatprep.subr.bf16.mxu0 %v8352_v54  ;;  %9675 = vst [vmem:[#allocation26_spill] sm:$0xff] %v8532_v25 }
 0x156   :  { %5774 = vmatprep.mubr.f32.mxu1 %v8341_v46  ;;  %6645 = vmatpush3.bf16.msra.mxu1 %v6642_v19  ;;  %v4672_v19 = vld [vmem:[%s9602_s7 + $0x250] sm:$0xff] }
 0x157   :  { %5609 = vmatmul.mubr.f32.gmra.mrb[44].mxu0 %v8380_v59  ;;  %6647 = vmatprep.subr.bf16.mxu1 %v6646_v11 }
 0x158   :  { %5611 = vmatprep.mubr.f32.mxu0 %v8389_v35  ;;  %6785 = vmatpush3.bf16.msra.mxu0 %v8352_v54  ;;  %v8527_v54 = vld [vmem:[#allocation2 + $0x107] sm:$0xff] }
 0x159   :  { %5775 = vmatmul.mubr.f32.gmra.mrb[4].mxu1 %v8356_v56  ;;  %6787 = vmatprep.subr.bf16.mxu0 %v8377_v55  ;;  %9674 = vst [vmem:[#allocation25_spill] sm:$0xff] %v8527_v54 }
 0x15a   :  { %5777 = vmatprep.mubr.f32.mxu1 %v8365_v15  ;;  %6649 = vmatpush3.bf16.msra.mxu1 %v6646_v11  ;;  %v6658_v11 = vpack.c.bf16 %v4673_v7, %v4672_v19  ;;  %v4678_v19 = vld [vmem:[%s9602_s7 + $0x280] sm:$0xff]  ;;  %v4679_v7 = vld [vmem:[%s9602_s7 + $0x288] sm:$0xff] }
 0x15b   :  { %5612 = vmatmul.mubr.f32.gmra.mrb[46].mxu0 %v8404_v20  ;;  %6651 = vmatprep.subr.bf16.mxu1 %v6650_v17 }
 0x15c   :  { %5614 = vmatprep.mubr.f32.mxu0 %v8413_v32  ;;  %6789 = vmatpush3.bf16.msra.mxu0 %v8377_v55  ;;  %v8524_v55 = vld [vmem:[#allocation2 + $0xff] sm:$0xff] }
 0x15d   :  { %5778 = vmatmul.mubr.f32.gmra.mrb[6].mxu1 %v8380_v59  ;;  %6791 = vmatprep.subr.bf16.mxu0 %v8401_v58  ;;  %9673 = vst [vmem:[#allocation24_spill] sm:$0xff] %v8524_v55 }
 0x15e   :  { %5780 = vmatprep.mubr.f32.mxu1 %v8389_v35  ;;  %6653 = vmatpush3.bf16.msra.mxu1 %v6650_v17  ;;  %v6662_v17 = vpack.c.bf16 %v4675_v53, %v4674_v1  ;;  %v8476_v1 = vld [vmem:[#allocation2 + $0xa7] sm:$0xff]  ;;  %v8478_v53 = vpack.c.bf16 %v4679_v7, %v4678_v19  ;;  %v8503_v7 = vld [vmem:[#allocation2 + $0xd7] sm:$0xff] }
 0x15f   :  { %5615 = vmatmul.mubr.f32.gmra.mrb[48].mxu0 %v8428_v30  ;;  %6655 = vmatprep.subr.bf16.mxu1 %v6654_v51  ;;  %9662 = vst [vmem:[#allocation13_spill] sm:$0xff] %v8476_v1  ;;  %v8495_v19 = vld [vmem:[#allocation2 + $0xc7] sm:$0xff]  ;;  %9668 = vst [vmem:[#allocation19_spill] sm:$0xff] %v8503_v7 }
 0x160   :  { %5617 = vmatprep.mubr.f32.mxu0 %v8431_v43  ;;  %6793 = vmatpush3.bf16.msra.mxu0 %v8401_v58  ;;  %9666 = vst [vmem:[#allocation17_spill] sm:$0xff] %v8495_v19  ;;  %v8519_v58 = vld [vmem:[#allocation2 + $0xf7] sm:$0xff] }
 0x161   :  { %5781 = vmatmul.mubr.f32.gmra.mrb[8].mxu1 %v8404_v20  ;;  %6795 = vmatprep.subr.bf16.mxu0 %v8425_v3  ;;  %9672 = vst [vmem:[#allocation23_spill] sm:$0xff] %v8519_v58 }
 0x162   :  { %5783 = vmatprep.mubr.f32.mxu1 %v8413_v32  ;;  %6657 = vmatpush3.bf16.msra.mxu1 %v6654_v51  ;;  %v6666_v51 = vpack.c.bf16 %v4677_v23, %v4676_v48  ;;  %v8483_v48 = vld [vmem:[#allocation2 + $0xaf] sm:$0xff]  ;;  %v8486_v23 = vld [vmem:[#allocation2 + $0xb7] sm:$0xff] }
 0x163   :  { %5618 = vmatmul.mubr.f32.gmra.mrb[50].mxu0 %v8444_v31  ;;  %6659 = vmatprep.subr.bf16.mxu1 %v6658_v11  ;;  %9663 = vst [vmem:[#allocation14_spill] sm:$0xff] %v8483_v48  ;;  %9664 = vst [vmem:[#allocation15_spill] sm:$0xff] %v8486_v23 }
 0x164   :  { %5620 = vmatprep.mubr.f32.mxu0 %v8447_v9  ;;  %6797 = vmatpush3.bf16.msra.mxu0 %v8425_v3  ;;  %v8516_v3 = vld [vmem:[#allocation2 + $0xef] sm:$0xff] }
 0x165   :  { %5784 = vmatmul.mubr.f32.gmra.mrb[10].mxu1 %v8428_v30  ;;  %9671 = vst [vmem:[#allocation22_spill] sm:$0xff] %v8516_v3 }
 0x166   :  { %5786 = vmatprep.mubr.f32.mxu1 %v8431_v43  ;;  %6661 = vmatpush3.bf16.msra.mxu1 %v6658_v11  ;;  %v8473_v11 = vld [vmem:[#allocation2 + $0x9f] sm:$0xff] }
 0x167   :  { %5621 = vmatmul.mubr.f32.gmra.mrb[52].mxu0 %v8459_v24  ;;  %6663 = vmatprep.subr.bf16.mxu1 %v6662_v17 }
 0x168   :  { %5623 = vmatprep.mubr.f32.mxu0 %v8462_v62 }
 0x169   :  { %5787 = vmatmul.mubr.f32.gmra.mrb[12].mxu1 %v8444_v31 }
 0x16a   :  { %5789 = vmatprep.mubr.f32.mxu1 %v8447_v9  ;;  %6665 = vmatpush3.bf16.msra.mxu1 %v6662_v17  ;;  %v8492_v17 = vld [vmem:[#allocation2 + $0xbf] sm:$0xff] }
 0x16b   :  { %5624 = vmatmul.mubr.f32.gmra.mrb[54].mxu0 %v8473_v11  ;;  %6667 = vmatprep.subr.bf16.mxu1 %v6666_v51  ;;  %9665 = vst [vmem:[#allocation16_spill] sm:$0xff] %v8492_v17 }
 0x16c   :  { %5626 = vmatprep.mubr.f32.mxu0 %v8476_v1 }
 0x16d   :  { %5790 = vmatmul.mubr.f32.gmra.mrb[14].mxu1 %v8459_v24 }
 0x16e   :  { %5792 = vmatprep.mubr.f32.mxu1 %v8462_v62  ;;  %6669 = vmatpush3.bf16.msra.mxu1 %v6666_v51  ;;  %v8500_v51 = vld [vmem:[#allocation2 + $0xcf] sm:$0xff] }
 0x16f   :  { %5627 = vmatmul.mubr.f32.gmra.mrb[56].mxu0 %v8483_v48  ;;  %6671 = vmatprep.subr.bf16.mxu1 %v8478_v53  ;;  %9667 = vst [vmem:[#allocation18_spill] sm:$0xff] %v8500_v51 }
 0x170   :  { %5629 = vmatprep.mubr.f32.mxu0 %v8486_v23 }
 0x171   :  { %5793 = vmatmul.mubr.f32.gmra.mrb[16].mxu1 %v8473_v11 }
 0x172   :  { %5795 = vmatprep.mubr.f32.mxu1 %v8476_v1  ;;  %v4686_v1 = vld [vmem:[%s9602_s7 + $0x2c0] sm:$0xff] }
 0x173   :  { %5630 = vmatmul.mubr.f32.gmra.mrb[58].mxu0 %v8492_v17 }
 0x174   :  { %5632 = vmatprep.mubr.f32.mxu0 %v8495_v19 }
 0x175   :  { %5796 = vmatmul.mubr.f32.gmra.mrb[18].mxu1 %v8483_v48  ;;  %v8589_v48 = vld [vmem:[#allocation2 + $0x61] sm:$0xff] }
 0x176   :  { %5798 = vmatprep.mubr.f32.mxu1 %v8486_v23  ;;  %v4682_v23 = vld [vmem:[%s9602_s7 + $0x2a0] sm:$0xff] }
 0x177   :  { %5633 = vmatmul.mubr.f32.gmra.mrb[60].mxu0 %v8500_v51 }
 0x178   :  { %5635 = vmatprep.mubr.f32.mxu0 %v8503_v7 }
 0x179   :  { %5799 = vmatmul.mubr.f32.gmra.mrb[20].mxu1 %v8492_v17  ;;  %v2143_v17 = vld [vmem:[#allocation2 + $0x20] sm:$0xff] }
 0x17a   :  { %5801 = vmatprep.mubr.f32.mxu1 %v8495_v19 }
 0x17b   :  { %5636 = vmatmul.mubr.f32.gmra.mrb[62].mxu0 %v8508_v12 }
 0x17c   :  { %5638 = vmatprep.mubr.f32.mxu0 %v8511_v40 }
 0x17d   :  { %5802 = vmatmul.mubr.f32.gmra.mrb[22].mxu1 %v8500_v51  ;;  %v8576_v51 = vld [vmem:[#allocation2 + $0x59] sm:$0xff] }
 0x17e   :  { %5804 = vmatprep.mubr.f32.mxu1 %v8503_v7  ;;  %v8573_v7 = vld [vmem:[#allocation2 + $0x51] sm:$0xff] }
 0x17f   :  { %5639 = vmatmul.mubr.f32.gmra.mrb[64].mxu0 %v8516_v3 }
 0x180   :  { %5641 = vmatprep.mubr.f32.mxu0 %v8519_v58 }
 0x181   :  { %5805 = vmatmul.mubr.f32.gmra.mrb[24].mxu1 %v8508_v12  ;;  %v4680_v12 = vld [vmem:[%s9602_s7 + $0x290] sm:$0xff] }
 0x182   :  { %5807 = vmatprep.mubr.f32.mxu1 %v8511_v40  ;;  %v8543_v40 = vld [vmem:[#allocation2 + $0x29] sm:$0xff] }
 0x183   :  { %5642 = vmatmul.mubr.f32.gmra.mrb[66].mxu0 %v8524_v55 }
 0x184   :  { %5644 = vmatprep.mubr.f32.mxu0 %v8527_v54 }
 0x185   :  { %5808 = vmatmul.mubr.f32.gmra.mrb[26].mxu1 %v8516_v3  ;;  %v8551_v3 = vld [vmem:[#allocation2 + $0x39] sm:$0xff] }
 0x186   :  { %5810 = vmatprep.mubr.f32.mxu1 %v8519_v58  ;;  %v8548_v58 = vld [vmem:[#allocation2 + $0x31] sm:$0xff] }
 0x187   :  { %5645 = vmatmul.mubr.f32.gmra.mrb[68].mxu0 %v8532_v25 }
 0x188   :  { %5647 = vmatprep.mubr.f32.mxu0 %v8535_v22 }
 0x189   :  { %5811 = vmatmul.mubr.f32.gmra.mrb[28].mxu1 %v8524_v55  ;;  %v8558_v55 = vld [vmem:[#allocation2 + $0x41] sm:$0xff] }
 0x18a   :  { %5813 = vmatprep.mubr.f32.mxu1 %v8527_v54  ;;  %v8555_v54 = vld [vmem:[#allocation2 + $0x127] sm:$0xff] }
 0x18b   :  { %5648 = vmatmul.mubr.f32.gmra.mrb[70].mxu0 %v8540_v8  ;;  %9678 = vst [vmem:[#allocation29_spill] sm:$0xff] %v8555_v54 }
 0x18c   :  { %6198 = vmatprep.mubr.f32.mxu0 %v8543_v40 }
 0x18d   :  { %5814 = vmatmul.mubr.f32.gmra.mrb[30].mxu1 %v8532_v25  ;;  %v8561_v25 = vld [vmem:[#allocation2 + $0x49] sm:$0xff] }
 0x18e   :  { %5816 = vmatprep.mubr.f32.mxu1 %v8535_v22  ;;  %v8563_v22 = vld [vmem:[#allocation2 + $0x12f] sm:$0xff] }
 0x18f   :  { %6199 = vmatmul.mubr.f32.vlgmr.msra.gmra.mrb[72].mxu0 %v8548_v58  ;;  %9679 = vst [vmem:[#allocation30_spill] sm:$0xff] %v8563_v22 }
 0x190   :  { %6201 = vmatprep.mubr.f32.mxu0 %v8551_v3 }
 0x191   :  { %5817 = vmatmul.mubr.f32.gmra.mrb[32].mxu1 %v8540_v8  ;;  %v4681_v8 = vld [vmem:[%s9602_s7 + $0x298] sm:$0xff] }
 0x192   :  { %5819 = vmatprep.mubr.f32.mxu1 %v8555_v54  ;;  %v2142_v54 = vld [vmem:[#allocation2 + $0x18] sm:$0xff]  ;;  %v6674_v19 = vpack.c.bf16 %v4681_v8, %v4680_v12  ;;  %v8592_v12 = vld [vmem:[#allocation2 + $0x69] sm:$0xff] }
 0x193   :  { %6202 = vmatmul.mubr.f32.gmra.mrb[74].mxu0 %v8558_v55 }
 0x194   :  { %6204 = vmatprep.mubr.f32.mxu0 %v8561_v25 }
 0x195   :  { %5820 = vmatmul.mubr.f32.gmra.mrb[34].mxu1 %v8563_v22  ;;  %v4683_v22 = vld [vmem:[%s9602_s7 + $0x2a8] sm:$0xff] }
 0x196   :  { %5854 = vmatprep.mubr.f32.mxu1 %v2142_v54  ;;  %v8585_v54 = vld [vmem:[#allocation2 + $0x28] sm:$0xff]  ;;  %v6678_v8 = vpack.c.bf16 %v4683_v22, %v4682_v23  ;;  %v8608_v23 = vld [vmem:[#allocation2 + $0x40] sm:$0xff] }
 0x197   :  { %6205 = vmatmul.mubr.f32.gmra.mrb[76].mxu0 %v8573_v7  ;;  %9680 = vst [vmem:[#allocation31_spill] sm:$0xff] %v8585_v54 }
 0x198   :  { %6207 = vmatprep.mubr.f32.mxu0 %v8576_v51 }
 0x199   :  { %5855 = vmatmul.mubr.f32.vlgmr.msra.gmra.mrb[0].mxu1 %v2143_v17  ;;  %v4684_v17 = vld [vmem:[%s9602_s7 + $0x2b0] sm:$0xff] }
 0x19a   :  { %6673 = vmatpush3.bf16.msra.mxu1 %v8478_v53  ;;  %5857 = vmatprep.mubr.f32.mxu1 %v8585_v54  ;;  %v4685_v53 = vld [vmem:[%s9602_s7 + $0x2b8] sm:$0xff] }
 0x19b   :  { %6675 = vmatprep.subr.bf16.mxu1 %v6674_v19  ;;  %6208 = vmatmul.mubr.f32.gmra.mrb[78].mxu0 %v8589_v48  ;;  %v8604_v54 = vld [vmem:[#allocation2 + $0x38] sm:$0xff]  ;;  %v6682_v22 = vpack.c.bf16 %v4685_v53, %v4684_v17 }
 0x19c   :  { %6210 = vmatprep.mubr.f32.mxu0 %v8592_v12  ;;  %9682 = vst [vmem:[#allocation33_spill] sm:$0xff] %v8604_v54  ;;  %v4689_v17 = vld [vmem:[%s9602_s7 + $0x2d8] sm:$0xff] }
 0x19d   :  { %5858 = vmatmul.mubr.f32.gmra.mrb[2].mxu1 %v8594_v61  ;;  %v4687_v61 = vld [vmem:[%s9602_s7 + $0x2c8] sm:$0xff]  ;;  %v8632_v53 = vld [vmem:[#allocation2 + $0x58] sm:$0xff] }
 0x19e   :  { %5860 = vmatprep.mubr.f32.mxu1 %v8604_v54  ;;  %6677 = vmatpush3.bf16.msra.mxu1 %v6674_v19  ;;  %v8618_v54 = vld [vmem:[#allocation2 + $0x48] sm:$0xff]  ;;  %v4688_v19 = vld [vmem:[%s9602_s7 + $0x2d0] sm:$0xff] }
 0x19f   :  { %6211 = vmatmul.mubr.f32.gmra.mrb[80].mxu0 %v8157_v33  ;;  %6679 = vmatprep.subr.bf16.mxu1 %v6678_v8  ;;  %v6686_v33 = vpack.c.bf16 %v4687_v61, %v4686_v1  ;;  %v6690_v61 = vpack.c.bf16 %v4689_v17, %v4688_v19  ;;  %v4691_v1 = vld [vmem:[%s9602_s7 + $0x2e8] sm:$0xff]  ;;  %v4693_v19 = vld [vmem:[%s9602_s7 + $0x2f8] sm:$0xff] }
 0x1a0   :  { %6213 = vmatprep.mubr.f32.mxu0 %v8159_v52  ;;  %v8622_v52 = vld [vmem:[#allocation2 + $0x50] sm:$0xff]  ;;  %v8660_v17 = vld [vmem:[#allocation2 + $0x78] sm:$0xff] }
 0x1a1   :  { %5861 = vmatmul.mubr.f32.gmra.mrb[4].mxu1 %v8608_v23 }
 0x1a2   :  { %5863 = vmatprep.mubr.f32.mxu1 %v8618_v54  ;;  %6681 = vmatpush3.bf16.msra.mxu1 %v6678_v8  ;;  %v8646_v8 = vld [vmem:[#allocation2 + $0x68] sm:$0xff] }
 0x1a3   :  { %6214 = vmatmul.mubr.f32.gmra.mrb[82].mxu0 %v8174_v34  ;;  %6683 = vmatprep.subr.bf16.mxu1 %v6682_v22  ;;  %v8636_v34 = vld [vmem:[#allocation2 + $0x60] sm:$0xff] }
 0x1a4   :  { %6216 = vmatprep.mubr.f32.mxu0 %v8176_v10  ;;  %v4690_v10 = vld [vmem:[%s9602_s7 + $0x2e0] sm:$0xff] }
 0x1a5   :  { %5864 = vmatmul.mubr.f32.gmra.mrb[6].mxu1 %v8622_v52 }
 0x1a6   :  { %5866 = vmatprep.mubr.f32.mxu1 %v8632_v53  ;;  %6685 = vmatpush3.bf16.msra.mxu1 %v6682_v22  ;;  %v4692_v22 = vld [vmem:[%s9602_s7 + $0x2f0] sm:$0xff] }
 0x1a7   :  { %6217 = vmatmul.mubr.f32.gmra.mrb[84].mxu0 %v8187_v6  ;;  %6687 = vmatprep.subr.bf16.mxu1 %v6686_v33  ;;  %v6694_v6 = vpack.c.bf16 %v4691_v1, %v4690_v10  ;;  %v4695_v10 = vld [vmem:[%s9602_s7 + $0x308] sm:$0xff] }
 0x1a8   :  { %6219 = vmatprep.mubr.f32.mxu0 %v8189_v2  ;;  %v8650_v2 = vld [vmem:[#allocation2 + $0x70] sm:$0xff]  ;;  %v8674_v1 = vld [vmem:[#allocation2 + $0x88] sm:$0xff] }
 0x1a9   :  { %5867 = vmatmul.mubr.f32.gmra.mrb[8].mxu1 %v8636_v34 }
 0x1aa   :  { %5869 = vmatprep.mubr.f32.mxu1 %v8646_v8  ;;  %6689 = vmatpush3.bf16.msra.mxu1 %v6686_v33  ;;  %v4694_v33 = vld [vmem:[%s9602_s7 + $0x300] sm:$0xff] }
 0x1ab   :  { %6220 = vmatmul.mubr.f32.gmra.mrb[86].mxu0 %v8199_v13  ;;  %6691 = vmatprep.subr.bf16.mxu1 %v6690_v61  ;;  %v6698_v13 = vpack.c.bf16 %v4693_v19, %v4692_v22  ;;  %v8686_v22 = vld [vmem:[#allocation2 + $0xa0] sm:$0xff]  ;;  %v8722_v19 = vld [vmem:[#allocation2 + $0xf0] sm:$0xff] }
 0x1ac   :  { %6222 = vmatprep.mubr.f32.mxu0 %v8201_v39  ;;  %v8664_v39 = vld [vmem:[#allocation2 + $0x80] sm:$0xff] }
 0x1ad   :  { %5870 = vmatmul.mubr.f32.gmra.mrb[10].mxu1 %v8650_v2 }
 0x1ae   :  { %5872 = vmatprep.mubr.f32.mxu1 %v8660_v17  ;;  %6693 = vmatpush3.bf16.msra.mxu1 %v6690_v61  ;;  %v8682_v61 = vld [vmem:[#allocation2 + $0x98] sm:$0xff] }
 0x1af   :  { %6223 = vmatmul.mubr.f32.gmra.mrb[88].mxu0 %v8209_v50  ;;  %6695 = vmatprep.subr.bf16.mxu1 %v6694_v6  ;;  %v6702_v50 = vpack.c.bf16 %v4695_v10, %v4694_v33  ;;  %v2476_v33 = vld [vmem:[#allocation2 + $0x19] sm:$0xff] }
 0x1b0   :  { %6225 = vmatprep.mubr.f32.mxu0 %v8211_v16  ;;  %v8678_v16 = vld [vmem:[#allocation2 + $0x90] sm:$0xff]  ;;  %v4701_v10 = vld [vmem:[%s9602_s7 + $0x338] sm:$0xff] }
 0x1b1   :  { %5873 = vmatmul.mubr.f32.gmra.mrb[12].mxu1 %v8664_v39 }
 0x1b2   :  { %5875 = vmatprep.mubr.f32.mxu1 %v8674_v1  ;;  %6697 = vmatpush3.bf16.msra.mxu1 %v6694_v6  ;;  %v8706_v6 = vld [vmem:[#allocation2 + $0xc8] sm:$0xff] }
 0x1b3   :  { %6226 = vmatmul.mubr.f32.gmra.mrb[90].mxu0 %v8219_v28  ;;  %6699 = vmatprep.subr.bf16.mxu1 %v6698_v13  ;;  %v8690_v28 = vld [vmem:[#allocation2 + $0xa8] sm:$0xff] }
 0x1b4   :  { %6228 = vmatprep.mubr.f32.mxu0 %v8221_v29  ;;  %v8694_v29 = vld [vmem:[#allocation2 + $0xb0] sm:$0xff] }
 0x1b5   :  { %5876 = vmatmul.mubr.f32.gmra.mrb[14].mxu1 %v8678_v16 }
 0x1b6   :  { %5878 = vmatprep.mubr.f32.mxu1 %v8682_v61  ;;  %6701 = vmatpush3.bf16.msra.mxu1 %v6698_v13  ;;  %v4696_v13 = vld [vmem:[%s9602_s7 + $0x310] sm:$0xff] }
 0x1b7   :  { %6229 = vmatmul.mubr.f32.gmra.mrb[92].mxu0 %v8231_v47  ;;  %6703 = vmatprep.subr.bf16.mxu1 %v6702_v50  ;;  %v8698_v47 = vld [vmem:[#allocation2 + $0xb8] sm:$0xff] }
 0x1b8   :  { %6231 = vmatprep.mubr.f32.mxu0 %v8233_v5  ;;  %v8702_v5 = vld [vmem:[#allocation2 + $0xc0] sm:$0xff] }
 0x1b9   :  { %5879 = vmatmul.mubr.f32.gmra.mrb[16].mxu1 %v8686_v22 }
 0x1ba   :  { %5881 = vmatprep.mubr.f32.mxu1 %v8690_v28 }
 0x1bb   :  { %6232 = vmatmul.mubr.f32.gmra.mrb[94].mxu0 %v8248_v14  ;;  %v8710_v14 = vld [vmem:[#allocation2 + $0xd0] sm:$0xff] }
 0x1bc   :  { %6234 = vmatprep.mubr.f32.mxu0 %v8250_v27  ;;  %v8713_v27 = vld [vmem:[#allocation2 + $0xd8] sm:$0xff] }
 0x1bd   :  { %5882 = vmatmul.mubr.f32.gmra.mrb[18].mxu1 %v8694_v29 }
 0x1be   :  { %5884 = vmatprep.mubr.f32.mxu1 %v8698_v47 }
 0x1bf   :  { %6235 = vmatmul.mubr.f32.gmra.mrb[96].mxu0 %v8265_v4  ;;  %v8716_v4 = vld [vmem:[#allocation2 + $0xe0] sm:$0xff] }
 0x1c0   :  { %6237 = vmatprep.mubr.f32.mxu0 %v8267_v18  ;;  %v8719_v18 = vld [vmem:[#allocation2 + $0xe8] sm:$0xff] }
 0x1c1   :  { %5885 = vmatmul.mubr.f32.gmra.mrb[20].mxu1 %v8702_v5 }
 0x1c2   :  { %5887 = vmatprep.mubr.f32.mxu1 %v8706_v6 }
 0x1c3   :  { %6238 = vmatmul.mubr.f32.gmra.mrb[98].mxu0 %v8285_v57  ;;  %v8726_v57 = vld [vmem:[#allocation2 + $0x100] sm:$0xff] }
 0x1c5   :  { %5888 = vmatmul.mubr.f32.gmra.mrb[22].mxu1 %v8710_v14 }
 0x1c6   :  { %5890 = vmatprep.mubr.f32.mxu1 %v8713_v27 }
 0x1c9   :  { %5891 = vmatmul.mubr.f32.gmra.mrb[24].mxu1 %v8716_v4 }
 0x1ca   :  { %5893 = vmatprep.mubr.f32.mxu1 %v8719_v18 }
 0x1cd   :  { %5894 = vmatmul.mubr.f32.gmra.mrb[26].mxu1 %v8722_v19 }
 0x1ce   :  { %5896 = vmatprep.mubr.f32.mxu1 %v8227_v26  ;;  %v4697_v26 = vld [vmem:[%s9602_s7 + $0x318] sm:$0xff] }
 0x1d1   :  { %5897 = vmatmul.mubr.f32.gmra.mrb[28].mxu1 %v8726_v57 }
 0x1d2   :  { %5899 = vmatprep.mubr.f32.mxu1 %v8243_v21  ;;  %v6706_v21 = vpack.c.bf16 %v4697_v26, %v4696_v13  ;;  %v4705_v26 = vld [vmem:[%s9602_s7 + $0x358] sm:$0xff] }
 0x1d5   :  { %5900 = vmatmul.mubr.f32.gmra.mrb[30].mxu1 %v8239_v37  ;;  %v2477_v37 = vld [vmem:[#allocation2 + $0x21] sm:$0xff] }
 0x1d6   :  { %5902 = vmatprep.mubr.f32.mxu1 %v8260_v63  ;;  %v4699_v63 = vld [vmem:[%s9602_s7 + $0x328] sm:$0xff] }
 0x1d9   :  { %5903 = vmatmul.mubr.f32.gmra.mrb[32].mxu1 %v8256_v41  ;;  %v4698_v41 = vld [vmem:[%s9602_s7 + $0x320] sm:$0xff] }
 0x1da   :  { %5905 = vmatprep.mubr.f32.mxu1 %v8281_v60  ;;  %v6710_v60 = vpack.c.bf16 %v4699_v63, %v4698_v41  ;;  %v2488_v41 = vld [vmem:[#allocation2 + $0x79] sm:$0xff]  ;;  %v2489_v63 = vld [vmem:[#allocation2 + $0x81] sm:$0xff] }
 0x1dd   :  { %5906 = vmatmul.mubr.f32.gmra.mrb[34].mxu1 %v8272_v45  ;;  %v4700_v45 = vld [vmem:[%s9602_s7 + $0x330] sm:$0xff] }
 0x1de   :  { %5940 = vmatprep.mubr.f32.mxu1 %v2476_v33  ;;  %v6714_v13 = vpack.c.bf16 %v4701_v10, %v4700_v45  ;;  %v4707_v33 = vld [vmem:[%s9602_s7 + $0x368] sm:$0xff] }
 0x1df   :  { %v2490_v45 = vld [vmem:[#allocation2 + $0x89] sm:$0xff] }
 0x1e1   :  { %5941 = vmatmul.mubr.f32.vlgmr.msra.gmra.mrb[0].mxu1 %v2477_v37  ;;  %v4709_v37 = vld [vmem:[%s9602_s7 + $0x378] sm:$0xff] }
 0x1e2   :  { %6705 = vmatpush3.bf16.msra.mxu1 %v6702_v50  ;;  %5943 = vmatprep.mubr.f32.mxu1 %v8543_v40  ;;  %v4702_v40 = vld [vmem:[%s9602_s7 + $0x340] sm:$0xff]  ;;  %v4703_v50 = vld [vmem:[%s9602_s7 + $0x348] sm:$0xff] }
 0x1e3   :  { %6707 = vmatprep.subr.bf16.mxu1 %v6706_v21 }
 0x1e5   :  { %5944 = vmatmul.mubr.f32.gmra.mrb[2].mxu1 %v8548_v58  ;;  %v6718_v58 = vpack.c.bf16 %v4703_v50, %v4702_v40  ;;  %v2492_v40 = vld [vmem:[#allocation2 + $0x99] sm:$0xff]  ;;  %v2493_v50 = vld [vmem:[#allocation2 + $0xa1] sm:$0xff] }
 0x1e6   :  { %5946 = vmatprep.mubr.f32.mxu1 %v8551_v3  ;;  %6709 = vmatpush3.bf16.msra.mxu1 %v6706_v21  ;;  %v4704_v3 = vld [vmem:[%s9602_s7 + $0x350] sm:$0xff] }
 0x1e7   :  { %6711 = vmatprep.subr.bf16.mxu1 %v6710_v60  ;;  %v2487_v21 = vld [vmem:[#allocation2 + $0x71] sm:$0xff] }
 0x1e9   :  { %5947 = vmatmul.mubr.f32.gmra.mrb[4].mxu1 %v8558_v55  ;;  %v6722_v55 = vpack.c.bf16 %v4705_v26, %v4704_v3  ;;  %v2495_v3 = vld [vmem:[#allocation2 + $0xb1] sm:$0xff]  ;;  %v2496_v26 = vld [vmem:[#allocation2 + $0xb9] sm:$0xff] }
 0x1ea   :  { %5949 = vmatprep.mubr.f32.mxu1 %v8561_v25  ;;  %6713 = vmatpush3.bf16.msra.mxu1 %v6710_v60  ;;  %v4706_v25 = vld [vmem:[%s9602_s7 + $0x360] sm:$0xff]  ;;  %v4711_v60 = vld [vmem:[%s9602_s7 + $0x388] sm:$0xff] }
 0x1eb   :  { %6715 = vmatprep.subr.bf16.mxu1 %v6714_v13 }
 0x1ed   :  { %5950 = vmatmul.mubr.f32.gmra.mrb[6].mxu1 %v8573_v7  ;;  %v6726_v7 = vpack.c.bf16 %v4707_v33, %v4706_v25  ;;  %v2498_v25 = vld [vmem:[#allocation2 + $0xc9] sm:$0xff]  ;;  %v2499_v33 = vld [vmem:[#allocation2 + $0xd1] sm:$0xff] }
 0x1ee   :  { %5952 = vmatprep.mubr.f32.mxu1 %v8576_v51  ;;  %6717 = vmatpush3.bf16.msra.mxu1 %v6714_v13  ;;  %v4708_v51 = vld [vmem:[%s9602_s7 + $0x370] sm:$0xff] }
 0x1ef   :  { %6719 = vmatprep.subr.bf16.mxu1 %v6718_v58  ;;  %v2491_v13 = vld [vmem:[#allocation2 + $0x91] sm:$0xff] }
 0x1f1   :  { %5953 = vmatmul.mubr.f32.gmra.mrb[8].mxu1 %v8589_v48  ;;  %v6730_v48 = vpack.c.bf16 %v4709_v37, %v4708_v51  ;;  %v2502_v51 = vld [vmem:[#allocation2 + $0xe9] sm:$0xff]  ;;  %v2503_v37 = vld [vmem:[#allocation2 + $0xf1] sm:$0xff] }
 0x1f2   :  { %5955 = vmatprep.mubr.f32.mxu1 %v8592_v12  ;;  %6721 = vmatpush3.bf16.msra.mxu1 %v6718_v58  ;;  %v4710_v12 = vld [vmem:[%s9602_s7 + $0x380] sm:$0xff]  ;;  %v2494_v58 = vld [vmem:[#allocation2 + $0xa9] sm:$0xff] }
 0x1f3   :  { %6723 = vmatprep.subr.bf16.mxu1 %v6722_v55  ;;  %v6734_v10 = vpack.c.bf16 %v4711_v60, %v4710_v12 }
 0x1f5   :  { %5956 = vmatmul.mubr.f32.gmra.mrb[10].mxu1 %v2487_v21  ;;  %v2501_v21 = vld [vmem:[#allocation2 + $0xe1] sm:$0xff] }
 0x1f6   :  { %5958 = vmatprep.mubr.f32.mxu1 %v2488_v41  ;;  %6725 = vmatpush3.bf16.msra.mxu1 %v6722_v55  ;;  %v2497_v55 = vld [vmem:[#allocation2 + $0xc1] sm:$0xff]  ;;  %v2504_v41 = vld [vmem:[#allocation2 + $0xf9] sm:$0xff] }
 0x1f7   :  { %6727 = vmatprep.subr.bf16.mxu1 %v6726_v7 }
 0x1f9   :  { %5959 = vmatmul.mubr.f32.gmra.mrb[12].mxu1 %v2489_v63 }
 0x1fa   :  { %5961 = vmatprep.mubr.f32.mxu1 %v2490_v45  ;;  %6729 = vmatpush3.bf16.msra.mxu1 %v6726_v7  ;;  %v2500_v7 = vld [vmem:[#allocation2 + $0xd9] sm:$0xff] }
 0x1fb   :  { %6731 = vmatprep.subr.bf16.mxu1 %v6730_v48 }
 0x1fd   :  { %5962 = vmatmul.mubr.f32.gmra.mrb[14].mxu1 %v2491_v13  ;;  %v8804_v13 = vld [vmem:[#allocation2 + $0x129] sm:$0xff] }
 0x1fe   :  { %5964 = vmatprep.mubr.f32.mxu1 %v2492_v40  ;;  %6733 = vmatpush3.bf16.msra.mxu1 %v6730_v48  ;;  %v2505_v48 = vld [vmem:[#allocation2 + $0x101] sm:$0xff] }
 0x1ff   :  { %6735 = vmatprep.subr.bf16.mxu1 %v6734_v10 }
 0x201   :  { %5965 = vmatmul.mubr.f32.gmra.mrb[16].mxu1 %v2493_v50  ;;  %v8811_v50 = vld [vmem:[#allocation2 + $0x131] sm:$0xff] }
 0x202   :  { %5967 = vmatprep.mubr.f32.mxu1 %v2494_v58 }
 0x205   :  { %5968 = vmatmul.mubr.f32.gmra.mrb[18].mxu1 %v2495_v3 }
 0x206   :  { %5970 = vmatprep.mubr.f32.mxu1 %v2496_v26  ;;  %v4714_v26 = vld [vmem:[%s9602_s7 + $0x3a0] sm:$0xff] }
 0x209   :  { %5971 = vmatmul.mubr.f32.gmra.mrb[20].mxu1 %v2497_v55  ;;  %v4715_v55 = vld [vmem:[%s9602_s7 + $0x3a8] sm:$0xff] }
 0x20a   :  { %5973 = vmatprep.mubr.f32.mxu1 %v2498_v25 }
 0x20d   :  { %5974 = vmatmul.mubr.f32.gmra.mrb[22].mxu1 %v2499_v33  ;;  %v6742_v33 = vpack.c.bf16 %v4715_v55, %v4714_v26  ;;  %v4723_v26 = vld [vmem:[%s9602_s7 + $0x3e8] sm:$0xff] }
 0x20e   :  { %5976 = vmatprep.mubr.f32.mxu1 %v2500_v7  ;;  %v4716_v7 = vld [vmem:[%s9602_s7 + $0x3b0] sm:$0xff] }
 0x211   :  { %5977 = vmatmul.mubr.f32.gmra.mrb[24].mxu1 %v2501_v21  ;;  %v4717_v21 = vld [vmem:[%s9602_s7 + $0x3b8] sm:$0xff] }
 0x212   :  { %5979 = vmatprep.mubr.f32.mxu1 %v2502_v51  ;;  %v4718_v51 = vld [vmem:[%s9602_s7 + $0x3c0] sm:$0xff] }
 0x215   :  { %5980 = vmatmul.mubr.f32.gmra.mrb[26].mxu1 %v2503_v37  ;;  %v4719_v37 = vld [vmem:[%s9602_s7 + $0x3c8] sm:$0xff] }
 0x216   :  { %5982 = vmatprep.mubr.f32.mxu1 %v2504_v41  ;;  %v6750_v41 = vpack.c.bf16 %v4719_v37, %v4718_v51  ;;  %v3934_v37 = vld [vmem:[%s9605_s10] sm:$0xff] }
 0x219   :  { %5983 = vmatmul.mubr.f32.gmra.mrb[28].mxu1 %v2505_v48  ;;  %v4720_v48 = vld [vmem:[%s9602_s7 + $0x3d0] sm:$0xff] }
 0x21a   :  { %5985 = vmatprep.mubr.f32.mxu1 %v8287_v0  ;;  %v8793_v63 = vpop.f32.mrb[36].mxu0 }
 0x21b   :  { %v8795_v12 = vpop.f32.mrb[37].mxu0 }
 0x21d   :  { %5986 = vmatmul.mubr.f32.gmra.mrb[30].mxu1 %v8300_v49  ;;  %v4712_v49 = vld [vmem:[%s9602_s7 + $0x390] sm:$0xff] }
 0x21e   :  { %5988 = vmatprep.mubr.f32.mxu1 %v8302_v42  ;;  %v8799_v60 = vpop.f32.mrb[38].mxu0  ;;  %v4713_v42 = vld [vmem:[%s9602_s7 + $0x398] sm:$0xff] }
 0x21f   :  { %v8801_v45 = vpop.f32.mrb[39].mxu0  ;;  %v6738_v3 = vpack.c.bf16 %v4713_v42, %v4712_v49  ;;  %v4721_v49 = vld [vmem:[%s9602_s7 + $0x3d8] sm:$0xff] }
 0x220   :  { %v6754_v42 = vpack.c.bf16 %v4721_v49, %v4720_v48  ;;  %v3937_v49 = vld [vmem:[%s9605_s10 + $0x18] sm:$0xff] }
 0x221   :  { %5989 = vmatmul.mubr.f32.gmra.mrb[32].mxu1 %v8318_v36 }
 0x222   :  { %5991 = vmatprep.mubr.f32.mxu1 %v8804_v13  ;;  %v8807_v40 = vpop.f32.mrb[40].mxu0 }
 0x223   :  { %v8809_v0 = vpop.f32.mrb[41].mxu0 }
 0x225   :  { %5992 = vmatmul.mubr.f32.gmra.mrb[34].mxu1 %v8811_v50 }
 0x226   :  { %6026 = vmatprep.mubr.f32.mxu1 %v8316_v38  ;;  %v8821_v36 = vpop.f32.mrb[42].mxu0 }
 0x227   :  { %v8823_v58 = vpop.f32.mrb[43].mxu0 }
 0x229   :  { %6027 = vmatmul.mubr.f32.vlgmr.msra.gmra.mrb[0].mxu1 %v8332_v44 }
 0x22a   :  { %6737 = vmatpush3.bf16.msra.mxu1 %v6734_v10  ;;  %6029 = vmatprep.mubr.f32.mxu1 %v8341_v46  ;;  %v8833_v25 = vpop.f32.mrb[44].mxu0  ;;  %v6746_v10 = vpack.c.bf16 %v4717_v21, %v4716_v7  ;;  %v4725_v7 = vld [vmem:[%s9602_s7 + $0x3f8] sm:$0xff] }
 0x22b   :  { %6739 = vmatprep.subr.bf16.mxu1 %v6738_v3  ;;  %v8835_v38 = vpop.f32.mrb[45].mxu0 }
 0x22d   :  { %6030 = vmatmul.mubr.f32.gmra.mrb[2].mxu1 %v8356_v56 }
 0x22e   :  { %6032 = vmatprep.mubr.f32.mxu1 %v8365_v15  ;;  %6741 = vmatpush3.bf16.msra.mxu1 %v6738_v3  ;;  %v8845_v44 = vpop.f32.mrb[46].mxu0  ;;  %v4722_v3 = vld [vmem:[%s9602_s7 + $0x3e0] sm:$0xff] }
 0x22f   :  { %v8847_v46 = vpop.f32.mrb[47].mxu0  ;;  %6743 = vmatprep.subr.bf16.mxu1 %v6742_v33  ;;  %v6758_v55 = vpack.c.bf16 %v4723_v26, %v4722_v3  ;;  %v3938_v3 = vld [vmem:[%s9605_s10 + $0x20] sm:$0xff]  ;;  %v3939_v26 = vld [vmem:[%s9605_s10 + $0x28] sm:$0xff] }
 0x231   :  { %6033 = vmatmul.mubr.f32.gmra.mrb[4].mxu1 %v8380_v59 }
 0x232   :  { %6035 = vmatprep.mubr.f32.mxu1 %v8389_v35  ;;  %v8857_v56 = vpop.f32.mrb[48].mxu0  ;;  %6745 = vmatpush3.bf16.msra.mxu1 %v6742_v33  ;;  %v4724_v33 = vld [vmem:[%s9602_s7 + $0x3f0] sm:$0xff] }
 0x233   :  { %v8859_v15 = vpop.f32.mrb[49].mxu0  ;;  %6747 = vmatprep.subr.bf16.mxu1 %v6746_v10  ;;  %v6762_v21 = vpack.c.bf16 %v4725_v7, %v4724_v33  ;;  %v9688_v33 = vld [vmem:[#allocation15_spill] sm:$0xff] }
 0x235   :  { %6036 = vmatmul.mubr.f32.gmra.mrb[6].mxu1 %v8404_v20 }
 0x236   :  { %6038 = vmatprep.mubr.f32.mxu1 %v8413_v32  ;;  %v8869_v59 = vpop.f32.mrb[50].mxu0  ;;  %6749 = vmatpush3.bf16.msra.mxu1 %v6746_v10 }
 0x237   :  { %v8871_v35 = vpop.f32.mrb[51].mxu0  ;;  %6751 = vmatprep.subr.bf16.mxu1 %v6750_v41 }
 0x239   :  { %6039 = vmatmul.mubr.f32.gmra.mrb[8].mxu1 %v8428_v30 }
 0x23a   :  { %6041 = vmatprep.mubr.f32.mxu1 %v8431_v43  ;;  %v8881_v20 = vpop.f32.mrb[52].mxu0  ;;  %6753 = vmatpush3.bf16.msra.mxu1 %v6750_v41 }
 0x23b   :  { %v8883_v32 = vpop.f32.mrb[53].mxu0  ;;  %6755 = vmatprep.subr.bf16.mxu1 %v6754_v42 }
 0x23d   :  { %6042 = vmatmul.mubr.f32.gmra.mrb[10].mxu1 %v8444_v31  ;;  %v9683_v31 = vld [vmem:[#allocation13_spill] sm:$0xff] }
 0x23e   :  { %6044 = vmatprep.mubr.f32.mxu1 %v8447_v9  ;;  %v8893_v30 = vpop.f32.mrb[54].mxu0  ;;  %6757 = vmatpush3.bf16.msra.mxu1 %v6754_v42 }
 0x23f   :  { %v8895_v43 = vpop.f32.mrb[55].mxu0  ;;  %6759 = vmatprep.subr.bf16.mxu1 %v6758_v55 }
 0x241   :  { %6045 = vmatmul.mubr.f32.gmra.mrb[12].mxu1 %v8459_v24  ;;  %v3935_v24 = vld [vmem:[%s9605_s10 + $0x8] sm:$0xff] }
 0x242   :  { %6047 = vmatprep.mubr.f32.mxu1 %v8462_v62  ;;  %v8899_v10 = vpop.f32.mrb[56].mxu0  ;;  %6761 = vmatpush3.bf16.msra.mxu1 %v6758_v55  ;;  %v3936_v62 = vld [vmem:[%s9605_s10 + $0x10] sm:$0xff]  ;;  %v6798_v48 = vpack.c.bf16 %v3935_v24, %v3934_v37  ;;  %v9687_v55 = vld [vmem:[#allocation14_spill] sm:$0xff]  ;;  %v3941_v24 = vld [vmem:[%s9605_s10 + $0x38] sm:$0xff] }
 0x243   :  { %v8901_v51 = vpop.f32.mrb[57].mxu0  ;;  %6763 = vmatprep.subr.bf16.mxu1 %v6762_v21  ;;  %v6802_v42 = vpack.c.bf16 %v3937_v49, %v3936_v62  ;;  %v3940_v37 = vld [vmem:[%s9605_s10 + $0x30] sm:$0xff]  ;;  %v9691_v62 = vld [vmem:[#allocation16_spill] sm:$0xff]  ;;  %v9692_v49 = vld [vmem:[#allocation17_spill] sm:$0xff] }
 0x244   :  { %6799 = vmatprep.subr.bf16.mxu0 %v6798_v48 }
 0x245   :  { %6048 = vmatmul.mubr.f32.gmra.mrb[14].mxu1 %v8473_v11  ;;  %v9686_v11 = vld [vmem:[#allocation5_spill] sm:$0xff]  ;;  %6801 = vmatpush3.bf16.msra.mxu0 %v6798_v48 }
 0x246   :  { %6050 = vmatprep.mubr.f32.mxu1 %v9683_v31  ;;  %v8905_v9 = vpop.f32.mrb[58].mxu0  ;;  %6765 = vmatpush3.bf16.msra.mxu1 %v6762_v21  ;;  %v6806_v31 = vpack.c.bf16 %v3939_v26, %v3938_v3  ;;  %v3942_v3 = vld [vmem:[%s9605_s10 + $0x40] sm:$0xff]  ;;  %v3943_v26 = vld [vmem:[%s9605_s10 + $0x48] sm:$0xff] }
 0x247   :  { %9684 = vst [vmem:[#allocation13_spill] sm:$0xff] %v8905_v9  ;;  %v8916_v41 = vpop.f32.mrb[59].mxu0  ;;  %6926 = vmatprep.subr.bf16.mxu1 %v9686_v11  ;;  %6803 = vmatprep.subr.bf16.mxu0 %v6802_v42 }
 0x248   :  { %9685 = vst [vmem:[#allocation34_spill] sm:$0xff] %v8916_v41  ;;  %v9718_v41 = vld [vmem:[#allocation33_spill] sm:$0xff] }
 0x249   :  { %6051 = vmatmul.mubr.f32.gmra.mrb[16].mxu1 %v9687_v55  ;;  %6805 = vmatpush3.bf16.msra.mxu0 %v6802_v42 }
 0x24a   :  { %6053 = vmatprep.mubr.f32.mxu1 %v9688_v33  ;;  %v8930_v7 = vpop.f32.mrb[60].mxu0  ;;  %6807 = vmatprep.subr.bf16.mxu0 %v6806_v31  ;;  %v6810_v33 = vpack.c.bf16 %v3941_v24, %v3940_v37  ;;  %v9699_v37 = vld [vmem:[#allocation20_spill] sm:$0xff]  ;;  %v9700_v24 = vld [vmem:[#allocation21_spill] sm:$0xff] }
 0x24b   :  { %9689 = vst [vmem:[#allocation5_spill] sm:$0xff] %v8930_v7  ;;  %v8932_v21 = vpop.f32.mrb[61].mxu0 }
 0x24c   :  { %9690 = vst [vmem:[#allocation14_spill] sm:$0xff] %v8932_v21  ;;  %v9695_v21 = vld [vmem:[#allocation18_spill] sm:$0xff] }
 0x24d   :  { %6054 = vmatmul.mubr.f32.gmra.mrb[18].mxu1 %v9691_v62  ;;  %v9696_v62 = vld [vmem:[#allocation19_spill] sm:$0xff]  ;;  %6809 = vmatpush3.bf16.msra.mxu0 %v6806_v31 }
 0x24e   :  { %6056 = vmatprep.mubr.f32.mxu1 %v9692_v49  ;;  %v8942_v55 = vpop.f32.mrb[62].mxu0  ;;  %6811 = vmatprep.subr.bf16.mxu0 %v6810_v33 }
 0x24f   :  { %9693 = vst [vmem:[#allocation15_spill] sm:$0xff] %v8942_v55  ;;  %v8944_v48 = vpop.f32.mrb[63].mxu0 }
 0x250   :  { %9694 = vst [vmem:[#allocation16_spill] sm:$0xff] %v8944_v48  ;;  %v6814_v48 = vpack.c.bf16 %v3943_v26, %v3942_v3  ;;  %v9707_v3 = vld [vmem:[#allocation24_spill] sm:$0xff]  ;;  %v9708_v26 = vld [vmem:[#allocation25_spill] sm:$0xff] }
 0x251   :  { %6057 = vmatmul.mubr.f32.gmra.mrb[20].mxu1 %v9695_v21  ;;  %6813 = vmatpush3.bf16.msra.mxu0 %v6810_v33  ;;  %v9703_v21 = vld [vmem:[#allocation22_spill] sm:$0xff] }
 0x252   :  { %6059 = vmatprep.mubr.f32.mxu1 %v9696_v62  ;;  %v8954_v49 = vpop.f32.mrb[64].mxu0  ;;  %6815 = vmatprep.subr.bf16.mxu0 %v6814_v48  ;;  %v9704_v62 = vld [vmem:[#allocation23_spill] sm:$0xff]  ;;  %v9711_v33 = vld [vmem:[#allocation26_spill] sm:$0xff] }
 0x253   :  { %9697 = vst [vmem:[#allocation17_spill] sm:$0xff] %v8954_v49  ;;  %v8956_v42 = vpop.f32.mrb[65].mxu0 }
 0x254   :  { %9698 = vst [vmem:[#allocation18_spill] sm:$0xff] %v8956_v42 }
 0x255   :  { %6060 = vmatmul.mubr.f32.gmra.mrb[22].mxu1 %v9699_v37  ;;  %6817 = vmatpush3.bf16.msra.mxu0 %v6814_v48  ;;  %v9714_v48 = vld [vmem:[#allocation29_spill] sm:$0xff] }
 0x256   :  { %6062 = vmatprep.mubr.f32.mxu1 %v9700_v24  ;;  %v8960_v55 = vpop.f32.mrb[66].mxu0 }
 0x257   :  { %9701 = vst [vmem:[#allocation19_spill] sm:$0xff] %v8960_v55  ;;  %v8962_v7 = vpop.f32.mrb[67].mxu0  ;;  %v9716_v55 = vld [vmem:[#allocation31_spill] sm:$0xff] }
 0x258   :  { %9702 = vst [vmem:[#allocation20_spill] sm:$0xff] %v8962_v7  ;;  %v9712_v7 = vld [vmem:[#allocation27_spill] sm:$0xff] }
 0x259   :  { %6063 = vmatmul.mubr.f32.gmra.mrb[24].mxu1 %v9703_v21 }
 0x25a   :  { %6065 = vmatprep.mubr.f32.mxu1 %v9704_v62  ;;  %v8966_v49 = vpop.f32.mrb[68].mxu0 }
 0x25b   :  { %9705 = vst [vmem:[#allocation21_spill] sm:$0xff] %v8966_v49  ;;  %v8968_v31 = vpop.f32.mrb[69].mxu0  ;;  %v9713_v49 = vld [vmem:[#allocation28_spill] sm:$0xff] }
 0x25c   :  { %9706 = vst [vmem:[#allocation22_spill] sm:$0xff] %v8968_v31 }
 0x25d   :  { %6066 = vmatmul.mubr.f32.gmra.mrb[26].mxu1 %v9707_v3 }
 0x25e   :  { %6068 = vmatprep.mubr.f32.mxu1 %v9708_v26  ;;  %v8972_v37 = vpop.f32.mrb[70].mxu0  ;;  %v9715_v26 = vld [vmem:[#allocation30_spill] sm:$0xff] }
 0x25f   :  { %9709 = vst [vmem:[#allocation23_spill] sm:$0xff] %v8972_v37  ;;  %v8974_v24 = vpop.f32.mrb[71].mxu0  ;;  %v2844_v37 = vld [vmem:[#allocation2 + $0x137] sm:$0xff] }
 0x260   :  { %9710 = vst [vmem:[#allocation24_spill] sm:$0xff] %v8974_v24  ;;  %v2845_v24 = vld [vmem:[#allocation2 + $0x13f] sm:$0xff] }
 0x261   :  { %6069 = vmatmul.mubr.f32.gmra.mrb[28].mxu1 %v9711_v33 }
 0x262   :  { %6071 = vmatprep.mubr.f32.mxu1 %v9712_v7  ;;  %v8978_v21 = vpop.f32.mrb[72].mxu0 }
 0x263   :  { %v8980_v62 = vpop.f32.mrb[73].mxu0 }
 0x265   :  { %6072 = vmatmul.mubr.f32.gmra.mrb[30].mxu1 %v9713_v49 }
 0x266   :  { %6074 = vmatprep.mubr.f32.mxu1 %v9714_v48  ;;  %v8984_v31 = vpop.f32.mrb[74].mxu0  ;;  %v9717_v48 = vld [vmem:[#allocation32_spill] sm:$0xff] }
 0x267   :  { %v8986_v3 = vpop.f32.mrb[75].mxu0 }
 0x269   :  { %6075 = vmatmul.mubr.f32.gmra.mrb[32].mxu1 %v9715_v26 }
 0x26a   :  { %6077 = vmatprep.mubr.f32.mxu1 %v2844_v37  ;;  %v8989_v33 = vpop.f32.mrb[76].mxu0  ;;  %v9719_v37 = vld [vmem:[#allocation6_spill] sm:$0xff] }
 0x26b   :  { %v8991_v7 = vpop.f32.mrb[77].mxu0 }
 0x26d   :  { %6078 = vmatmul.mubr.f32.gmra.mrb[34].mxu1 %v2845_v24 }
 0x26e   :  { %6112 = vmatprep.mubr.f32.mxu1 %v9716_v55  ;;  %v8994_v42 = vpop.f32.mrb[78].mxu0 }
 0x26f   :  { %v8996_v49 = vpop.f32.mrb[79].mxu0 }
 0x271   :  { %6113 = vmatmul.mubr.f32.vlgmr.msra.gmra.mrb[0].mxu1 %v9717_v48  ;;  %v9720_v48 = vld [vmem:[#allocation7_spill] sm:$0xff] }
 0x272   :  { %6934 = vmatpush3.bf16.msra.mxu1 %v9686_v11  ;;  %6115 = vmatprep.mubr.f32.mxu1 %v9718_v41  ;;  %v9001_v26 = vpop.f32.mrb[80].mxu0 }
 0x273   :  { %6927 = vmatprep.subr.bf16.mxu1 %v9719_v37  ;;  %v9004_v9 = vpop.f32.mrb[81].mxu0 }
 0x275   :  { %6116 = vmatmul.mubr.f32.gmra.mrb[2].mxu1 %v8608_v23  ;;  %v9721_v23 = vld [vmem:[#allocation8_spill] sm:$0xff] }
 0x276   :  { %6118 = vmatprep.mubr.f32.mxu1 %v8618_v54  ;;  %6935 = vmatpush3.bf16.msra.mxu1 %v9719_v37  ;;  %v9009_v55 = vpop.f32.mrb[82].mxu0 }
 0x277   :  { %v9011_v24 = vpop.f32.mrb[83].mxu0  ;;  %6928 = vmatprep.subr.bf16.mxu1 %v9720_v48 }
 0x279   :  { %6119 = vmatmul.mubr.f32.gmra.mrb[4].mxu1 %v8622_v52  ;;  %v9722_v52 = vld [vmem:[#allocation9_spill] sm:$0xff] }
 0x27a   :  { %6121 = vmatprep.mubr.f32.mxu1 %v8632_v53  ;;  %v9016_v41 = vpop.f32.mrb[84].mxu0  ;;  %6936 = vmatpush3.bf16.msra.mxu1 %v9720_v48 }
 0x27b   :  { %v9019_v11 = vpop.f32.mrb[85].mxu0  ;;  %6929 = vmatprep.subr.bf16.mxu1 %v9721_v23 }
 0x27d   :  { %6122 = vmatmul.mubr.f32.gmra.mrb[6].mxu1 %v8636_v34  ;;  %v9723_v34 = vld [vmem:[#allocation10_spill] sm:$0xff] }
 0x27e   :  { %6124 = vmatprep.mubr.f32.mxu1 %v8646_v8  ;;  %v9024_v54 = vpop.f32.mrb[86].mxu0  ;;  %6937 = vmatpush3.bf16.msra.mxu1 %v9721_v23 }
 0x27f   :  { %v9027_v37 = vpop.f32.mrb[87].mxu0  ;;  %6930 = vmatprep.subr.bf16.mxu1 %v9722_v52 }
 0x281   :  { %6125 = vmatmul.mubr.f32.gmra.mrb[8].mxu1 %v8650_v2  ;;  %v9724_v2 = vld [vmem:[#allocation11_spill] sm:$0xff] }
 0x282   :  { %6127 = vmatprep.mubr.f32.mxu1 %v8660_v17  ;;  %v9032_v53 = vpop.f32.mrb[88].mxu0  ;;  %6938 = vmatpush3.bf16.msra.mxu1 %v9722_v52 }
 0x283   :  { %v9035_v48 = vpop.f32.mrb[89].mxu0  ;;  %6931 = vmatprep.subr.bf16.mxu1 %v9723_v34 }
 0x285   :  { %6128 = vmatmul.mubr.f32.gmra.mrb[10].mxu1 %v8664_v39  ;;  %v9725_v39 = vld [vmem:[#allocation12_spill] sm:$0xff] }
 0x286   :  { %6130 = vmatprep.mubr.f32.mxu1 %v8674_v1  ;;  %v9040_v8 = vpop.f32.mrb[90].mxu0  ;;  %6939 = vmatpush3.bf16.msra.mxu1 %v9723_v34 }
 0x287   :  { %v9043_v23 = vpop.f32.mrb[91].mxu0  ;;  %6932 = vmatprep.subr.bf16.mxu1 %v9724_v2 }
 0x289   :  { %6131 = vmatmul.mubr.f32.gmra.mrb[12].mxu1 %v8678_v16 }
 0x28a   :  { %6133 = vmatprep.mubr.f32.mxu1 %v8682_v61  ;;  %v9048_v17 = vpop.f32.mrb[92].mxu0  ;;  %6940 = vmatpush3.bf16.msra.mxu1 %v9724_v2  ;;  %v3175_v2 = vld [vmem:[#allocation2 + $0x120] sm:$0xff] }
 0x28b   :  { %v9051_v52 = vpop.f32.mrb[93].mxu0  ;;  %6933 = vmatprep.subr.bf16.mxu1 %v9725_v39 }
 0x28d   :  { %6134 = vmatmul.mubr.f32.gmra.mrb[14].mxu1 %v8686_v22 }
 0x28e   :  { %6136 = vmatprep.mubr.f32.mxu1 %v8690_v28  ;;  %v9056_v1 = vpop.f32.mrb[94].mxu0  ;;  %6941 = vmatpush3.bf16.msra.mxu1 %v9725_v39  ;;  %v3509_v39 = vld [vmem:[#allocation2 + $0x121] sm:$0xff] }
 0x28f   :  { %v9059_v34 = vpop.f32.mrb[95].mxu0 }
 0x291   :  { %6137 = vmatmul.mubr.f32.gmra.mrb[16].mxu1 %v8694_v29  ;;  %v3170_v29 = vld [vmem:[#allocation2 + $0xf8] sm:$0xff] }
 0x292   :  { %6139 = vmatprep.mubr.f32.mxu1 %v8698_v47  ;;  %v9063_v16 = vpop.f32.mrb[96].mxu0  ;;  %v3172_v47 = vld [vmem:[#allocation2 + $0x108] sm:$0xff] }
 0x293   :  { %v9065_v61 = vpop.f32.mrb[97].mxu0 }
 0x295   :  { %6140 = vmatmul.mubr.f32.gmra.mrb[18].mxu1 %v8702_v5  ;;  %v3173_v5 = vld [vmem:[#allocation2 + $0x110] sm:$0xff] }
 0x296   :  { %6142 = vmatprep.mubr.f32.mxu1 %v8706_v6  ;;  %v9069_v22 = vpop.f32.mrb[98].mxu0  ;;  %v3174_v6 = vld [vmem:[#allocation2 + $0x118] sm:$0xff] }
 0x297   :  { %v9071_v28 = vpop.f32.mrb[99].mxu0 }
 0x299   :  { %6143 = vmatmul.mubr.f32.gmra.mrb[20].mxu1 %v8710_v14  ;;  %v3176_v14 = vld [vmem:[#allocation2 + $0x128] sm:$0xff] }
 0x29a   :  { %6145 = vmatprep.mubr.f32.mxu1 %v8713_v27  ;;  %v3177_v27 = vld [vmem:[#allocation2 + $0x130] sm:$0xff] }
 0x29d   :  { %6146 = vmatmul.mubr.f32.gmra.mrb[22].mxu1 %v8716_v4  ;;  %v9079_v4 = vld [vmem:[#allocation2 + $0x8] sm:$0xff] }
 0x29e   :  { %6148 = vmatprep.mubr.f32.mxu1 %v8719_v18  ;;  %v3506_v18 = vld [vmem:[#allocation2 + $0x109] sm:$0xff] }
 0x2a1   :  { %6149 = vmatmul.mubr.f32.gmra.mrb[24].mxu1 %v8722_v19  ;;  %v3507_v19 = vld [vmem:[#allocation2 + $0x111] sm:$0xff] }
 0x2a2   :  { %6151 = vmatprep.mubr.f32.mxu1 %v3170_v29  ;;  %v3512_v29 = vld [vmem:[#allocation2 + $0x139] sm:$0xff] }
 0x2a5   :  { %6152 = vmatmul.mubr.f32.gmra.mrb[26].mxu1 %v8726_v57  ;;  %v3508_v57 = vld [vmem:[#allocation2 + $0x119] sm:$0xff] }
 0x2a6   :  { %6154 = vmatprep.mubr.f32.mxu1 %v3172_v47  ;;  %v3513_v47 = vld [vmem:[#allocation2 + $0x141] sm:$0xff] }
 0x2a9   :  { %6155 = vmatmul.mubr.f32.gmra.mrb[28].mxu1 %v3173_v5  ;;  %v3944_v5 = vld [vmem:[%s9605_s10 + $0x50] sm:$0xff] }
 0x2aa   :  { %6157 = vmatprep.mubr.f32.mxu1 %v3174_v6  ;;  %v3945_v6 = vld [vmem:[%s9605_s10 + $0x58] sm:$0xff] }
 0x2ad   :  { %6158 = vmatmul.mubr.f32.gmra.mrb[30].mxu1 %v3175_v2  ;;  %v6818_v2 = vpack.c.bf16 %v3945_v6, %v3944_v5  ;;  %v9108_v5 = vld [vmem:[%s9606_s8] ss:$0 sm:$0xff] }
 0x2ae   :  { %6160 = vmatprep.mubr.f32.mxu1 %v3176_v14 }
 0x2af   :  { %6819 = vmatprep.subr.bf16.mxu0 %v6818_v2 }
 0x2b0   :  { %6821 = vmatpush3.bf16.msra.mxu0 %v6818_v2 }
 0x2b1   :  { %6161 = vmatmul.mubr.f32.gmra.mrb[32].mxu1 %v3177_v27  ;;  %v3948_v27 = vld [vmem:[%s9605_s10 + $0x70] sm:$0xff] }
 0x2b2   :  { %6163 = vmatprep.mubr.f32.mxu1 %v9079_v4 }
 0x2b5   :  { %6164 = vmatmul.mubr.f32.gmra.mrb[34].mxu1 %v9079_v4 }
 0x2b6   :  { %6240 = vmatprep.mubr.f32.mxu1 %v3506_v18  ;;  %v3949_v18 = vld [vmem:[%s9605_s10 + $0x78] sm:$0xff] }
 0x2b9   :  { %6241 = vmatmul.mubr.f32.vlgmr.msra.gmra.mrb[28].mxu1 %v3507_v19  ;;  %v6826_v19 = vpack.c.bf16 %v3949_v18, %v3948_v27 }
 0x2ba   :  { %6243 = vmatprep.mubr.f32.mxu1 %v3508_v57  ;;  %v9650_v57 = vmov 0.0|0.0  }
 0x2bd   :  { %6244 = vmatmul.mubr.f32.gmra.mrb[30].mxu1 %v3509_v39 }
 0x2be   :  { %6246 = vmatprep.mubr.f32.mxu1 %v8804_v13  ;;  %v3946_v13 = vld [vmem:[%s9605_s10 + $0x60] sm:$0xff] }
 0x2c1   :  { %6247 = vmatmul.mubr.f32.gmra.mrb[32].mxu1 %v8811_v50  ;;  %v3947_v50 = vld [vmem:[%s9605_s10 + $0x68] sm:$0xff] }
 0x2c2   :  { %6249 = vmatprep.mubr.f32.mxu1 %v3512_v29  ;;  %v6822_v14 = vpack.c.bf16 %v3947_v50, %v3946_v13  ;;  %v9115_v13 = vld [vmem:[%s9607_s9] ss:$0 sm:$0xff] }
 0x2c4   :  { %6823 = vmatprep.subr.bf16.mxu0 %v6822_v14 }
 0x2c5   :  { %6250 = vmatmul.mubr.f32.gmra.mrb[34].mxu1 %v3513_v47  ;;  %6825 = vmatpush3.bf16.msra.mxu0 %v6822_v14 }
 0x2c6   :  { %6827 = vmatprep.subr.bf16.mxu0 %v6826_v19 }
 0x2c9   :  { %6829 = vmatpush3.bf16.msra.mxu0 %v6826_v19 }
 0x2ca   :  { %6830 = vmatprep.subr.bf16.mxu0 %v9650_v57 }
 0x344   :  { %v6114_v39 = vpop.f32.mrb[0].mxu1 }
 0x345   :  { %v6942_v29 = vadd.f32 %v6114_v39, %v8793_v63  ;;  %v3263_v47 = vpop.f32.mrb[1].mxu1 }
 0x346   :  { %v6944_v6 = vadd.f32 %v3263_v47, %v8795_v12 }
 0x347   :  { %v6943_v2 = vadd.f32 %v6942_v29, %v8978_v21  ;;  %v4175_v29 = vld [vmem:[%s9608_s11] sm:$0xff] }
 0x348   :  { %v6945_v50 = vadd.f32 %v6944_v6, %v8980_v62  ;;  %v6117_v14 = vpop.f32.mrb[2].mxu1  ;;  %v4176_v62 = vld [vmem:[%s9608_s11 + $0x8] sm:$0xff] }
 0x349   :  { %v3820_v63 = vmul.f32 %v6943_v2, %v9108_v5  ;;  %v6946_v27 = vadd.f32 %v6117_v14, %v8799_v60  ;;  %v3273_v18 = vpop.f32.mrb[3].mxu1 }
 0x34a   :  { %v3819_v19 = vmul.f32 %v6945_v50, %v9108_v5  ;;  %v6948_v39 = vadd.f32 %v3273_v18, %v8801_v45 }
 0x34b   :  { %v3863_v12 = vadd.f32 %v9115_v13, %v3820_v63  ;;  %v6947_v21 = vadd.f32 %v6946_v27, %v8984_v31  ;;  %v9136_v27 = vpack.c.bf16 %v4176_v62, %v4175_v29 }
 0x34c   :  { %v6949_v47 = vadd.f32 %v6948_v39, %v8986_v3  ;;  %v6120_v60 = vpop.f32.mrb[4].mxu1  ;;  %v3862_v6 = vadd.f32 %v9115_v13, %v3819_v19  ;;  %v4177_v19 = vld [vmem:[%s9608_s11 + $0x10] sm:$0xff] }
 0x34d   :  { %v3822_v2 = vmul.f32 %v6947_v21, %v9108_v5  ;;  %v6950_v45 = vadd.f32 %v6120_v60, %v8807_v40  ;;  %v3283_v50 = vpop.f32.mrb[5].mxu1  ;;  %v3899_v18 = vmax.f32 %v3863_v12, 0.0  ;;  %v4178_v40 = vld [vmem:[%s9608_s11 + $0x18] sm:$0xff] }
 0x34e   :  { %v3821_v31 = vmul.f32 %v6949_v47, %v9108_v5  ;;  %v6952_v14 = vadd.f32 %v3283_v50, %v8809_v0  ;;  %v3898_v63 = vmax.f32 %v3862_v6, 0.0  ;;  %v9153_v6 = vpack.c.bf16 %v4178_v40, %v4177_v19 }
 0x34f   :  { %v6951_v57 = vadd.f32 %v6950_v45, %v8989_v33  ;;  %v3865_v3 = vadd.f32 %v9115_v13, %v3822_v2  ;;  %v9726_v50 = vmov 0.0|0.0  }
 0x350   :  { %v6953_v39 = vadd.f32 %v6952_v14, %v8991_v7  ;;  %v6123_v21 = vpop.f32.mrb[6].mxu1  ;;  %6284 = vmatprep.mubr.f32.mxu0 %v3898_v63  ;;  %v3864_v0 = vadd.f32 %v9115_v13, %v3821_v31 }
 0x351   :  { %v3824_v12 = vmul.f32 %v6951_v57, %v9108_v5  ;;  %v6954_v33 = vadd.f32 %v6123_v21, %v8821_v36  ;;  %v3293_v29 = vpop.f32.mrb[7].mxu1  ;;  %6285 = vmatmul.mubr.f32.vlgmr.msra.gmra.mrb[100].mxu0 %v3899_v18  ;;  %v3901_v2 = vmax.f32 %v3865_v3, 0.0  ;;  %v4179_v36 = vld [vmem:[%s9608_s11 + $0x20] sm:$0xff] }
 0x352   :  { %v3823_v62 = vmul.f32 %v6953_v39, %v9108_v5  ;;  %v6956_v47 = vadd.f32 %v3293_v29, %v8823_v58  ;;  %v3900_v60 = vmax.f32 %v3864_v0, 0.0  ;;  %6832 = vmatpush3.bf16.msra.mxu0 %v9136_v27  ;;  %v4180_v58 = vld [vmem:[%s9608_s11 + $0x28] sm:$0xff] }
 0x353   :  { %v6955_v7 = vadd.f32 %v6954_v33, %v8994_v42  ;;  %v3867_v45 = vadd.f32 %v9115_v13, %v3824_v12  ;;  %6833 = vmatprep.subr.bf16.mxu0 %v9726_v50  ;;  %v9171_v39 = vpack.c.bf16 %v4180_v58, %v4179_v36 }
 0x354   :  { %v6957_v57 = vadd.f32 %v6956_v47, %v8996_v49  ;;  %v6126_v31 = vpop.f32.mrb[8].mxu1  ;;  %6287 = vmatprep.mubr.f32.mxu0 %v3900_v60  ;;  %v3866_v14 = vadd.f32 %v9115_v13, %v3823_v62 }
 0x355   :  { %v3826_v42 = vmul.f32 %v6955_v7, %v9108_v5  ;;  %v6958_v63 = vadd.f32 %v6126_v31, %v8833_v25  ;;  %v3303_v18 = vpop.f32.mrb[9].mxu1  ;;  %6288 = vmatmul.mubr.f32.gmra.mrb[102].mxu0 %v3901_v2  ;;  %v3903_v21 = vmax.f32 %v3867_v45, 0.0  ;;  %v4181_v25 = vld [vmem:[%s9608_s11 + $0x30] sm:$0xff] }
 0x356   :  { %v3825_v3 = vmul.f32 %v6957_v57, %v9108_v5  ;;  %v6960_v19 = vadd.f32 %v3303_v18, %v8835_v38  ;;  %v3902_v40 = vmax.f32 %v3866_v14, 0.0  ;;  %6835 = vmatpush3.bf16.msra.mxu0 %v9153_v6  ;;  %v4182_v38 = vld [vmem:[%s9608_s11 + $0x38] sm:$0xff] }
 0x357   :  { %v6959_v49 = vadd.f32 %v6958_v63, %v9001_v26  ;;  %v3869_v0 = vadd.f32 %v9115_v13, %v3826_v42  ;;  %6836 = vmatprep.subr.bf16.mxu0 %v9726_v50  ;;  %v9189_v45 = vpack.c.bf16 %v4182_v38, %v4181_v25 }
 0x358   :  { %v6961_v12 = vadd.f32 %v6960_v19, %v9004_v9  ;;  %v6129_v33 = vpop.f32.mrb[10].mxu1  ;;  %6290 = vmatprep.mubr.f32.mxu0 %v3902_v40  ;;  %v3868_v29 = vadd.f32 %v9115_v13, %v3825_v3 }
 0x359   :  { %v3828_v26 = vmul.f32 %v6959_v49, %v9108_v5  ;;  %v6962_v62 = vadd.f32 %v6129_v33, %v8845_v44  ;;  %v3313_v47 = vpop.f32.mrb[11].mxu1  ;;  %6291 = vmatmul.mubr.f32.gmra.mrb[104].mxu0 %v3903_v21  ;;  %v3905_v36 = vmax.f32 %v3869_v0, 0.0  ;;  %v4183_v44 = vld [vmem:[%s9608_s11 + $0x40] sm:$0xff] }
 0x35a   :  { %v3827_v60 = vmul.f32 %v6961_v12, %v9108_v5  ;;  %v6964_v7 = vadd.f32 %v3313_v47, %v8847_v46  ;;  %v3904_v2 = vmax.f32 %v3868_v29, 0.0  ;;  %6838 = vmatpush3.bf16.msra.mxu0 %v9171_v39  ;;  %v4184_v46 = vld [vmem:[%s9608_s11 + $0x48] sm:$0xff] }
 0x35b   :  { %v6963_v9 = vadd.f32 %v6962_v62, %v9009_v55  ;;  %v3871_v58 = vadd.f32 %v9115_v13, %v3828_v26  ;;  %6839 = vmatprep.subr.bf16.mxu0 %v9726_v50  ;;  %v9207_v40 = vpack.c.bf16 %v4184_v46, %v4183_v44 }
 0x35c   :  { %v6965_v57 = vadd.f32 %v6964_v7, %v9011_v24  ;;  %v6132_v31 = vpop.f32.mrb[12].mxu1  ;;  %6293 = vmatprep.mubr.f32.mxu0 %v3904_v2  ;;  %v3870_v14 = vadd.f32 %v9115_v13, %v3827_v60 }
 0x35d   :  { %v3830_v55 = vmul.f32 %v6963_v9, %v9108_v5  ;;  %v6966_v42 = vadd.f32 %v6132_v31, %v8857_v56  ;;  %v3323_v63 = vpop.f32.mrb[13].mxu1  ;;  %6294 = vmatmul.mubr.f32.gmra.mrb[106].mxu0 %v3905_v36  ;;  %v3907_v49 = vmax.f32 %v3871_v58, 0.0  ;;  %v4185_v56 = vld [vmem:[%s9608_s11 + $0x50] sm:$0xff] }
 0x35e   :  { %v3829_v18 = vmul.f32 %v6965_v57, %v9108_v5  ;;  %v6968_v3 = vadd.f32 %v3323_v63, %v8859_v15  ;;  %v3906_v19 = vmax.f32 %v3870_v14, 0.0  ;;  %6841 = vmatpush3.bf16.msra.mxu0 %v9189_v45  ;;  %v4186_v15 = vld [vmem:[%s9608_s11 + $0x58] sm:$0xff] }
 0x35f   :  { %v6967_v24 = vadd.f32 %v6966_v42, %v9016_v41  ;;  %v3873_v21 = vadd.f32 %v9115_v13, %v3830_v55  ;;  %6842 = vmatprep.subr.bf16.mxu0 %v9726_v50  ;;  %v9225_v47 = vpack.c.bf16 %v4186_v15, %v4185_v56 }
 0x360   :  { %v6969_v0 = vadd.f32 %v6968_v3, %v9019_v11  ;;  %v6135_v25 = vpop.f32.mrb[14].mxu1  ;;  %6296 = vmatprep.mubr.f32.mxu0 %v3906_v19  ;;  %v3872_v38 = vadd.f32 %v9115_v13, %v3829_v18 }
 0x361   :  { %v3832_v41 = vmul.f32 %v6967_v24, %v9108_v5  ;;  %v6970_v12 = vadd.f32 %v6135_v25, %v8869_v59  ;;  %v3333_v33 = vpop.f32.mrb[15].mxu1  ;;  %6297 = vmatmul.mubr.f32.gmra.mrb[108].mxu0 %v3907_v49  ;;  %v3909_v60 = vmax.f32 %v3873_v21, 0.0  ;;  %v4187_v59 = vld [vmem:[%s9608_s11 + $0x60] sm:$0xff] }
 0x362   :  { %v3831_v29 = vmul.f32 %v6969_v0, %v9108_v5  ;;  %v6972_v26 = vadd.f32 %v3333_v33, %v8871_v35  ;;  %v3908_v62 = vmax.f32 %v3872_v38, 0.0  ;;  %6844 = vmatpush3.bf16.msra.mxu0 %v9207_v40  ;;  %v4188_v35 = vld [vmem:[%s9608_s11 + $0x68] sm:$0xff] }
 0x363   :  { %v6971_v11 = vadd.f32 %v6970_v12, %v9024_v54  ;;  %v3875_v7 = vadd.f32 %v9115_v13, %v3832_v41  ;;  %6845 = vmatprep.subr.bf16.mxu0 %v9726_v50  ;;  %v9243_v14 = vpack.c.bf16 %v4188_v35, %v4187_v59  ;;  %v9727_v35 = vld [vmem:[#allocation13_spill] sm:$0xff] }
 0x364   :  { %v6973_v2 = vadd.f32 %v6972_v26, %v9027_v37  ;;  %v6138_v9 = vpop.f32.mrb[16].mxu1  ;;  %6299 = vmatprep.mubr.f32.mxu0 %v3908_v62  ;;  %v3874_v36 = vadd.f32 %v9115_v13, %v3831_v29 }
 0x365   :  { %v3834_v54 = vmul.f32 %v6971_v11, %v9108_v5  ;;  %v6974_v58 = vadd.f32 %v6138_v9, %v8881_v20  ;;  %v3343_v44 = vpop.f32.mrb[17].mxu1  ;;  %6300 = vmatmul.mubr.f32.gmra.mrb[110].mxu0 %v3909_v60  ;;  %v3911_v55 = vmax.f32 %v3875_v7, 0.0  ;;  %v4189_v20 = vld [vmem:[%s9608_s11 + $0x70] sm:$0xff] }
 0x366   :  { %v3833_v46 = vmul.f32 %v6973_v2, %v9108_v5  ;;  %v6976_v57 = vadd.f32 %v3343_v44, %v8883_v32  ;;  %v3910_v31 = vmax.f32 %v3874_v36, 0.0  ;;  %6847 = vmatpush3.bf16.msra.mxu0 %v9225_v47  ;;  %v4190_v32 = vld [vmem:[%s9608_s11 + $0x78] sm:$0xff] }
 0x367   :  { %v6975_v37 = vadd.f32 %v6974_v58, %v9032_v53  ;;  %v3877_v42 = vadd.f32 %v9115_v13, %v3834_v54  ;;  %6848 = vmatprep.subr.bf16.mxu0 %v9726_v50  ;;  %v9261_v15 = vpack.c.bf16 %v4190_v32, %v4189_v20 }
 0x368   :  { %v6977_v63 = vadd.f32 %v6976_v57, %v9035_v48  ;;  %v6141_v18 = vpop.f32.mrb[18].mxu1  ;;  %6302 = vmatprep.mubr.f32.mxu0 %v3910_v31  ;;  %v3876_v3 = vadd.f32 %v9115_v13, %v3833_v46 }
 0x369   :  { %v3836_v53 = vmul.f32 %v6975_v37, %v9108_v5  ;;  %v6978_v19 = vadd.f32 %v6141_v18, %v8893_v30  ;;  %v3353_v24 = vpop.f32.mrb[19].mxu1  ;;  %6303 = vmatmul.mubr.f32.gmra.mrb[112].mxu0 %v3911_v55  ;;  %v3913_v0 = vmax.f32 %v3877_v42, 0.0  ;;  %v9729_v55 = vld [vmem:[#allocation5_spill] sm:$0xff] }
 0x36a   :  { %v3835_v49 = vmul.f32 %v6977_v63, %v9108_v5  ;;  %v6980_v21 = vadd.f32 %v3353_v24, %v8895_v43  ;;  %v3912_v56 = vmax.f32 %v3876_v3, 0.0  ;;  %6850 = vmatpush3.bf16.msra.mxu0 %v9243_v14  ;;  %v9730_v63 = vld [vmem:[#allocation14_spill] sm:$0xff] }
 0x36b   :  { %v6979_v48 = vadd.f32 %v6978_v19, %v9040_v8  ;;  %v3879_v25 = vadd.f32 %v9115_v13, %v3836_v53  ;;  %6851 = vmatprep.subr.bf16.mxu0 %v9726_v50 }
 0x36c   :  { %v6981_v30 = vadd.f32 %v6980_v21, %v9043_v23  ;;  %v6144_v38 = vpop.f32.mrb[20].mxu1  ;;  %6305 = vmatprep.mubr.f32.mxu0 %v3912_v56  ;;  %v3878_v41 = vadd.f32 %v9115_v13, %v3835_v49  ;;  %v9731_v56 = vld [vmem:[#allocation15_spill] sm:$0xff] }
 0x36d   :  { %v3838_v43 = vmul.f32 %v6979_v48, %v9108_v5  ;;  %v6982_v12 = vadd.f32 %v6144_v38, %v8899_v10  ;;  %v3363_v33 = vpop.f32.mrb[21].mxu1  ;;  %6306 = vmatmul.mubr.f32.gmra.mrb[114].mxu0 %v3913_v0  ;;  %v3915_v23 = vmax.f32 %v3879_v25, 0.0 }
 0x36e   :  { %v3837_v29 = vmul.f32 %v6981_v30, %v9108_v5  ;;  %v6984_v8 = vadd.f32 %v3363_v33, %v8901_v51  ;;  %v3914_v26 = vmax.f32 %v3878_v41, 0.0  ;;  %6853 = vmatpush3.bf16.msra.mxu0 %v9261_v15  ;;  %v9732_v30 = vld [vmem:[#allocation16_spill] sm:$0xff] }
 0x36f   :  { %v6983_v62 = vadd.f32 %v6982_v12, %v9048_v17  ;;  %v3881_v11 = vadd.f32 %v9115_v13, %v3838_v43  ;;  %6854 = vmatprep.subr.bf16.mxu0 %v9726_v50  ;;  %v9728_v17 = vld [vmem:[#allocation34_spill] sm:$0xff] }
 0x370   :  { %v6985_v60 = vadd.f32 %v6984_v8, %v9051_v52  ;;  %v6147_v7 = vpop.f32.mrb[22].mxu1  ;;  %6308 = vmatprep.mubr.f32.mxu0 %v3914_v26  ;;  %v3880_v10 = vadd.f32 %v9115_v13, %v3837_v29 }
 0x371   :  { %v3840_v59 = vmul.f32 %v6983_v62, %v9108_v5  ;;  %v6986_v51 = vadd.f32 %v6147_v7, %v9727_v35  ;;  %v3373_v2 = vpop.f32.mrb[23].mxu1  ;;  %6309 = vmatmul.mubr.f32.gmra.mrb[116].mxu0 %v3915_v23  ;;  %v3917_v44 = vmax.f32 %v3881_v11, 0.0 }
 0x372   :  { %v3839_v9 = vmul.f32 %v6985_v60, %v9108_v5  ;;  %v6988_v36 = vadd.f32 %v3373_v2, %v9728_v17  ;;  %v3916_v54 = vmax.f32 %v3880_v10, 0.0  ;;  %v9735_v2 = vld [vmem:[#allocation18_spill] sm:$0xff] }
 0x373   :  { %v6987_v58 = vadd.f32 %v6986_v51, %v9056_v1  ;;  %v3883_v52 = vadd.f32 %v9115_v13, %v3840_v59  ;;  %v9734_v59 = vld [vmem:[#allocation17_spill] sm:$0xff] }
 0x374   :  { %v6989_v46 = vadd.f32 %v6988_v36, %v9059_v34  ;;  %v6150_v57 = vpop.f32.mrb[24].mxu1  ;;  %6311 = vmatprep.mubr.f32.mxu0 %v3916_v54  ;;  %v3882_v31 = vadd.f32 %v9115_v13, %v3839_v9 }
 0x375   :  { %v3842_v37 = vmul.f32 %v6987_v58, %v9108_v5  ;;  %v6990_v42 = vadd.f32 %v6150_v57, %v9729_v55  ;;  %v3383_v20 = vpop.f32.mrb[25].mxu1  ;;  %6312 = vmatmul.mubr.f32.gmra.mrb[118].mxu0 %v3917_v44  ;;  %v3919_v53 = vmax.f32 %v3883_v52, 0.0  ;;  %v9736_v44 = vld [vmem:[#allocation19_spill] sm:$0xff] }
 0x376   :  { %v3841_v32 = vmul.f32 %v6989_v46, %v9108_v5  ;;  %v6992_v18 = vadd.f32 %v3383_v20, %v9730_v63  ;;  %v3918_v1 = vmax.f32 %v3882_v31, 0.0  ;;  %v9737_v31 = vld [vmem:[#allocation20_spill] sm:$0xff] }
 0x377   :  { %v6991_v3 = vadd.f32 %v6990_v42, %v9063_v16  ;;  %v3885_v34 = vadd.f32 %v9115_v13, %v3842_v37 }
 0x378   :  { %v6993_v19 = vadd.f32 %v6992_v18, %v9065_v61  ;;  %v6153_v24 = vpop.f32.mrb[26].mxu1  ;;  %6314 = vmatprep.mubr.f32.mxu0 %v3918_v1  ;;  %v3884_v49 = vadd.f32 %v9115_v13, %v3841_v32  ;;  %v9738_v1 = vld [vmem:[#allocation21_spill] sm:$0xff] }
 0x379   :  { %v3844_v21 = vmul.f32 %v6991_v3, %v9108_v5  ;;  %v6994_v48 = vadd.f32 %v6153_v24, %v9731_v56  ;;  %v3393_v0 = vpop.f32.mrb[27].mxu1  ;;  %6315 = vmatmul.mubr.f32.gmra.mrb[120].mxu0 %v3919_v53  ;;  %v3921_v43 = vmax.f32 %v3885_v34, 0.0  ;;  %v9739_v24 = vld [vmem:[#allocation22_spill] sm:$0xff] }
 0x37a   :  { %v3843_v25 = vmul.f32 %v6993_v19, %v9108_v5  ;;  %v6996_v38 = vadd.f32 %v3393_v0, %v9732_v30  ;;  %v3920_v16 = vmax.f32 %v3884_v49, 0.0 }
 0x37b   :  { %v6995_v41 = vadd.f32 %v6994_v48, %v9069_v22  ;;  %v3887_v61 = vadd.f32 %v9115_v13, %v3844_v21 }
 0x37c   :  { %v6997_v12 = vadd.f32 %v6996_v38, %v9071_v28  ;;  %6317 = vmatprep.mubr.f32.mxu0 %v3920_v16  ;;  %v3886_v33 = vadd.f32 %v9115_v13, %v3843_v25  ;;  %v9733_v28 = vld [vmem:[#allocation3_spill] sm:$0xff] }
 0x37d   :  { %v3846_v29 = vmul.f32 %v6995_v41, %v9108_v5  ;;  %6318 = vmatmul.mubr.f32.gmra.mrb[122].mxu0 %v3921_v43  ;;  %v3923_v62 = vmax.f32 %v3887_v61, 0.0  ;;  %v4224_v7 = vrot.slane %v9733_v28, 4  ;;  %v9740_v38 = vld [vmem:[#allocation23_spill] sm:$0xff] }
 0x37e   :  { %v3845_v8 = vmul.f32 %v6997_v12, %v9108_v5  ;;  %v3922_v26 = vmax.f32 %v3886_v33, 0.0  ;;  %v9741_v12 = vld [vmem:[#allocation24_spill] sm:$0xff] }
 0x37f   :  { %v3889_v23 = vadd.f32 %v9115_v13, %v3846_v29  ;;  %v4225_v17 = vadd.f32 %v4224_v7, %v9733_v28 }
 0x380   :  { %6320 = vmatprep.mubr.f32.mxu0 %v3922_v26  ;;  %v3888_v22 = vadd.f32 %v9115_v13, %v3845_v8 }
 0x381   :  { %6321 = vmatmul.mubr.f32.gmra.mrb[124].mxu0 %v3923_v62  ;;  %v3925_v60 = vmax.f32 %v3889_v23, 0.0  ;;  %v4226_v42 = vrot.slane %v4225_v17, 2 }
 0x382   :  { %v3924_v11 = vmax.f32 %v3888_v22, 0.0 }
 0x383   :  { %v4227_v56 = vadd.f32 %v4226_v42, %v4225_v17  ;;  %v4195_v17 = vld [vmem:[%s9609_s12 + $0x20] sm:$0xff] }
 0x384   :  { %6323 = vmatprep.mubr.f32.mxu0 %v3924_v11 }
 0x385   :  { %6324 = vmatmul.mubr.f32.gmra.mrb[126].mxu0 %v3925_v60  ;;  %v4228_v26 = vrot.slane %v4227_v56, 1 }
 0x387   :  { %v4229_v28 = vadd.f32 %v4228_v26, %v4227_v56 }
 0x38c   :  { %v6242_v10 = vpop.f32.mrb[28].mxu1 }
 0x38d   :  { %v6998_v35 = vadd.f32 %v6242_v10, %v9734_v59  ;;  %v3737_v51 = vpop.f32.mrb[29].mxu1  ;;  %v4230_v59 = vmul.f32 0.015625, %v4229_v28 }
 0x38e   :  { %v6999_v9 = vadd.f32 %v3737_v51, %v9735_v2  ;;  %v4194_v2 = vld [vmem:[%s9609_s12 + $0x18] sm:$0xff] }
 0x38f   :  { %v3848_v36 = vmul.f32 %v6998_v35, %v9108_v5  ;;  %v4193_v35 = vld [vmem:[%s9609_s12 + $0x10] sm:$0xff] }
 0x390   :  { %v3847_v54 = vmul.f32 %v6999_v9, %v9108_v5  ;;  %v6245_v58 = vpop.f32.mrb[30].mxu1  ;;  %v9351_v9 = vpack.c.bf16 %v4194_v2, %v4193_v35 }
 0x391   :  { %v7000_v52 = vadd.f32 %v6245_v58, %v9736_v44  ;;  %v3747_v46 = vpop.f32.mrb[31].mxu1  ;;  %v3891_v57 = vadd.f32 %v9115_v13, %v3848_v36  ;;  %v4196_v36 = vld [vmem:[%s9609_s12 + $0x28] sm:$0xff]  ;;  %v4197_v58 = vld [vmem:[%s9609_s12 + $0x30] sm:$0xff]  ;;  %v4198_v44 = vld [vmem:[%s9609_s12 + $0x38] sm:$0xff] }
 0x392   :  { %v7001_v37 = vadd.f32 %v3747_v46, %v9737_v31  ;;  %v3890_v55 = vadd.f32 %v9115_v13, %v3847_v54  ;;  %v9361_v54 = vpack.c.bf16 %v4196_v36, %v4195_v17  ;;  %v4199_v46 = vld [vmem:[%s9609_s12 + $0x40] sm:$0xff] }
 0x393   :  { %v3850_v20 = vmul.f32 %v7000_v52, %v9108_v5  ;;  %v3927_v34 = vmax.f32 %v3891_v57, 0.0  ;;  %v9371_v52 = vpack.c.bf16 %v4198_v44, %v4197_v58  ;;  %v4200_v57 = vld [vmem:[%s9609_s12 + $0x48] sm:$0xff] }
 0x394   :  { %v3849_v32 = vmul.f32 %v7001_v37, %v9108_v5  ;;  %v6248_v63 = vpop.f32.mrb[32].mxu1  ;;  %v3926_v18 = vmax.f32 %v3890_v55, 0.0  ;;  %v9382_v31 = vpack.c.bf16 %v4200_v57, %v4199_v46  ;;  %v4201_v37 = vld [vmem:[%s9609_s12 + $0x50] sm:$0xff]  ;;  %v4202_v55 = vld [vmem:[%s9609_s12 + $0x58] sm:$0xff] }
 0x395   :  { %v7002_v3 = vadd.f32 %v6248_v63, %v9738_v1  ;;  %v3757_v53 = vpop.f32.mrb[33].mxu1  ;;  %v3893_v19 = vadd.f32 %v9115_v13, %v3850_v20  ;;  %v9392_v42 = vpack.c.bf16 %v4202_v55, %v4201_v37  ;;  %v4203_v20 = vld [vmem:[%s9609_s12 + $0x60] sm:$0xff]  ;;  %v4206_v1 = vld [vmem:[%s9609_s12 + $0x78] sm:$0xff] }
 0x396   :  { %v7003_v49 = vadd.f32 %v3757_v53, %v9739_v24  ;;  %6326 = vmatprep.mubr.f32.mxu0 %v3926_v18  ;;  %v3892_v21 = vadd.f32 %v9115_v13, %v3849_v32  ;;  %v4204_v32 = vld [vmem:[%s9609_s12 + $0x68] sm:$0xff]  ;;  %v4205_v18 = vld [vmem:[%s9609_s12 + $0x70] sm:$0xff]  ;;  %v9742_v57 = vld [vmem:[#allocation4_spill] sm:$0xff] }
 0x397   :  { %v3852_v48 = vmul.f32 %v7002_v3, %v9108_v5  ;;  %6327 = vmatmul.mubr.f32.gmra.mrb[128].mxu0 %v3927_v34  ;;  %v3929_v43 = vmax.f32 %v3893_v19, 0.0  ;;  %v9402_v63 = vpack.c.bf16 %v4204_v32, %v4203_v20  ;;  %v9412_v3 = vpack.c.bf16 %v4206_v1, %v4205_v18 }
 0x398   :  { %v3851_v0 = vmul.f32 %v7003_v49, %v9108_v5  ;;  %v6251_v25 = vpop.f32.mrb[34].mxu1  ;;  %v3928_v30 = vmax.f32 %v3892_v21, 0.0  ;;  %v4423_v37 = vrot.slane %v9742_v57, 4 }
 0x399   :  { %v7004_v16 = vadd.f32 %v6251_v25, %v9740_v38  ;;  %v3767_v41 = vpop.f32.mrb[35].mxu1  ;;  %v3895_v61 = vadd.f32 %v9115_v13, %v3852_v48 }
 0x39a   :  { %v7005_v33 = vadd.f32 %v3767_v41, %v9741_v12  ;;  %6329 = vmatprep.mubr.f32.mxu0 %v3928_v30  ;;  %v3894_v29 = vadd.f32 %v9115_v13, %v3851_v0  ;;  %v4424_v55 = vadd.f32 %v4423_v37, %v9742_v57 }
 0x39b   :  { %v3854_v8 = vmul.f32 %v7004_v16, %v9108_v5  ;;  %6330 = vmatmul.mubr.f32.gmra.mrb[130].mxu0 %v3929_v43  ;;  %v3931_v22 = vmax.f32 %v3895_v61, 0.0 }
 0x39c   :  { %v3853_v62 = vmul.f32 %v7005_v33, %v9108_v5  ;;  %v3930_v23 = vmax.f32 %v3894_v29, 0.0  ;;  %v4191_v5 = vld [vmem:[%s9609_s12] sm:$0xff]  ;;  %v4425_v20 = vrot.slane %v4424_v55, 2 }
 0x39d   :  { %v3897_v11 = vadd.f32 %v9115_v13, %v3854_v8 }
 0x39e   :  { %6332 = vmatprep.mubr.f32.mxu0 %v3930_v23  ;;  %v3896_v60 = vadd.f32 %v9115_v13, %v3853_v62  ;;  %v4192_v13 = vld [vmem:[%s9609_s12 + $0x8] sm:$0xff] }
 0x39f   :  { %6333 = vmatmul.mubr.f32.gmra.mrb[132].mxu0 %v3931_v22  ;;  %v3933_v10 = vmax.f32 %v3897_v11, 0.0  ;;  %v9345_v51 = vpack.c.bf16 %v4192_v13, %v4191_v5 }
 0x3a0   :  { %v3932_v7 = vmax.f32 %v3896_v60, 0.0 }
 0x3a2   :  { %6335 = vmatprep.mubr.f32.mxu0 %v3932_v7 }
 0x3a3   :  { %6336 = vmatmul.mubr.f32.gmra.mrb[134].mxu0 %v3933_v10 }
 0x3a4   :  { %6370 = vmatprep.mubr.msk.f32.mxu0 %vm7264_vm0, %v9079_v4 }
 0x3a7   :  { %6371 = vmatmul.mubr.f32.vlgmr.msra.gmra.mrb[136].mxu0 %v4230_v59 }
 0x3a8   :  { %6405 = vmatprep.mubr.msk.f32.mxu0 %vm7264_vm0, %v9079_v4  ;;  %6856 = vmatpush3.bf16.msra.mxu0 %v9345_v51 }
 0x3a9   :  { %6857 = vmatprep.subr.bf16.mxu0 %v9726_v50 }
 0x3ac   :  { %6859 = vmatpush3.bf16.msra.mxu0 %v9351_v9 }
 0x3ad   :  { %6860 = vmatprep.subr.bf16.mxu0 %v9726_v50 }
 0x3b0   :  { %6862 = vmatpush3.bf16.msra.mxu0 %v9361_v54 }
 0x3b1   :  { %6863 = vmatprep.subr.bf16.mxu0 %v9726_v50 }
 0x3b4   :  { %6865 = vmatpush3.bf16.msra.mxu0 %v9371_v52 }
 0x3b5   :  { %6866 = vmatprep.subr.bf16.mxu0 %v9726_v50 }
 0x3b8   :  { %6868 = vmatpush3.bf16.msra.mxu0 %v9382_v31 }
 0x3b9   :  { %6869 = vmatprep.subr.bf16.mxu0 %v9726_v50 }
 0x3bc   :  { %6871 = vmatpush3.bf16.msra.mxu0 %v9392_v42 }
 0x3bd   :  { %6872 = vmatprep.subr.bf16.mxu0 %v9726_v50 }
 0x3c0   :  { %6874 = vmatpush3.bf16.msra.mxu0 %v9402_v63 }
 0x3c1   :  { %6875 = vmatprep.subr.bf16.mxu0 %v9726_v50 }
 0x3c4   :  { %6877 = vmatpush3.bf16.msra.mxu0 %v9412_v3 }
 0x3c5   :  { %6878 = vmatprep.subr.bf16.mxu0 %v9726_v50 }
 0x424   :  { %v6286_v53 = vpop.f32.mrb[100].mxu0 }
 0x425   :  { %v9416_v34 = vpop.f32.mrb[101].mxu0 }
 0x428   :  { %v6289_v19 = vpop.f32.mrb[102].mxu0 }
 0x429   :  { %v9418_v24 = vpop.f32.mrb[103].mxu0 }
 0x42c   :  { %v6292_v49 = vpop.f32.mrb[104].mxu0 }
 0x42d   :  { %v9420_v21 = vpop.f32.mrb[105].mxu0 }
 0x430   :  { %v6295_v56 = vpop.f32.mrb[106].mxu0 }
 0x431   :  { %v9422_v48 = vpop.f32.mrb[107].mxu0  ;;  %v7245_v56 = vld [vmem:[%s9598_s0] sm:$0xff] }
 0x434   :  { %v6298_v0 = vpop.f32.mrb[108].mxu0 }
 0x435   :  { %v9424_v25 = vpop.f32.mrb[109].mxu0 }
 0x438   :  { %v6301_v30 = vpop.f32.mrb[110].mxu0 }
 0x439   :  { %v9426_v38 = vpop.f32.mrb[111].mxu0 }
 0x43c   :  { %v6304_v16 = vpop.f32.mrb[112].mxu0 }
 0x43d   :  { %v9428_v41 = vpop.f32.mrb[113].mxu0  ;;  %v7249_v16 = vld [vmem:[%s9598_s0 + $0x40] sm:$0xff] }
 0x440   :  { %v6307_v43 = vpop.f32.mrb[114].mxu0 }
 0x441   :  { %v9430_v61 = vpop.f32.mrb[115].mxu0  ;;  %v7250_v43 = vld [vmem:[%s9598_s0 + $0x50] sm:$0xff] }
 0x444   :  { %v6310_v12 = vpop.f32.mrb[116].mxu0 }
 0x445   :  { %v4088_v33 = vpop.f32.mrb[117].mxu0  ;;  %v7251_v12 = vld [vmem:[%s9598_s0 + $0x60] sm:$0xff] }
 0x448   :  { %v6313_v29 = vpop.f32.mrb[118].mxu0 }
 0x449   :  { %v9432_v8 = vpop.f32.mrb[119].mxu0  ;;  %v7252_v29 = vld [vmem:[%s9598_s0 + $0x70] sm:$0xff] }
 0x44c   :  { %v6316_v26 = vpop.f32.mrb[120].mxu0 }
 0x44d   :  { %v9434_v62 = vpop.f32.mrb[121].mxu0 }
 0x450   :  { %v6319_v23 = vpop.f32.mrb[122].mxu0 }
 0x451   :  { %v9436_v22 = vpop.f32.mrb[123].mxu0 }
 0x454   :  { %v6322_v11 = vpop.f32.mrb[124].mxu0 }
 0x455   :  { %v9438_v60 = vpop.f32.mrb[125].mxu0 }
 0x458   :  { %v6325_v28 = vpop.f32.mrb[126].mxu0 }
 0x459   :  { %v9440_v7 = vpop.f32.mrb[127].mxu0 }
 0x46a   :  { %v6328_v10 = vpop.f32.mrb[128].mxu0 }
 0x46b   :  { %v9442_v59 = vpop.f32.mrb[129].mxu0 }
 0x46e   :  { %v6331_v5 = vpop.f32.mrb[130].mxu0 }
 0x46f   :  { %v9444_v13 = vpop.f32.mrb[131].mxu0 }
 0x472   :  { %v6334_v35 = vpop.f32.mrb[132].mxu0 }
 0x473   :  { %v9446_v2 = vpop.f32.mrb[133].mxu0 }
 0x476   :  { %v6337_v17 = vpop.f32.mrb[134].mxu0 }
 0x477   :  { %v4168_v36 = vpop.f32.mrb[135].mxu0 }
 0x47a   :  { %v4297_v58 = vpop.f32.mrb[136].mxu0 }
 0x47b   :  { %v4301_v44 = vmax.f32 %v4297_v58, 0.0  ;;  %v6372_v46 = vpop.f32.mrb[137].mxu0 }
 0x47d   :  { %6406 = vmatmul.mubr.f32.vlgmr.msra.gmra.mrb[138].mxu0 %v4301_v44 }
 0x47e   :  { %6880 = vmatpush3.bf16.msra.mxu0 %v9136_v27  ;;  %6440 = vmatprep.mubr.msk.f32.mxu0 %vm7264_vm0, %v9079_v4  ;;  %v4426_v27 = vadd.f32 %v4425_v20, %v4424_v55 }
 0x47f   :  { %6881 = vmatprep.subr.bf16.mxu0 %v9726_v50 }
 0x480   :  { %v4427_v32 = vrot.slane %v4426_v27, 1 }
 0x482   :  { %6883 = vmatpush3.bf16.msra.mxu0 %v9153_v6  ;;  %v4428_v6 = vadd.f32 %v4427_v32, %v4426_v27 }
 0x483   :  { %6884 = vmatprep.subr.bf16.mxu0 %v9726_v50 }
 0x486   :  { %6886 = vmatpush3.bf16.msra.mxu0 %v9171_v39  ;;  %v4429_v39 = vmul.f32 0.015625, %v4428_v6  ;;  %v7253_v6 = vld [vmem:[%s9598_s0 + $0x90] sm:$0xff] }
 0x487   :  { %6887 = vmatprep.subr.bf16.mxu0 %v9726_v50 }
 0x48a   :  { %6889 = vmatpush3.bf16.msra.mxu0 %v9189_v45 }
 0x48b   :  { %6890 = vmatprep.subr.bf16.mxu0 %v9726_v50 }
 0x48e   :  { %6892 = vmatpush3.bf16.msra.mxu0 %v9207_v40 }
 0x48f   :  { %6893 = vmatprep.subr.bf16.mxu0 %v9726_v50 }
 0x492   :  { %6895 = vmatpush3.bf16.msra.mxu0 %v9225_v47 }
 0x493   :  { %6896 = vmatprep.subr.bf16.mxu0 %v9726_v50 }
 0x496   :  { %6898 = vmatpush3.bf16.msra.mxu0 %v9243_v14 }
 0x497   :  { %6899 = vmatprep.subr.bf16.mxu0 %v9726_v50 }
 0x49a   :  { %6901 = vmatpush3.bf16.msra.mxu0 %v9261_v15 }
 0x49b   :  { %6902 = vmatprep.subr.bf16.mxu0 %v9726_v50 }
 0x49d   :  { %6441 = vmatmul.mubr.f32.vlgmr.msra.gmra.mrb[140].mxu0 %v4429_v39 }
 0x49e   :  { %6904 = vmatpush3.bf16.msra.mxu0 %v9345_v51  ;;  %6475 = vmatprep.mubr.msk.f32.mxu0 %vm7264_vm0, %v9079_v4  ;;  %v4378_v51 = vlaneseq }
 0x49f   :  { %6905 = vmatprep.subr.bf16.mxu0 %v9726_v50 }
 0x4a2   :  { %6907 = vmatpush3.bf16.msra.mxu0 %v9351_v9  ;;  %v4379_v9 = vshrl.u32 %v4378_v51, 7 }
 0x4a3   :  { %6908 = vmatprep.subr.bf16.mxu0 %v9726_v50 }
 0x4a6   :  { %6910 = vmatpush3.bf16.msra.mxu0 %v9361_v54  ;;  %v4380_v54 = vsub.s32 0, %v4379_v9 }
 0x4a7   :  { %6911 = vmatprep.subr.bf16.mxu0 %v9726_v50 }
 0x4aa   :  { %6913 = vmatpush3.bf16.msra.mxu0 %v9371_v52 }
 0x4ab   :  { %6914 = vmatprep.subr.bf16.mxu0 %v9726_v50 }
 0x4ae   :  { %6916 = vmatpush3.bf16.msra.mxu0 %v9382_v31 }
 0x4af   :  { %6917 = vmatprep.subr.bf16.mxu0 %v9726_v50 }
 0x4b2   :  { %6919 = vmatpush3.bf16.msra.mxu0 %v9392_v42 }
 0x4b3   :  { %6920 = vmatprep.subr.bf16.mxu0 %v9726_v50 }
 0x4b6   :  { %6922 = vmatpush3.bf16.msra.mxu0 %v9402_v63 }
 0x4b7   :  { %6923 = vmatprep.subr.bf16.mxu0 %v9726_v50 }
 0x4ba   :  { %6925 = vmatpush3.bf16.msra.mxu0 %v9412_v3 }
 0x550   :  { %v4368_v4 = vpop.f32.mrb[138].mxu0 }
 0x551   :  { %v4372_v45 = vsub.f32 0.0, %v4368_v4  ;;  %v6407_v40 = vpop.f32.mrb[139].mxu0  ;;  %v7258_v4 = vld [vmem:[%s9598_s0 + $0xe0] sm:$0xff] }
 0x552   :  { %v7259_v40 = vld [vmem:[%s9598_s0 + $0xf0] sm:$0xff] }
 0x553   :  { %v4373_v47 = vmul.f32 1.442695, %v4372_v45 }
 0x555   :  { %7236 = vpow2.f32 %v4373_v47 }
 0x55f   :  { %v7237_v14 = vpop.eup %7236 }
 0x560   :  { %v4375_v15 = vadd.f32 1.0, %v7237_v14  ;;  %v7260_v14 = vld [vmem:[%s9598_s0 + $0x100] sm:$0xff] }
 0x562   :  { %7238 = vrcp.f32 %v4375_v15 }
 0x56c   :  { %v7239_v52 = vpop.eup %7238 }
 0x56d   :  { %v4381_v31 = vrot.slane %v7239_v52, %v4380_v54 }
 0x56f   :  { %v4382_v42 = vmul.f32 %v4381_v31, %v9416_v34  ;;  %v4383_v63 = vmul.f32 %v4381_v31, %v9418_v24  ;;  %v4384_v50 = vmul.f32 %v4381_v31, %v9420_v21  ;;  %v4385_v18 = vmul.f32 %v4381_v31, %v9422_v48  ;;  %v7246_v24 = vld [vmem:[%s9598_s0 + $0x10] sm:$0xff]  ;;  %v7247_v48 = vld [vmem:[%s9598_s0 + $0x20] sm:$0xff] }
 0x570   :  { %v4386_v1 = vmul.f32 %v4381_v31, %v9424_v25  ;;  %v4387_v3 = vmul.f32 %v4381_v31, %v9426_v38  ;;  %v4388_v53 = vmul.f32 %v4381_v31, %v9428_v41  ;;  %v4389_v19 = vmul.f32 %v4381_v31, %v9430_v61  ;;  %v4496_v49 = vpop.f32.mrb[140].mxu0  ;;  %v7248_v25 = vld [vmem:[%s9598_s0 + $0x30] sm:$0xff] }
 0x571   :  { %v4390_v34 = vadd.f32 %v7245_v56, %v4382_v42  ;;  %v4391_v21 = vadd.f32 %v7246_v24, %v4383_v63  ;;  %v4392_v0 = vadd.f32 %v7247_v48, %v4384_v50  ;;  %v4393_v30 = vadd.f32 %v7248_v25, %v4385_v18  ;;  %v6442_v38 = vpop.f32.mrb[141].mxu0 }
 0x572   :  { %v4394_v41 = vadd.f32 %v7249_v16, %v4386_v1  ;;  %v4395_v61 = vadd.f32 %v7250_v43, %v4387_v3  ;;  %v4396_v33 = vadd.f32 %v7251_v12, %v4388_v53  ;;  %v4397_v26 = vadd.f32 %v7252_v29, %v4389_v19 }
 0x573   :  { %4398 = vst [vmem:[%s9610_s13] sm:$0xff] %v4390_v34  ;;  %4399 = vst [vmem:[%s9610_s13 + $0x8] sm:$0xff] %v4391_v21  ;;  %v4500_v23 = vmax.f32 %v4496_v49, 0.0 }
 0x574   :  { %4400 = vst [vmem:[%s9610_s13 + $0x10] sm:$0xff] %v4392_v0  ;;  %4401 = vst [vmem:[%s9610_s13 + $0x18] sm:$0xff] %v4393_v30 }
 0x575   :  { %4402 = vst [vmem:[%s9610_s13 + $0x20] sm:$0xff] %v4394_v41  ;;  %4403 = vst [vmem:[%s9610_s13 + $0x28] sm:$0xff] %v4395_v61  ;;  %6476 = vmatmul.mubr.f32.vlgmr.msra.gmra.mrb[142].mxu0 %v4500_v23 }
 0x576   :  { %4404 = vst [vmem:[%s9610_s13 + $0x30] sm:$0xff] %v4396_v33  ;;  %4405 = vst [vmem:[%s9610_s13 + $0x38] sm:$0xff] %v4397_v26 }
 0x648   :  { %v4567_v11 = vpop.f32.mrb[142].mxu0 }
 0x649   :  { %v4571_v28 = vsub.f32 0.0, %v4567_v11  ;;  %v6477_v10 = vpop.f32.mrb[143].mxu0 }
 0x64b   :  { %v4572_v5 = vmul.f32 1.442695, %v4571_v28 }
 0x64d   :  { %7240 = vpow2.f32 %v4572_v5 }
 0x657   :  { %v7241_v35 = vpop.eup %7240 }
 0x658   :  { %v4574_v17 = vadd.f32 1.0, %v7241_v35 }
 0x65a   :  { %7242 = vrcp.f32 %v4574_v17 }
 0x664   :  { %v7243_v36 = vpop.eup %7242 }
 0x665   :  { %v4580_v58 = vrot.slane %v7243_v36, %v4380_v54 }
 0x667   :  { %v4581_v44 = vmul.f32 %v4580_v58, %v9432_v8  ;;  %v4582_v46 = vmul.f32 %v4580_v58, %v9434_v62  ;;  %v4583_v57 = vmul.f32 %v4580_v58, %v9436_v22  ;;  %v4584_v37 = vmul.f32 %v4580_v58, %v9438_v60  ;;  %v7254_v8 = vld [vmem:[%s9598_s0 + $0xa0] sm:$0xff]  ;;  %v7255_v22 = vld [vmem:[%s9598_s0 + $0xb0] sm:$0xff] }
 0x668   :  { %v4585_v55 = vmul.f32 %v4580_v58, %v9440_v7  ;;  %v4586_v20 = vmul.f32 %v4580_v58, %v9442_v59  ;;  %v4587_v27 = vmul.f32 %v4580_v58, %v9444_v13  ;;  %v4588_v32 = vmul.f32 %v4580_v58, %v9446_v2  ;;  %v7256_v7 = vld [vmem:[%s9598_s0 + $0xc0] sm:$0xff]  ;;  %v7257_v13 = vld [vmem:[%s9598_s0 + $0xd0] sm:$0xff] }
 0x669   :  { %v4589_v39 = vadd.f32 %v7253_v6, %v4581_v44  ;;  %v4590_v62 = vadd.f32 %v7254_v8, %v4582_v46  ;;  %v4591_v60 = vadd.f32 %v7255_v22, %v4583_v57  ;;  %v4592_v59 = vadd.f32 %v7256_v7, %v4584_v37 }
 0x66a   :  { %v4593_v2 = vadd.f32 %v7257_v13, %v4585_v55  ;;  %v4594_v45 = vadd.f32 %v7258_v4, %v4586_v20  ;;  %v4595_v47 = vadd.f32 %v7259_v40, %v4587_v27  ;;  %v4596_v15 = vadd.f32 %v7260_v14, %v4588_v32 }
 0x66b   :  { %4744 = vst [vmem:[%s9610_s13 + $0x40] sm:$0xff] %v4589_v39  ;;  %4745 = vst [vmem:[%s9610_s13 + $0x48] sm:$0xff] %v4590_v62 }
 0x66c   :  { %4746 = vst [vmem:[%s9610_s13 + $0x50] sm:$0xff] %v4591_v60  ;;  %4747 = vst [vmem:[%s9610_s13 + $0x58] sm:$0xff] %v4592_v59 }
 0x66d   :  { %4748 = vst [vmem:[%s9610_s13 + $0x60] sm:$0xff] %v4593_v2  ;;  %4749 = vst [vmem:[%s9610_s13 + $0x68] sm:$0xff] %v4594_v45 }
 0x66e   :  { %4750 = vst [vmem:[%s9610_s13 + $0x70] sm:$0xff] %v4595_v47  ;;  %4751 = vst [vmem:[%s9610_s13 + $0x78] sm:$0xff] %v4596_v15 }

</bundles_post_ra>
